<compile_context>
chip_gen: v5e
topology: v5e:2x2
jax: 0.10.0
libtpu: 0.0.40
codegen_flags: <defaults>
</compile_context>

<pallas_src>
import jax
import jax.numpy as jnp
from jax.experimental import pallas as pl
from jax.experimental.pallas import tpu as pltpu

CHAT_SIZE = 6      # T  (layer_norm_1 is over (T, T); fff input is T*T)
N_EMBD = 80        # C
EPS = 1e-5         # PyTorch LayerNorm default eps
LANE = 128         # TPU lane width

# Row layout of the packed parameter table `ptab` (shape (_PTAB_ROWS, T)):
_ROW_W1G = 0                                    # rows [0, 36): (g1 * W1)^T, row idx = i*T + j
_ROW_W2 = CHAT_SIZE * CHAT_SIZE                 # rows [36, 42): W2^T
_ROW_W1GSUM = _ROW_W2 + CHAT_SIZE               # 42: column sums of (g1*W1)^T
_ROW_BB1 = _ROW_W1GSUM + 1                      # 43: fff bias1 with ln1 beta folded in
_ROW_BB2 = _ROW_BB1 + 1                         # 44: fff bias2
_ROW_G2 = _ROW_BB2 + 1                          # 45: layer_norm_2 weight
_ROW_BE2 = _ROW_G2 + 1                          # 46: layer_norm_2 bias
_PTAB_ROWS = _ROW_BE2 + 1                       # 47


def final_block_kernel(x_ref, wcat_ref, ptab_ref, o_ref):
    T = CHAT_SIZE
    TB = x_ref.shape[1]                                  # batch elements per grid step

    wcat = wcat_ref[...]                                 # (C, 2*128)

    # Fused q/k projection: one (TB, C) @ (C, 256) MXU matmul per position t.
    # Lanes [0, C) hold q (C**-0.5 already folded into the weight), lanes
    # [128, 128+C) hold k; the remaining lanes are zero, so the 128-lane split is
    # layout-free and the zero lanes add nothing to the q.k reductions below.
    qs, ks = [], []
    for t in range(T):
        kq = jnp.dot(x_ref[t], wcat, preferred_element_type=jnp.float32)   # (TB, 256)
        qs.append(kq[:, :LANE])
        ks.append(kq[:, LANE:])

    # wei[b, i, j] = q[b, i, :] . k[b, j, :].  We never materialize (TB, T, T);
    # instead stream the 36 (i, j) columns and fuse:
    #   - LayerNorm((T, T)) statistics (per-b sum / sum-of-squares),
    #   - the Linear(T*T -> T) contraction (ln1 gamma/beta folded into it on host).
    s1 = jnp.zeros((TB, 1), jnp.float32)
    s2 = jnp.zeros((TB, 1), jnp.float32)
    raw = jnp.zeros((TB, T), jnp.float32)
    for i in range(T):
        qi = qs[i]
        for j in range(T):
            c = jnp.sum(qi * ks[j], axis=-1, keepdims=True)                # (TB, 1)
            s1 = s1 + c
            s2 = s2 + c * c
            row = _ROW_W1G + i * T + j
            raw = raw + c * ptab_ref[row:row + 1, :]                       # (TB, T)

    inv_n = 1.0 / float(T * T)
    mu = s1 * inv_n                                                        # (TB, 1)
    var = s2 * inv_n - mu * mu                                             # E[x^2] - E[x]^2
    r = jax.lax.rsqrt(var + EPS)                                           # (TB, 1)

    w1gsum = ptab_ref[_ROW_W1GSUM:_ROW_W1GSUM + 1, :]                      # (1, T)
    bb1 = ptab_ref[_ROW_BB1:_ROW_BB1 + 1, :]
    bb2 = ptab_ref[_ROW_BB2:_ROW_BB2 + 1, :]
    g2 = ptab_ref[_ROW_G2:_ROW_G2 + 1, :]
    be2 = ptab_ref[_ROW_BE2:_ROW_BE2 + 1, :]
    w2t = ptab_ref[_ROW_W2:_ROW_W2 + T, :]                                 # (T, T)

    # h1 = relu( flatten(LN1(wei)) @ W1^T + b1 )  with LN1's affine folded into W1/b1.
    h1 = jnp.maximum((raw - mu * w1gsum) * r + bb1, 0.0)                   # (TB, T)
    # h2 = relu( h1 @ W2^T + b2 )
    h2 = jnp.dot(h1, w2t, preferred_element_type=jnp.float32) + bb2
    h2 = jnp.maximum(h2, 0.0)

    # layer_norm_2 over the last dim.
    mu2 = jnp.mean(h2, axis=-1, keepdims=True)
    var2 = jnp.mean((h2 - mu2) ** 2, axis=-1, keepdims=True)
    h2n = (h2 - mu2) * jax.lax.rsqrt(var2 + EPS) * g2 + be2

    # softmax over the last dim.
    m = jnp.max(h2n, axis=-1, keepdims=True)
    e = jnp.exp(h2n - m)
    o_ref[...] = e / jnp.sum(e, axis=-1, keepdims=True)                    # (TB, T)


def final_block(x, kernel_params, tb=32):
    """x: (B, T, C) float32 -> (B, T) softmax probabilities."""
    wcat, ptab = kernel_params
    B, T, C = x.shape
    assert T == CHAT_SIZE and C == N_EMBD

    tb = int(max(8, min(tb, ((B + 7) // 8) * 8)))        # keep TB a multiple of 8
    nb = pl.cdiv(B, tb)
    Bp = nb * tb

    xt = jnp.transpose(x, (1, 0, 2))                     # (T, B, C): b becomes sublane dim
    if Bp != B:
        xt = jnp.pad(xt, ((0, 0), (0, Bp - B), (0, 0)))  # zero-pad batch (safe through LN)

    out = pl.pallas_call(
        final_block_kernel,
        out_shape=jax.ShapeDtypeStruct((Bp, T), jnp.float32),
        grid=(nb,),
        in_specs=[
            pl.BlockSpec((T, tb, C), lambda g: (0, g, 0)),          # x (transposed)
            pl.BlockSpec((C, 2 * LANE), lambda g: (0, 0)),          # fused q/k weight
            pl.BlockSpec((_PTAB_ROWS, T), lambda g: (0, 0)),        # packed small params
        ],
        out_specs=pl.BlockSpec((tb, T), lambda g: (g, 0)),
        compiler_params=pltpu.CompilerParams(dimension_semantics=("parallel",)),
    )(xt, wcat, ptab)
    return out[:B]


# --------------------- host-side parameter setup & reference ---------------------

def pack_params(torch_params):
    """Repack PyTorch-layout params into the kernel's two packed arrays."""
    Wk, Wq, g1, b1, W1, bb1, W2, bb2, g2, be2 = torch_params
    T, C = CHAT_SIZE, N_EMBD
    scale = C ** -0.5

    # Fused, lane-padded q/k projection weight: q (pre-scaled) in lanes [0,C),
    # k in lanes [128,128+C), zeros elsewhere.
    wcat = jnp.zeros((C, 2 * LANE), jnp.float32)
    wcat = wcat.at[:, :C].set(Wq.T * scale)
    wcat = wcat.at[:, LANE:LANE + C].set(Wk.T)

    # Fold layer_norm_1's affine (g1, b1) into fff's first Linear (dropout p=0 => exact):
    #   h1 = relu( sum_ij ((wei-mu)*r) * (g1_ij * W1[:,ij]) + (bb1 + W1 @ b1.flat) )
    w1g = W1.T * g1.reshape(T * T, 1)                    # (36, 6)
    w1gsum = jnp.sum(w1g, axis=0, keepdims=True)         # (1, 6)
    bb1_eff = (bb1 + W1 @ b1.reshape(T * T))[None, :]    # (1, 6)

    ptab = jnp.concatenate(
        [w1g, W2.T, w1gsum, bb1_eff, bb2[None, :], g2[None, :], be2[None, :]],
        axis=0).astype(jnp.float32)                      # (47, 6)
    assert ptab.shape == (_PTAB_ROWS, T)
    return wcat, ptab


def init_params(key):
    T, C = CHAT_SIZE, N_EMBD
    ks = jax.random.split(key, 10)
    Wk = 0.05 * jax.random.normal(ks[0], (C, C), jnp.float32)        # key.weight (out, in)
    Wq = 0.05 * jax.random.normal(ks[1], (C, C), jnp.float32)        # query.weight
    g1 = 1.0 + 0.1 * jax.random.normal(ks[2], (T, T), jnp.float32)   # ln1 weight
    b1 = 0.1 * jax.random.normal(ks[3], (T, T), jnp.float32)         # ln1 bias
    W1 = 0.1 * jax.random.normal(ks[4], (T, T * T), jnp.float32)     # Linear(36, 6).weight
    bb1 = 0.1 * jax.random.normal(ks[5], (T,), jnp.float32)
    W2 = 0.1 * jax.random.normal(ks[6], (T, T), jnp.float32)         # Linear(6, 6).weight
    bb2 = 0.1 * jax.random.normal(ks[7], (T,), jnp.float32)
    g2 = 1.0 + 0.1 * jax.random.normal(ks[8], (T,), jnp.float32)     # ln2 weight
    be2 = 0.1 * jax.random.normal(ks[9], (T,), jnp.float32)          # ln2 bias
    torch_params = (Wk, Wq, g1, b1, W1, bb1, W2, bb2, g2, be2)
    return torch_params, pack_params(torch_params)


def reference(x, torch_params):
    """Pure-JAX transcription of Final_block.forward (PyTorch semantics)."""
    Wk, Wq, g1, b1, W1, bb1, W2, bb2, g2, be2 = torch_params
    B, T, C = x.shape
    k = x @ Wk.T
    q = x @ Wq.T
    wei = (q @ jnp.swapaxes(k, -2, -1)) * (C ** -0.5)
    mu = wei.mean(axis=(-2, -1), keepdims=True)
    var = ((wei - mu) ** 2).mean(axis=(-2, -1), keepdims=True)
    wei = (wei - mu) / jnp.sqrt(var + EPS) * g1 + b1
    v = wei.reshape(B, T * T)
    h1 = jax.nn.relu(v @ W1.T + bb1)
    h2 = jax.nn.relu(h1 @ W2.T + bb2)
    mu2 = h2.mean(-1, keepdims=True)
    var2 = ((h2 - mu2) ** 2).mean(-1, keepdims=True)
    h2n = (h2 - mu2) / jnp.sqrt(var2 + EPS) * g2 + be2
    return jax.nn.softmax(h2n, axis=-1)


if __name__ == "__main__":
    B, T, C = 64, CHAT_SIZE, N_EMBD          # 64 elements -> 2 grid steps of TB=32
    key = jax.random.PRNGKey(0)
    kx, kp = jax.random.split(key)
    x = jax.random.normal(kx, (B, T, C), jnp.float32)
    torch_params, kernel_params = init_params(kp)

    out = final_block(x, kernel_params, tb=32)
    out = jax.block_until_ready(out)

    ref = reference(x, torch_params)
    assert out.shape == (B, T)
    assert jnp.allclose(out, ref, atol=1e-3, rtol=1e-3), (out, ref)

    print("KERNEL_OK")
</pallas_src>

<mosaic_0001>
module attributes {stable_mosaic.version = 11 : i64} {
  func.func @final_block_kernel(%arg0: i32, %arg1: memref<6x32x80xf32, #tpu.memory_space<vmem>>, %arg2: memref<80x256xf32, #tpu.memory_space<vmem>>, %arg3: memref<47x6xf32, #tpu.memory_space<vmem>>, %arg4: memref<32x6xf32, #tpu.memory_space<vmem>>) attributes {dimension_semantics = [#tpu.dimension_semantics<parallel>], iteration_bounds = array<i64: 2>, scalar_prefetch = 0 : i64, scratch_operands = 0 : i64, tpu.core_type = #tpu.core_type<tc>, window_params = [{transform_indices = @transform_0, window_bounds = array<i64: 6, 32, 80>}, {pipeline_mode = #tpu.pipeline_mode<synchronous>, transform_indices = @transform_1, window_bounds = array<i64: 80, 256>}, {pipeline_mode = #tpu.pipeline_mode<synchronous>, transform_indices = @transform_2, window_bounds = array<i64: 47, 6>}, {transform_indices = @transform_3, window_bounds = array<i64: 32, 6>}]} {
    %c0 = arith.constant 0 : index
    %c0_0 = arith.constant 0 : index
    %0 = vector.load %arg2[%c0, %c0_0] : memref<80x256xf32, #tpu.memory_space<vmem>>, vector<80x256xf32>
    %c0_1 = arith.constant 0 : index
    %c0_2 = arith.constant 0 : index
    %c0_3 = arith.constant 0 : index
    %1 = vector.load %arg1[%c0_1, %c0_2, %c0_3] : memref<6x32x80xf32, #tpu.memory_space<vmem>>, vector<1x32x80xf32>
    %2 = vector.shape_cast %1 : vector<1x32x80xf32> to vector<32x80xf32>
    %cst = arith.constant dense<0.000000e+00> : vector<32x256xf32>
    %3 = tpu.matmul %2, %0, %cst {dimension_numbers = #tpu.dot_dimension_numbers<[1], [0], [0], [1], [0, 0, 1, 1], [], []>} : vector<32x80xf32>, vector<80x256xf32>, vector<32x256xf32> -> vector<32x256xf32>
    %4 = vector.extract_strided_slice %3 {offsets = [0, 0], sizes = [32, 128], strides = [1, 1]} : vector<32x256xf32> to vector<32x128xf32>
    %5 = vector.extract_strided_slice %3 {offsets = [0, 128], sizes = [32, 128], strides = [1, 1]} : vector<32x256xf32> to vector<32x128xf32>
    %c1 = arith.constant 1 : index
    %c0_4 = arith.constant 0 : index
    %c0_5 = arith.constant 0 : index
    %6 = vector.load %arg1[%c1, %c0_4, %c0_5] : memref<6x32x80xf32, #tpu.memory_space<vmem>>, vector<1x32x80xf32>
    %7 = vector.shape_cast %6 : vector<1x32x80xf32> to vector<32x80xf32>
    %cst_6 = arith.constant dense<0.000000e+00> : vector<32x256xf32>
    %8 = tpu.matmul %7, %0, %cst_6 {dimension_numbers = #tpu.dot_dimension_numbers<[1], [0], [0], [1], [0, 0, 1, 1], [], []>} : vector<32x80xf32>, vector<80x256xf32>, vector<32x256xf32> -> vector<32x256xf32>
    %9 = vector.extract_strided_slice %8 {offsets = [0, 0], sizes = [32, 128], strides = [1, 1]} : vector<32x256xf32> to vector<32x128xf32>
    %10 = vector.extract_strided_slice %8 {offsets = [0, 128], sizes = [32, 128], strides = [1, 1]} : vector<32x256xf32> to vector<32x128xf32>
    %c2 = arith.constant 2 : index
    %c0_7 = arith.constant 0 : index
    %c0_8 = arith.constant 0 : index
    %11 = vector.load %arg1[%c2, %c0_7, %c0_8] : memref<6x32x80xf32, #tpu.memory_space<vmem>>, vector<1x32x80xf32>
    %12 = vector.shape_cast %11 : vector<1x32x80xf32> to vector<32x80xf32>
    %cst_9 = arith.constant dense<0.000000e+00> : vector<32x256xf32>
    %13 = tpu.matmul %12, %0, %cst_9 {dimension_numbers = #tpu.dot_dimension_numbers<[1], [0], [0], [1], [0, 0, 1, 1], [], []>} : vector<32x80xf32>, vector<80x256xf32>, vector<32x256xf32> -> vector<32x256xf32>
    %14 = vector.extract_strided_slice %13 {offsets = [0, 0], sizes = [32, 128], strides = [1, 1]} : vector<32x256xf32> to vector<32x128xf32>
    %15 = vector.extract_strided_slice %13 {offsets = [0, 128], sizes = [32, 128], strides = [1, 1]} : vector<32x256xf32> to vector<32x128xf32>
    %c3 = arith.constant 3 : index
    %c0_10 = arith.constant 0 : index
    %c0_11 = arith.constant 0 : index
    %16 = vector.load %arg1[%c3, %c0_10, %c0_11] : memref<6x32x80xf32, #tpu.memory_space<vmem>>, vector<1x32x80xf32>
    %17 = vector.shape_cast %16 : vector<1x32x80xf32> to vector<32x80xf32>
    %cst_12 = arith.constant dense<0.000000e+00> : vector<32x256xf32>
    %18 = tpu.matmul %17, %0, %cst_12 {dimension_numbers = #tpu.dot_dimension_numbers<[1], [0], [0], [1], [0, 0, 1, 1], [], []>} : vector<32x80xf32>, vector<80x256xf32>, vector<32x256xf32> -> vector<32x256xf32>
    %19 = vector.extract_strided_slice %18 {offsets = [0, 0], sizes = [32, 128], strides = [1, 1]} : vector<32x256xf32> to vector<32x128xf32>
    %20 = vector.extract_strided_slice %18 {offsets = [0, 128], sizes = [32, 128], strides = [1, 1]} : vector<32x256xf32> to vector<32x128xf32>
    %c4 = arith.constant 4 : index
    %c0_13 = arith.constant 0 : index
    %c0_14 = arith.constant 0 : index
    %21 = vector.load %arg1[%c4, %c0_13, %c0_14] : memref<6x32x80xf32, #tpu.memory_space<vmem>>, vector<1x32x80xf32>
    %22 = vector.shape_cast %21 : vector<1x32x80xf32> to vector<32x80xf32>
    %cst_15 = arith.constant dense<0.000000e+00> : vector<32x256xf32>
    %23 = tpu.matmul %22, %0, %cst_15 {dimension_numbers = #tpu.dot_dimension_numbers<[1], [0], [0], [1], [0, 0, 1, 1], [], []>} : vector<32x80xf32>, vector<80x256xf32>, vector<32x256xf32> -> vector<32x256xf32>
    %24 = vector.extract_strided_slice %23 {offsets = [0, 0], sizes = [32, 128], strides = [1, 1]} : vector<32x256xf32> to vector<32x128xf32>
    %25 = vector.extract_strided_slice %23 {offsets = [0, 128], sizes = [32, 128], strides = [1, 1]} : vector<32x256xf32> to vector<32x128xf32>
    %c5 = arith.constant 5 : index
    %c0_16 = arith.constant 0 : index
    %c0_17 = arith.constant 0 : index
    %26 = vector.load %arg1[%c5, %c0_16, %c0_17] : memref<6x32x80xf32, #tpu.memory_space<vmem>>, vector<1x32x80xf32>
    %27 = vector.shape_cast %26 : vector<1x32x80xf32> to vector<32x80xf32>
    %cst_18 = arith.constant dense<0.000000e+00> : vector<32x256xf32>
    %28 = tpu.matmul %27, %0, %cst_18 {dimension_numbers = #tpu.dot_dimension_numbers<[1], [0], [0], [1], [0, 0, 1, 1], [], []>} : vector<32x80xf32>, vector<80x256xf32>, vector<32x256xf32> -> vector<32x256xf32>
    %29 = vector.extract_strided_slice %28 {offsets = [0, 0], sizes = [32, 128], strides = [1, 1]} : vector<32x256xf32> to vector<32x128xf32>
    %30 = vector.extract_strided_slice %28 {offsets = [0, 128], sizes = [32, 128], strides = [1, 1]} : vector<32x256xf32> to vector<32x128xf32>
    %cst_19 = arith.constant 0.000000e+00 : f32
    %31 = vector.broadcast %cst_19 : f32 to vector<32x1xf32>
    %cst_20 = arith.constant 0.000000e+00 : f32
    %32 = vector.broadcast %cst_20 : f32 to vector<32x1xf32>
    %cst_21 = arith.constant 0.000000e+00 : f32
    %33 = vector.broadcast %cst_21 : f32 to vector<32x6xf32>
    %34 = arith.mulf %4, %5 : vector<32x128xf32>
    %cst_22 = arith.constant dense<0.000000e+00> : vector<32xf32>
    %35 = vector.multi_reduction <add>, %34, %cst_22 [1] : vector<32x128xf32> to vector<32xf32>
    %36 = vector.shape_cast %35 : vector<32xf32> to vector<32x1xf32>
    %37 = arith.addf %31, %36 : vector<32x1xf32>
    %38 = arith.mulf %36, %36 : vector<32x1xf32>
    %39 = arith.addf %32, %38 : vector<32x1xf32>
    %c0_23 = arith.constant 0 : index
    %c0_24 = arith.constant 0 : index
    %40 = vector.load %arg3[%c0_23, %c0_24] : memref<47x6xf32, #tpu.memory_space<vmem>>, vector<1x6xf32>
    %41 = vector.broadcast %36 : vector<32x1xf32> to vector<32x6xf32>
    %42 = vector.broadcast %40 : vector<1x6xf32> to vector<32x6xf32>
    %43 = arith.mulf %41, %42 : vector<32x6xf32>
    %44 = arith.addf %33, %43 : vector<32x6xf32>
    %45 = arith.mulf %4, %10 : vector<32x128xf32>
    %cst_25 = arith.constant dense<0.000000e+00> : vector<32xf32>
    %46 = vector.multi_reduction <add>, %45, %cst_25 [1] : vector<32x128xf32> to vector<32xf32>
    %47 = vector.shape_cast %46 : vector<32xf32> to vector<32x1xf32>
    %48 = arith.addf %37, %47 : vector<32x1xf32>
    %49 = arith.mulf %47, %47 : vector<32x1xf32>
    %50 = arith.addf %39, %49 : vector<32x1xf32>
    %c1_26 = arith.constant 1 : index
    %c0_27 = arith.constant 0 : index
    %51 = vector.load %arg3[%c1_26, %c0_27] : memref<47x6xf32, #tpu.memory_space<vmem>>, vector<1x6xf32>
    %52 = vector.broadcast %47 : vector<32x1xf32> to vector<32x6xf32>
    %53 = vector.broadcast %51 : vector<1x6xf32> to vector<32x6xf32>
    %54 = arith.mulf %52, %53 : vector<32x6xf32>
    %55 = arith.addf %44, %54 : vector<32x6xf32>
    %56 = arith.mulf %4, %15 : vector<32x128xf32>
    %cst_28 = arith.constant dense<0.000000e+00> : vector<32xf32>
    %57 = vector.multi_reduction <add>, %56, %cst_28 [1] : vector<32x128xf32> to vector<32xf32>
    %58 = vector.shape_cast %57 : vector<32xf32> to vector<32x1xf32>
    %59 = arith.addf %48, %58 : vector<32x1xf32>
    %60 = arith.mulf %58, %58 : vector<32x1xf32>
    %61 = arith.addf %50, %60 : vector<32x1xf32>
    %c2_29 = arith.constant 2 : index
    %c0_30 = arith.constant 0 : index
    %62 = vector.load %arg3[%c2_29, %c0_30] : memref<47x6xf32, #tpu.memory_space<vmem>>, vector<1x6xf32>
    %63 = vector.broadcast %58 : vector<32x1xf32> to vector<32x6xf32>
    %64 = vector.broadcast %62 : vector<1x6xf32> to vector<32x6xf32>
    %65 = arith.mulf %63, %64 : vector<32x6xf32>
    %66 = arith.addf %55, %65 : vector<32x6xf32>
    %67 = arith.mulf %4, %20 : vector<32x128xf32>
    %cst_31 = arith.constant dense<0.000000e+00> : vector<32xf32>
    %68 = vector.multi_reduction <add>, %67, %cst_31 [1] : vector<32x128xf32> to vector<32xf32>
    %69 = vector.shape_cast %68 : vector<32xf32> to vector<32x1xf32>
    %70 = arith.addf %59, %69 : vector<32x1xf32>
    %71 = arith.mulf %69, %69 : vector<32x1xf32>
    %72 = arith.addf %61, %71 : vector<32x1xf32>
    %c3_32 = arith.constant 3 : index
    %c0_33 = arith.constant 0 : index
    %73 = vector.load %arg3[%c3_32, %c0_33] : memref<47x6xf32, #tpu.memory_space<vmem>>, vector<1x6xf32>
    %74 = vector.broadcast %69 : vector<32x1xf32> to vector<32x6xf32>
    %75 = vector.broadcast %73 : vector<1x6xf32> to vector<32x6xf32>
    %76 = arith.mulf %74, %75 : vector<32x6xf32>
    %77 = arith.addf %66, %76 : vector<32x6xf32>
    %78 = arith.mulf %4, %25 : vector<32x128xf32>
    %cst_34 = arith.constant dense<0.000000e+00> : vector<32xf32>
    %79 = vector.multi_reduction <add>, %78, %cst_34 [1] : vector<32x128xf32> to vector<32xf32>
    %80 = vector.shape_cast %79 : vector<32xf32> to vector<32x1xf32>
    %81 = arith.addf %70, %80 : vector<32x1xf32>
    %82 = arith.mulf %80, %80 : vector<32x1xf32>
    %83 = arith.addf %72, %82 : vector<32x1xf32>
    %c4_35 = arith.constant 4 : index
    %c0_36 = arith.constant 0 : index
    %84 = vector.load %arg3[%c4_35, %c0_36] : memref<47x6xf32, #tpu.memory_space<vmem>>, vector<1x6xf32>
    %85 = vector.broadcast %80 : vector<32x1xf32> to vector<32x6xf32>
    %86 = vector.broadcast %84 : vector<1x6xf32> to vector<32x6xf32>
    %87 = arith.mulf %85, %86 : vector<32x6xf32>
    %88 = arith.addf %77, %87 : vector<32x6xf32>
    %89 = arith.mulf %4, %30 : vector<32x128xf32>
    %cst_37 = arith.constant dense<0.000000e+00> : vector<32xf32>
    %90 = vector.multi_reduction <add>, %89, %cst_37 [1] : vector<32x128xf32> to vector<32xf32>
    %91 = vector.shape_cast %90 : vector<32xf32> to vector<32x1xf32>
    %92 = arith.addf %81, %91 : vector<32x1xf32>
    %93 = arith.mulf %91, %91 : vector<32x1xf32>
    %94 = arith.addf %83, %93 : vector<32x1xf32>
    %c5_38 = arith.constant 5 : index
    %c0_39 = arith.constant 0 : index
    %95 = vector.load %arg3[%c5_38, %c0_39] : memref<47x6xf32, #tpu.memory_space<vmem>>, vector<1x6xf32>
    %96 = vector.broadcast %91 : vector<32x1xf32> to vector<32x6xf32>
    %97 = vector.broadcast %95 : vector<1x6xf32> to vector<32x6xf32>
    %98 = arith.mulf %96, %97 : vector<32x6xf32>
    %99 = arith.addf %88, %98 : vector<32x6xf32>
    %100 = arith.mulf %9, %5 : vector<32x128xf32>
    %cst_40 = arith.constant dense<0.000000e+00> : vector<32xf32>
    %101 = vector.multi_reduction <add>, %100, %cst_40 [1] : vector<32x128xf32> to vector<32xf32>
    %102 = vector.shape_cast %101 : vector<32xf32> to vector<32x1xf32>
    %103 = arith.addf %92, %102 : vector<32x1xf32>
    %104 = arith.mulf %102, %102 : vector<32x1xf32>
    %105 = arith.addf %94, %104 : vector<32x1xf32>
    %c6 = arith.constant 6 : index
    %c0_41 = arith.constant 0 : index
    %106 = vector.load %arg3[%c6, %c0_41] : memref<47x6xf32, #tpu.memory_space<vmem>>, vector<1x6xf32>
    %107 = vector.broadcast %102 : vector<32x1xf32> to vector<32x6xf32>
    %108 = vector.broadcast %106 : vector<1x6xf32> to vector<32x6xf32>
    %109 = arith.mulf %107, %108 : vector<32x6xf32>
    %110 = arith.addf %99, %109 : vector<32x6xf32>
    %111 = arith.mulf %9, %10 : vector<32x128xf32>
    %cst_42 = arith.constant dense<0.000000e+00> : vector<32xf32>
    %112 = vector.multi_reduction <add>, %111, %cst_42 [1] : vector<32x128xf32> to vector<32xf32>
    %113 = vector.shape_cast %112 : vector<32xf32> to vector<32x1xf32>
    %114 = arith.addf %103, %113 : vector<32x1xf32>
    %115 = arith.mulf %113, %113 : vector<32x1xf32>
    %116 = arith.addf %105, %115 : vector<32x1xf32>
    %c7 = arith.constant 7 : index
    %c0_43 = arith.constant 0 : index
    %117 = vector.load %arg3[%c7, %c0_43] : memref<47x6xf32, #tpu.memory_space<vmem>>, vector<1x6xf32>
    %118 = vector.broadcast %113 : vector<32x1xf32> to vector<32x6xf32>
    %119 = vector.broadcast %117 : vector<1x6xf32> to vector<32x6xf32>
    %120 = arith.mulf %118, %119 : vector<32x6xf32>
    %121 = arith.addf %110, %120 : vector<32x6xf32>
    %122 = arith.mulf %9, %15 : vector<32x128xf32>
    %cst_44 = arith.constant dense<0.000000e+00> : vector<32xf32>
    %123 = vector.multi_reduction <add>, %122, %cst_44 [1] : vector<32x128xf32> to vector<32xf32>
    %124 = vector.shape_cast %123 : vector<32xf32> to vector<32x1xf32>
    %125 = arith.addf %114, %124 : vector<32x1xf32>
    %126 = arith.mulf %124, %124 : vector<32x1xf32>
    %127 = arith.addf %116, %126 : vector<32x1xf32>
    %c8 = arith.constant 8 : index
    %c0_45 = arith.constant 0 : index
    %128 = vector.load %arg3[%c8, %c0_45] : memref<47x6xf32, #tpu.memory_space<vmem>>, vector<1x6xf32>
    %129 = vector.broadcast %124 : vector<32x1xf32> to vector<32x6xf32>
    %130 = vector.broadcast %128 : vector<1x6xf32> to vector<32x6xf32>
    %131 = arith.mulf %129, %130 : vector<32x6xf32>
    %132 = arith.addf %121, %131 : vector<32x6xf32>
    %133 = arith.mulf %9, %20 : vector<32x128xf32>
    %cst_46 = arith.constant dense<0.000000e+00> : vector<32xf32>
    %134 = vector.multi_reduction <add>, %133, %cst_46 [1] : vector<32x128xf32> to vector<32xf32>
    %135 = vector.shape_cast %134 : vector<32xf32> to vector<32x1xf32>
    %136 = arith.addf %125, %135 : vector<32x1xf32>
    %137 = arith.mulf %135, %135 : vector<32x1xf32>
    %138 = arith.addf %127, %137 : vector<32x1xf32>
    %c9 = arith.constant 9 : index
    %c0_47 = arith.constant 0 : index
    %139 = vector.load %arg3[%c9, %c0_47] : memref<47x6xf32, #tpu.memory_space<vmem>>, vector<1x6xf32>
    %140 = vector.broadcast %135 : vector<32x1xf32> to vector<32x6xf32>
    %141 = vector.broadcast %139 : vector<1x6xf32> to vector<32x6xf32>
    %142 = arith.mulf %140, %141 : vector<32x6xf32>
    %143 = arith.addf %132, %142 : vector<32x6xf32>
    %144 = arith.mulf %9, %25 : vector<32x128xf32>
    %cst_48 = arith.constant dense<0.000000e+00> : vector<32xf32>
    %145 = vector.multi_reduction <add>, %144, %cst_48 [1] : vector<32x128xf32> to vector<32xf32>
    %146 = vector.shape_cast %145 : vector<32xf32> to vector<32x1xf32>
    %147 = arith.addf %136, %146 : vector<32x1xf32>
    %148 = arith.mulf %146, %146 : vector<32x1xf32>
    %149 = arith.addf %138, %148 : vector<32x1xf32>
    %c10 = arith.constant 10 : index
    %c0_49 = arith.constant 0 : index
    %150 = vector.load %arg3[%c10, %c0_49] : memref<47x6xf32, #tpu.memory_space<vmem>>, vector<1x6xf32>
    %151 = vector.broadcast %146 : vector<32x1xf32> to vector<32x6xf32>
    %152 = vector.broadcast %150 : vector<1x6xf32> to vector<32x6xf32>
    %153 = arith.mulf %151, %152 : vector<32x6xf32>
    %154 = arith.addf %143, %153 : vector<32x6xf32>
    %155 = arith.mulf %9, %30 : vector<32x128xf32>
    %cst_50 = arith.constant dense<0.000000e+00> : vector<32xf32>
    %156 = vector.multi_reduction <add>, %155, %cst_50 [1] : vector<32x128xf32> to vector<32xf32>
    %157 = vector.shape_cast %156 : vector<32xf32> to vector<32x1xf32>
    %158 = arith.addf %147, %157 : vector<32x1xf32>
    %159 = arith.mulf %157, %157 : vector<32x1xf32>
    %160 = arith.addf %149, %159 : vector<32x1xf32>
    %c11 = arith.constant 11 : index
    %c0_51 = arith.constant 0 : index
    %161 = vector.load %arg3[%c11, %c0_51] : memref<47x6xf32, #tpu.memory_space<vmem>>, vector<1x6xf32>
    %162 = vector.broadcast %157 : vector<32x1xf32> to vector<32x6xf32>
    %163 = vector.broadcast %161 : vector<1x6xf32> to vector<32x6xf32>
    %164 = arith.mulf %162, %163 : vector<32x6xf32>
    %165 = arith.addf %154, %164 : vector<32x6xf32>
    %166 = arith.mulf %14, %5 : vector<32x128xf32>
    %cst_52 = arith.constant dense<0.000000e+00> : vector<32xf32>
    %167 = vector.multi_reduction <add>, %166, %cst_52 [1] : vector<32x128xf32> to vector<32xf32>
    %168 = vector.shape_cast %167 : vector<32xf32> to vector<32x1xf32>
    %169 = arith.addf %158, %168 : vector<32x1xf32>
    %170 = arith.mulf %168, %168 : vector<32x1xf32>
    %171 = arith.addf %160, %170 : vector<32x1xf32>
    %c12 = arith.constant 12 : index
    %c0_53 = arith.constant 0 : index
    %172 = vector.load %arg3[%c12, %c0_53] : memref<47x6xf32, #tpu.memory_space<vmem>>, vector<1x6xf32>
    %173 = vector.broadcast %168 : vector<32x1xf32> to vector<32x6xf32>
    %174 = vector.broadcast %172 : vector<1x6xf32> to vector<32x6xf32>
    %175 = arith.mulf %173, %174 : vector<32x6xf32>
    %176 = arith.addf %165, %175 : vector<32x6xf32>
    %177 = arith.mulf %14, %10 : vector<32x128xf32>
    %cst_54 = arith.constant dense<0.000000e+00> : vector<32xf32>
    %178 = vector.multi_reduction <add>, %177, %cst_54 [1] : vector<32x128xf32> to vector<32xf32>
    %179 = vector.shape_cast %178 : vector<32xf32> to vector<32x1xf32>
    %180 = arith.addf %169, %179 : vector<32x1xf32>
    %181 = arith.mulf %179, %179 : vector<32x1xf32>
    %182 = arith.addf %171, %181 : vector<32x1xf32>
    %c13 = arith.constant 13 : index
    %c0_55 = arith.constant 0 : index
    %183 = vector.load %arg3[%c13, %c0_55] : memref<47x6xf32, #tpu.memory_space<vmem>>, vector<1x6xf32>
    %184 = vector.broadcast %179 : vector<32x1xf32> to vector<32x6xf32>
    %185 = vector.broadcast %183 : vector<1x6xf32> to vector<32x6xf32>
    %186 = arith.mulf %184, %185 : vector<32x6xf32>
    %187 = arith.addf %176, %186 : vector<32x6xf32>
    %188 = arith.mulf %14, %15 : vector<32x128xf32>
    %cst_56 = arith.constant dense<0.000000e+00> : vector<32xf32>
    %189 = vector.multi_reduction <add>, %188, %cst_56 [1] : vector<32x128xf32> to vector<32xf32>
    %190 = vector.shape_cast %189 : vector<32xf32> to vector<32x1xf32>
    %191 = arith.addf %180, %190 : vector<32x1xf32>
    %192 = arith.mulf %190, %190 : vector<32x1xf32>
    %193 = arith.addf %182, %192 : vector<32x1xf32>
    %c14 = arith.constant 14 : index
    %c0_57 = arith.constant 0 : index
    %194 = vector.load %arg3[%c14, %c0_57] : memref<47x6xf32, #tpu.memory_space<vmem>>, vector<1x6xf32>
    %195 = vector.broadcast %190 : vector<32x1xf32> to vector<32x6xf32>
    %196 = vector.broadcast %194 : vector<1x6xf32> to vector<32x6xf32>
    %197 = arith.mulf %195, %196 : vector<32x6xf32>
    %198 = arith.addf %187, %197 : vector<32x6xf32>
    %199 = arith.mulf %14, %20 : vector<32x128xf32>
    %cst_58 = arith.constant dense<0.000000e+00> : vector<32xf32>
    %200 = vector.multi_reduction <add>, %199, %cst_58 [1] : vector<32x128xf32> to vector<32xf32>
    %201 = vector.shape_cast %200 : vector<32xf32> to vector<32x1xf32>
    %202 = arith.addf %191, %201 : vector<32x1xf32>
    %203 = arith.mulf %201, %201 : vector<32x1xf32>
    %204 = arith.addf %193, %203 : vector<32x1xf32>
    %c15 = arith.constant 15 : index
    %c0_59 = arith.constant 0 : index
    %205 = vector.load %arg3[%c15, %c0_59] : memref<47x6xf32, #tpu.memory_space<vmem>>, vector<1x6xf32>
    %206 = vector.broadcast %201 : vector<32x1xf32> to vector<32x6xf32>
    %207 = vector.broadcast %205 : vector<1x6xf32> to vector<32x6xf32>
    %208 = arith.mulf %206, %207 : vector<32x6xf32>
    %209 = arith.addf %198, %208 : vector<32x6xf32>
    %210 = arith.mulf %14, %25 : vector<32x128xf32>
    %cst_60 = arith.constant dense<0.000000e+00> : vector<32xf32>
    %211 = vector.multi_reduction <add>, %210, %cst_60 [1] : vector<32x128xf32> to vector<32xf32>
    %212 = vector.shape_cast %211 : vector<32xf32> to vector<32x1xf32>
    %213 = arith.addf %202, %212 : vector<32x1xf32>
    %214 = arith.mulf %212, %212 : vector<32x1xf32>
    %215 = arith.addf %204, %214 : vector<32x1xf32>
    %c16 = arith.constant 16 : index
    %c0_61 = arith.constant 0 : index
    %216 = vector.load %arg3[%c16, %c0_61] : memref<47x6xf32, #tpu.memory_space<vmem>>, vector<1x6xf32>
    %217 = vector.broadcast %212 : vector<32x1xf32> to vector<32x6xf32>
    %218 = vector.broadcast %216 : vector<1x6xf32> to vector<32x6xf32>
    %219 = arith.mulf %217, %218 : vector<32x6xf32>
    %220 = arith.addf %209, %219 : vector<32x6xf32>
    %221 = arith.mulf %14, %30 : vector<32x128xf32>
    %cst_62 = arith.constant dense<0.000000e+00> : vector<32xf32>
    %222 = vector.multi_reduction <add>, %221, %cst_62 [1] : vector<32x128xf32> to vector<32xf32>
    %223 = vector.shape_cast %222 : vector<32xf32> to vector<32x1xf32>
    %224 = arith.addf %213, %223 : vector<32x1xf32>
    %225 = arith.mulf %223, %223 : vector<32x1xf32>
    %226 = arith.addf %215, %225 : vector<32x1xf32>
    %c17 = arith.constant 17 : index
    %c0_63 = arith.constant 0 : index
    %227 = vector.load %arg3[%c17, %c0_63] : memref<47x6xf32, #tpu.memory_space<vmem>>, vector<1x6xf32>
    %228 = vector.broadcast %223 : vector<32x1xf32> to vector<32x6xf32>
    %229 = vector.broadcast %227 : vector<1x6xf32> to vector<32x6xf32>
    %230 = arith.mulf %228, %229 : vector<32x6xf32>
    %231 = arith.addf %220, %230 : vector<32x6xf32>
    %232 = arith.mulf %19, %5 : vector<32x128xf32>
    %cst_64 = arith.constant dense<0.000000e+00> : vector<32xf32>
    %233 = vector.multi_reduction <add>, %232, %cst_64 [1] : vector<32x128xf32> to vector<32xf32>
    %234 = vector.shape_cast %233 : vector<32xf32> to vector<32x1xf32>
    %235 = arith.addf %224, %234 : vector<32x1xf32>
    %236 = arith.mulf %234, %234 : vector<32x1xf32>
    %237 = arith.addf %226, %236 : vector<32x1xf32>
    %c18 = arith.constant 18 : index
    %c0_65 = arith.constant 0 : index
    %238 = vector.load %arg3[%c18, %c0_65] : memref<47x6xf32, #tpu.memory_space<vmem>>, vector<1x6xf32>
    %239 = vector.broadcast %234 : vector<32x1xf32> to vector<32x6xf32>
    %240 = vector.broadcast %238 : vector<1x6xf32> to vector<32x6xf32>
    %241 = arith.mulf %239, %240 : vector<32x6xf32>
    %242 = arith.addf %231, %241 : vector<32x6xf32>
    %243 = arith.mulf %19, %10 : vector<32x128xf32>
    %cst_66 = arith.constant dense<0.000000e+00> : vector<32xf32>
    %244 = vector.multi_reduction <add>, %243, %cst_66 [1] : vector<32x128xf32> to vector<32xf32>
    %245 = vector.shape_cast %244 : vector<32xf32> to vector<32x1xf32>
    %246 = arith.addf %235, %245 : vector<32x1xf32>
    %247 = arith.mulf %245, %245 : vector<32x1xf32>
    %248 = arith.addf %237, %247 : vector<32x1xf32>
    %c19 = arith.constant 19 : index
    %c0_67 = arith.constant 0 : index
    %249 = vector.load %arg3[%c19, %c0_67] : memref<47x6xf32, #tpu.memory_space<vmem>>, vector<1x6xf32>
    %250 = vector.broadcast %245 : vector<32x1xf32> to vector<32x6xf32>
    %251 = vector.broadcast %249 : vector<1x6xf32> to vector<32x6xf32>
    %252 = arith.mulf %250, %251 : vector<32x6xf32>
    %253 = arith.addf %242, %252 : vector<32x6xf32>
    %254 = arith.mulf %19, %15 : vector<32x128xf32>
    %cst_68 = arith.constant dense<0.000000e+00> : vector<32xf32>
    %255 = vector.multi_reduction <add>, %254, %cst_68 [1] : vector<32x128xf32> to vector<32xf32>
    %256 = vector.shape_cast %255 : vector<32xf32> to vector<32x1xf32>
    %257 = arith.addf %246, %256 : vector<32x1xf32>
    %258 = arith.mulf %256, %256 : vector<32x1xf32>
    %259 = arith.addf %248, %258 : vector<32x1xf32>
    %c20 = arith.constant 20 : index
    %c0_69 = arith.constant 0 : index
    %260 = vector.load %arg3[%c20, %c0_69] : memref<47x6xf32, #tpu.memory_space<vmem>>, vector<1x6xf32>
    %261 = vector.broadcast %256 : vector<32x1xf32> to vector<32x6xf32>
    %262 = vector.broadcast %260 : vector<1x6xf32> to vector<32x6xf32>
    %263 = arith.mulf %261, %262 : vector<32x6xf32>
    %264 = arith.addf %253, %263 : vector<32x6xf32>
    %265 = arith.mulf %19, %20 : vector<32x128xf32>
    %cst_70 = arith.constant dense<0.000000e+00> : vector<32xf32>
    %266 = vector.multi_reduction <add>, %265, %cst_70 [1] : vector<32x128xf32> to vector<32xf32>
    %267 = vector.shape_cast %266 : vector<32xf32> to vector<32x1xf32>
    %268 = arith.addf %257, %267 : vector<32x1xf32>
    %269 = arith.mulf %267, %267 : vector<32x1xf32>
    %270 = arith.addf %259, %269 : vector<32x1xf32>
    %c21 = arith.constant 21 : index
    %c0_71 = arith.constant 0 : index
    %271 = vector.load %arg3[%c21, %c0_71] : memref<47x6xf32, #tpu.memory_space<vmem>>, vector<1x6xf32>
    %272 = vector.broadcast %267 : vector<32x1xf32> to vector<32x6xf32>
    %273 = vector.broadcast %271 : vector<1x6xf32> to vector<32x6xf32>
    %274 = arith.mulf %272, %273 : vector<32x6xf32>
    %275 = arith.addf %264, %274 : vector<32x6xf32>
    %276 = arith.mulf %19, %25 : vector<32x128xf32>
    %cst_72 = arith.constant dense<0.000000e+00> : vector<32xf32>
    %277 = vector.multi_reduction <add>, %276, %cst_72 [1] : vector<32x128xf32> to vector<32xf32>
    %278 = vector.shape_cast %277 : vector<32xf32> to vector<32x1xf32>
    %279 = arith.addf %268, %278 : vector<32x1xf32>
    %280 = arith.mulf %278, %278 : vector<32x1xf32>
    %281 = arith.addf %270, %280 : vector<32x1xf32>
    %c22 = arith.constant 22 : index
    %c0_73 = arith.constant 0 : index
    %282 = vector.load %arg3[%c22, %c0_73] : memref<47x6xf32, #tpu.memory_space<vmem>>, vector<1x6xf32>
    %283 = vector.broadcast %278 : vector<32x1xf32> to vector<32x6xf32>
    %284 = vector.broadcast %282 : vector<1x6xf32> to vector<32x6xf32>
    %285 = arith.mulf %283, %284 : vector<32x6xf32>
    %286 = arith.addf %275, %285 : vector<32x6xf32>
    %287 = arith.mulf %19, %30 : vector<32x128xf32>
    %cst_74 = arith.constant dense<0.000000e+00> : vector<32xf32>
    %288 = vector.multi_reduction <add>, %287, %cst_74 [1] : vector<32x128xf32> to vector<32xf32>
    %289 = vector.shape_cast %288 : vector<32xf32> to vector<32x1xf32>
    %290 = arith.addf %279, %289 : vector<32x1xf32>
    %291 = arith.mulf %289, %289 : vector<32x1xf32>
    %292 = arith.addf %281, %291 : vector<32x1xf32>
    %c23 = arith.constant 23 : index
    %c0_75 = arith.constant 0 : index
    %293 = vector.load %arg3[%c23, %c0_75] : memref<47x6xf32, #tpu.memory_space<vmem>>, vector<1x6xf32>
    %294 = vector.broadcast %289 : vector<32x1xf32> to vector<32x6xf32>
    %295 = vector.broadcast %293 : vector<1x6xf32> to vector<32x6xf32>
    %296 = arith.mulf %294, %295 : vector<32x6xf32>
    %297 = arith.addf %286, %296 : vector<32x6xf32>
    %298 = arith.mulf %24, %5 : vector<32x128xf32>
    %cst_76 = arith.constant dense<0.000000e+00> : vector<32xf32>
    %299 = vector.multi_reduction <add>, %298, %cst_76 [1] : vector<32x128xf32> to vector<32xf32>
    %300 = vector.shape_cast %299 : vector<32xf32> to vector<32x1xf32>
    %301 = arith.addf %290, %300 : vector<32x1xf32>
    %302 = arith.mulf %300, %300 : vector<32x1xf32>
    %303 = arith.addf %292, %302 : vector<32x1xf32>
    %c24 = arith.constant 24 : index
    %c0_77 = arith.constant 0 : index
    %304 = vector.load %arg3[%c24, %c0_77] : memref<47x6xf32, #tpu.memory_space<vmem>>, vector<1x6xf32>
    %305 = vector.broadcast %300 : vector<32x1xf32> to vector<32x6xf32>
    %306 = vector.broadcast %304 : vector<1x6xf32> to vector<32x6xf32>
    %307 = arith.mulf %305, %306 : vector<32x6xf32>
    %308 = arith.addf %297, %307 : vector<32x6xf32>
    %309 = arith.mulf %24, %10 : vector<32x128xf32>
    %cst_78 = arith.constant dense<0.000000e+00> : vector<32xf32>
    %310 = vector.multi_reduction <add>, %309, %cst_78 [1] : vector<32x128xf32> to vector<32xf32>
    %311 = vector.shape_cast %310 : vector<32xf32> to vector<32x1xf32>
    %312 = arith.addf %301, %311 : vector<32x1xf32>
    %313 = arith.mulf %311, %311 : vector<32x1xf32>
    %314 = arith.addf %303, %313 : vector<32x1xf32>
    %c25 = arith.constant 25 : index
    %c0_79 = arith.constant 0 : index
    %315 = vector.load %arg3[%c25, %c0_79] : memref<47x6xf32, #tpu.memory_space<vmem>>, vector<1x6xf32>
    %316 = vector.broadcast %311 : vector<32x1xf32> to vector<32x6xf32>
    %317 = vector.broadcast %315 : vector<1x6xf32> to vector<32x6xf32>
    %318 = arith.mulf %316, %317 : vector<32x6xf32>
    %319 = arith.addf %308, %318 : vector<32x6xf32>
    %320 = arith.mulf %24, %15 : vector<32x128xf32>
    %cst_80 = arith.constant dense<0.000000e+00> : vector<32xf32>
    %321 = vector.multi_reduction <add>, %320, %cst_80 [1] : vector<32x128xf32> to vector<32xf32>
    %322 = vector.shape_cast %321 : vector<32xf32> to vector<32x1xf32>
    %323 = arith.addf %312, %322 : vector<32x1xf32>
    %324 = arith.mulf %322, %322 : vector<32x1xf32>
    %325 = arith.addf %314, %324 : vector<32x1xf32>
    %c26 = arith.constant 26 : index
    %c0_81 = arith.constant 0 : index
    %326 = vector.load %arg3[%c26, %c0_81] : memref<47x6xf32, #tpu.memory_space<vmem>>, vector<1x6xf32>
    %327 = vector.broadcast %322 : vector<32x1xf32> to vector<32x6xf32>
    %328 = vector.broadcast %326 : vector<1x6xf32> to vector<32x6xf32>
    %329 = arith.mulf %327, %328 : vector<32x6xf32>
    %330 = arith.addf %319, %329 : vector<32x6xf32>
    %331 = arith.mulf %24, %20 : vector<32x128xf32>
    %cst_82 = arith.constant dense<0.000000e+00> : vector<32xf32>
    %332 = vector.multi_reduction <add>, %331, %cst_82 [1] : vector<32x128xf32> to vector<32xf32>
    %333 = vector.shape_cast %332 : vector<32xf32> to vector<32x1xf32>
    %334 = arith.addf %323, %333 : vector<32x1xf32>
    %335 = arith.mulf %333, %333 : vector<32x1xf32>
    %336 = arith.addf %325, %335 : vector<32x1xf32>
    %c27 = arith.constant 27 : index
    %c0_83 = arith.constant 0 : index
    %337 = vector.load %arg3[%c27, %c0_83] : memref<47x6xf32, #tpu.memory_space<vmem>>, vector<1x6xf32>
    %338 = vector.broadcast %333 : vector<32x1xf32> to vector<32x6xf32>
    %339 = vector.broadcast %337 : vector<1x6xf32> to vector<32x6xf32>
    %340 = arith.mulf %338, %339 : vector<32x6xf32>
    %341 = arith.addf %330, %340 : vector<32x6xf32>
    %342 = arith.mulf %24, %25 : vector<32x128xf32>
    %cst_84 = arith.constant dense<0.000000e+00> : vector<32xf32>
    %343 = vector.multi_reduction <add>, %342, %cst_84 [1] : vector<32x128xf32> to vector<32xf32>
    %344 = vector.shape_cast %343 : vector<32xf32> to vector<32x1xf32>
    %345 = arith.addf %334, %344 : vector<32x1xf32>
    %346 = arith.mulf %344, %344 : vector<32x1xf32>
    %347 = arith.addf %336, %346 : vector<32x1xf32>
    %c28 = arith.constant 28 : index
    %c0_85 = arith.constant 0 : index
    %348 = vector.load %arg3[%c28, %c0_85] : memref<47x6xf32, #tpu.memory_space<vmem>>, vector<1x6xf32>
    %349 = vector.broadcast %344 : vector<32x1xf32> to vector<32x6xf32>
    %350 = vector.broadcast %348 : vector<1x6xf32> to vector<32x6xf32>
    %351 = arith.mulf %349, %350 : vector<32x6xf32>
    %352 = arith.addf %341, %351 : vector<32x6xf32>
    %353 = arith.mulf %24, %30 : vector<32x128xf32>
    %cst_86 = arith.constant dense<0.000000e+00> : vector<32xf32>
    %354 = vector.multi_reduction <add>, %353, %cst_86 [1] : vector<32x128xf32> to vector<32xf32>
    %355 = vector.shape_cast %354 : vector<32xf32> to vector<32x1xf32>
    %356 = arith.addf %345, %355 : vector<32x1xf32>
    %357 = arith.mulf %355, %355 : vector<32x1xf32>
    %358 = arith.addf %347, %357 : vector<32x1xf32>
    %c29 = arith.constant 29 : index
    %c0_87 = arith.constant 0 : index
    %359 = vector.load %arg3[%c29, %c0_87] : memref<47x6xf32, #tpu.memory_space<vmem>>, vector<1x6xf32>
    %360 = vector.broadcast %355 : vector<32x1xf32> to vector<32x6xf32>
    %361 = vector.broadcast %359 : vector<1x6xf32> to vector<32x6xf32>
    %362 = arith.mulf %360, %361 : vector<32x6xf32>
    %363 = arith.addf %352, %362 : vector<32x6xf32>
    %364 = arith.mulf %29, %5 : vector<32x128xf32>
    %cst_88 = arith.constant dense<0.000000e+00> : vector<32xf32>
    %365 = vector.multi_reduction <add>, %364, %cst_88 [1] : vector<32x128xf32> to vector<32xf32>
    %366 = vector.shape_cast %365 : vector<32xf32> to vector<32x1xf32>
    %367 = arith.addf %356, %366 : vector<32x1xf32>
    %368 = arith.mulf %366, %366 : vector<32x1xf32>
    %369 = arith.addf %358, %368 : vector<32x1xf32>
    %c30 = arith.constant 30 : index
    %c0_89 = arith.constant 0 : index
    %370 = vector.load %arg3[%c30, %c0_89] : memref<47x6xf32, #tpu.memory_space<vmem>>, vector<1x6xf32>
    %371 = vector.broadcast %366 : vector<32x1xf32> to vector<32x6xf32>
    %372 = vector.broadcast %370 : vector<1x6xf32> to vector<32x6xf32>
    %373 = arith.mulf %371, %372 : vector<32x6xf32>
    %374 = arith.addf %363, %373 : vector<32x6xf32>
    %375 = arith.mulf %29, %10 : vector<32x128xf32>
    %cst_90 = arith.constant dense<0.000000e+00> : vector<32xf32>
    %376 = vector.multi_reduction <add>, %375, %cst_90 [1] : vector<32x128xf32> to vector<32xf32>
    %377 = vector.shape_cast %376 : vector<32xf32> to vector<32x1xf32>
    %378 = arith.addf %367, %377 : vector<32x1xf32>
    %379 = arith.mulf %377, %377 : vector<32x1xf32>
    %380 = arith.addf %369, %379 : vector<32x1xf32>
    %c31 = arith.constant 31 : index
    %c0_91 = arith.constant 0 : index
    %381 = vector.load %arg3[%c31, %c0_91] : memref<47x6xf32, #tpu.memory_space<vmem>>, vector<1x6xf32>
    %382 = vector.broadcast %377 : vector<32x1xf32> to vector<32x6xf32>
    %383 = vector.broadcast %381 : vector<1x6xf32> to vector<32x6xf32>
    %384 = arith.mulf %382, %383 : vector<32x6xf32>
    %385 = arith.addf %374, %384 : vector<32x6xf32>
    %386 = arith.mulf %29, %15 : vector<32x128xf32>
    %cst_92 = arith.constant dense<0.000000e+00> : vector<32xf32>
    %387 = vector.multi_reduction <add>, %386, %cst_92 [1] : vector<32x128xf32> to vector<32xf32>
    %388 = vector.shape_cast %387 : vector<32xf32> to vector<32x1xf32>
    %389 = arith.addf %378, %388 : vector<32x1xf32>
    %390 = arith.mulf %388, %388 : vector<32x1xf32>
    %391 = arith.addf %380, %390 : vector<32x1xf32>
    %c32 = arith.constant 32 : index
    %c0_93 = arith.constant 0 : index
    %392 = vector.load %arg3[%c32, %c0_93] : memref<47x6xf32, #tpu.memory_space<vmem>>, vector<1x6xf32>
    %393 = vector.broadcast %388 : vector<32x1xf32> to vector<32x6xf32>
    %394 = vector.broadcast %392 : vector<1x6xf32> to vector<32x6xf32>
    %395 = arith.mulf %393, %394 : vector<32x6xf32>
    %396 = arith.addf %385, %395 : vector<32x6xf32>
    %397 = arith.mulf %29, %20 : vector<32x128xf32>
    %cst_94 = arith.constant dense<0.000000e+00> : vector<32xf32>
    %398 = vector.multi_reduction <add>, %397, %cst_94 [1] : vector<32x128xf32> to vector<32xf32>
    %399 = vector.shape_cast %398 : vector<32xf32> to vector<32x1xf32>
    %400 = arith.addf %389, %399 : vector<32x1xf32>
    %401 = arith.mulf %399, %399 : vector<32x1xf32>
    %402 = arith.addf %391, %401 : vector<32x1xf32>
    %c33 = arith.constant 33 : index
    %c0_95 = arith.constant 0 : index
    %403 = vector.load %arg3[%c33, %c0_95] : memref<47x6xf32, #tpu.memory_space<vmem>>, vector<1x6xf32>
    %404 = vector.broadcast %399 : vector<32x1xf32> to vector<32x6xf32>
    %405 = vector.broadcast %403 : vector<1x6xf32> to vector<32x6xf32>
    %406 = arith.mulf %404, %405 : vector<32x6xf32>
    %407 = arith.addf %396, %406 : vector<32x6xf32>
    %408 = arith.mulf %29, %25 : vector<32x128xf32>
    %cst_96 = arith.constant dense<0.000000e+00> : vector<32xf32>
    %409 = vector.multi_reduction <add>, %408, %cst_96 [1] : vector<32x128xf32> to vector<32xf32>
    %410 = vector.shape_cast %409 : vector<32xf32> to vector<32x1xf32>
    %411 = arith.addf %400, %410 : vector<32x1xf32>
    %412 = arith.mulf %410, %410 : vector<32x1xf32>
    %413 = arith.addf %402, %412 : vector<32x1xf32>
    %c34 = arith.constant 34 : index
    %c0_97 = arith.constant 0 : index
    %414 = vector.load %arg3[%c34, %c0_97] : memref<47x6xf32, #tpu.memory_space<vmem>>, vector<1x6xf32>
    %415 = vector.broadcast %410 : vector<32x1xf32> to vector<32x6xf32>
    %416 = vector.broadcast %414 : vector<1x6xf32> to vector<32x6xf32>
    %417 = arith.mulf %415, %416 : vector<32x6xf32>
    %418 = arith.addf %407, %417 : vector<32x6xf32>
    %419 = arith.mulf %29, %30 : vector<32x128xf32>
    %cst_98 = arith.constant dense<0.000000e+00> : vector<32xf32>
    %420 = vector.multi_reduction <add>, %419, %cst_98 [1] : vector<32x128xf32> to vector<32xf32>
    %421 = vector.shape_cast %420 : vector<32xf32> to vector<32x1xf32>
    %422 = arith.addf %411, %421 : vector<32x1xf32>
    %423 = arith.mulf %421, %421 : vector<32x1xf32>
    %424 = arith.addf %413, %423 : vector<32x1xf32>
    %c35 = arith.constant 35 : index
    %c0_99 = arith.constant 0 : index
    %425 = vector.load %arg3[%c35, %c0_99] : memref<47x6xf32, #tpu.memory_space<vmem>>, vector<1x6xf32>
    %426 = vector.broadcast %421 : vector<32x1xf32> to vector<32x6xf32>
    %427 = vector.broadcast %425 : vector<1x6xf32> to vector<32x6xf32>
    %428 = arith.mulf %426, %427 : vector<32x6xf32>
    %429 = arith.addf %418, %428 : vector<32x6xf32>
    %cst_100 = arith.constant 0.027777778 : f32
    %430 = vector.broadcast %cst_100 : f32 to vector<32x1xf32>
    %431 = arith.mulf %422, %430 : vector<32x1xf32>
    %cst_101 = arith.constant 0.027777778 : f32
    %432 = vector.broadcast %cst_101 : f32 to vector<32x1xf32>
    %433 = arith.mulf %424, %432 : vector<32x1xf32>
    %434 = arith.mulf %431, %431 : vector<32x1xf32>
    %435 = arith.subf %433, %434 : vector<32x1xf32>
    %cst_102 = arith.constant 9.99999974E-6 : f32
    %436 = vector.broadcast %cst_102 : f32 to vector<32x1xf32>
    %437 = arith.addf %435, %436 : vector<32x1xf32>
    %438 = math.rsqrt %437 : vector<32x1xf32>
    %c42 = arith.constant 42 : index
    %c0_103 = arith.constant 0 : index
    %439 = vector.load %arg3[%c42, %c0_103] : memref<47x6xf32, #tpu.memory_space<vmem>>, vector<1x6xf32>
    %c43 = arith.constant 43 : index
    %c0_104 = arith.constant 0 : index
    %440 = vector.load %arg3[%c43, %c0_104] : memref<47x6xf32, #tpu.memory_space<vmem>>, vector<1x6xf32>
    %c44 = arith.constant 44 : index
    %c0_105 = arith.constant 0 : index
    %441 = vector.load %arg3[%c44, %c0_105] : memref<47x6xf32, #tpu.memory_space<vmem>>, vector<1x6xf32>
    %c45 = arith.constant 45 : index
    %c0_106 = arith.constant 0 : index
    %442 = vector.load %arg3[%c45, %c0_106] : memref<47x6xf32, #tpu.memory_space<vmem>>, vector<1x6xf32>
    %c46 = arith.constant 46 : index
    %c0_107 = arith.constant 0 : index
    %443 = vector.load %arg3[%c46, %c0_107] : memref<47x6xf32, #tpu.memory_space<vmem>>, vector<1x6xf32>
    %c36 = arith.constant 36 : index
    %c0_108 = arith.constant 0 : index
    %444 = vector.load %arg3[%c36, %c0_108] : memref<47x6xf32, #tpu.memory_space<vmem>>, vector<6x6xf32>
    %445 = vector.broadcast %431 : vector<32x1xf32> to vector<32x6xf32>
    %446 = vector.broadcast %439 : vector<1x6xf32> to vector<32x6xf32>
    %447 = arith.mulf %445, %446 : vector<32x6xf32>
    %448 = arith.subf %429, %447 : vector<32x6xf32>
    %449 = vector.broadcast %438 : vector<32x1xf32> to vector<32x6xf32>
    %450 = arith.mulf %448, %449 : vector<32x6xf32>
    %451 = vector.broadcast %440 : vector<1x6xf32> to vector<32x6xf32>
    %452 = arith.addf %450, %451 : vector<32x6xf32>
    %cst_109 = arith.constant 0.000000e+00 : f32
    %453 = vector.broadcast %cst_109 : f32 to vector<32x6xf32>
    %454 = arith.maximumf %452, %453 : vector<32x6xf32>
    %cst_110 = arith.constant dense<0.000000e+00> : vector<32x6xf32>
    %455 = tpu.matmul %454, %444, %cst_110 {dimension_numbers = #tpu.dot_dimension_numbers<[1], [0], [0], [1], [0, 0, 1, 1], [], []>} : vector<32x6xf32>, vector<6x6xf32>, vector<32x6xf32> -> vector<32x6xf32>
    %456 = vector.broadcast %441 : vector<1x6xf32> to vector<32x6xf32>
    %457 = arith.addf %455, %456 : vector<32x6xf32>
    %cst_111 = arith.constant 0.000000e+00 : f32
    %458 = vector.broadcast %cst_111 : f32 to vector<32x6xf32>
    %459 = arith.maximumf %457, %458 : vector<32x6xf32>
    %cst_112 = arith.constant dense<0.000000e+00> : vector<32xf32>
    %460 = vector.multi_reduction <add>, %459, %cst_112 [1] : vector<32x6xf32> to vector<32xf32>
    %461 = vector.shape_cast %460 : vector<32xf32> to vector<32x1xf32>
    %cst_113 = arith.constant 6.000000e+00 : f32
    %462 = vector.broadcast %cst_113 : f32 to vector<32x1xf32>
    %463 = arith.divf %461, %462 : vector<32x1xf32>
    %464 = vector.broadcast %463 : vector<32x1xf32> to vector<32x6xf32>
    %465 = arith.subf %459, %464 : vector<32x6xf32>
    %466 = arith.mulf %465, %465 : vector<32x6xf32>
    %cst_114 = arith.constant dense<0.000000e+00> : vector<32xf32>
    %467 = vector.multi_reduction <add>, %466, %cst_114 [1] : vector<32x6xf32> to vector<32xf32>
    %468 = vector.shape_cast %467 : vector<32xf32> to vector<32x1xf32>
    %cst_115 = arith.constant 6.000000e+00 : f32
    %469 = vector.broadcast %cst_115 : f32 to vector<32x1xf32>
    %470 = arith.divf %468, %469 : vector<32x1xf32>
    %471 = vector.broadcast %463 : vector<32x1xf32> to vector<32x6xf32>
    %472 = arith.subf %459, %471 : vector<32x6xf32>
    %cst_116 = arith.constant 9.99999974E-6 : f32
    %473 = vector.broadcast %cst_116 : f32 to vector<32x1xf32>
    %474 = arith.addf %470, %473 : vector<32x1xf32>
    %475 = math.rsqrt %474 : vector<32x1xf32>
    %476 = vector.broadcast %475 : vector<32x1xf32> to vector<32x6xf32>
    %477 = arith.mulf %472, %476 : vector<32x6xf32>
    %478 = vector.broadcast %442 : vector<1x6xf32> to vector<32x6xf32>
    %479 = arith.mulf %477, %478 : vector<32x6xf32>
    %480 = vector.broadcast %443 : vector<1x6xf32> to vector<32x6xf32>
    %481 = arith.addf %479, %480 : vector<32x6xf32>
    %cst_117 = arith.constant dense<0xFF800000> : vector<32xf32>
    %482 = vector.multi_reduction <maximumf>, %481, %cst_117 [1] : vector<32x6xf32> to vector<32xf32>
    %483 = vector.shape_cast %482 : vector<32xf32> to vector<32x1xf32>
    %484 = vector.broadcast %483 : vector<32x1xf32> to vector<32x6xf32>
    %485 = arith.subf %481, %484 : vector<32x6xf32>
    %486 = math.exp %485 : vector<32x6xf32>
    %cst_118 = arith.constant dense<0.000000e+00> : vector<32xf32>
    %487 = vector.multi_reduction <add>, %486, %cst_118 [1] : vector<32x6xf32> to vector<32xf32>
    %488 = vector.shape_cast %487 : vector<32xf32> to vector<32x1xf32>
    %489 = vector.broadcast %488 : vector<32x1xf32> to vector<32x6xf32>
    %490 = arith.divf %486, %489 : vector<32x6xf32>
    %c0_119 = arith.constant 0 : index
    %c0_120 = arith.constant 0 : index
    %491 = vector.load %arg4[%c0_119, %c0_120] : memref<32x6xf32, #tpu.memory_space<vmem>>, vector<32x6xf32>
    tpu.vector_store %arg4[%c0_119, %c0_120], %490 {strides = array<i32>} : memref<32x6xf32, #tpu.memory_space<vmem>>, vector<32x6xf32>,
    return
  }
  func.func @transform_0(%arg0: i32) -> (i32, i32, i32) {
    %c0_i32 = arith.constant 0 : i32
    %c0_i32_0 = arith.constant 0 : i32
    %c0_i32_1 = arith.constant 0 : i32
    return %c0_i32, %arg0, %c0_i32_0 : i32, i32, i32
  }
  func.func @transform_1(%arg0: i32) -> (i32, i32) {
    %c0_i32 = arith.constant 0 : i32
    %c0_i32_0 = arith.constant 0 : i32
    %c0_i32_1 = arith.constant 0 : i32
    return %c0_i32, %c0_i32_0 : i32, i32
  }
  func.func @transform_2(%arg0: i32) -> (i32, i32) {
    %c0_i32 = arith.constant 0 : i32
    %c0_i32_0 = arith.constant 0 : i32
    %c0_i32_1 = arith.constant 0 : i32
    return %c0_i32, %c0_i32_0 : i32, i32
  }
  func.func @transform_3(%arg0: i32) -> (i32, i32) {
    %c0_i32 = arith.constant 0 : i32
    %c0_i32_0 = arith.constant 0 : i32
    return %arg0, %c0_i32 : i32, i32
  }
}

</mosaic_0001>

<bundles_post_ra>
// kernel: tpu_custom_call.1
= control target key start
LH: loop header
LB: loop body
LE: loop exit
PB: predicated region body
PF: predicated region fallthrough
CT: control target
= control target key end

     0   :  { %8 = vsyncpa [#allocation3], 0  ;;  %s5037_s0 = inlined_call_operand.hbm [shape: f32[6,64,80], index: 0, kind: input, shape index: {}]   ;;  %s5038_s1 = inlined_call_operand.hbm [shape: f32[80,256], index: 1, kind: input, shape index: {}]   ;;  %s5039_s2 = inlined_call_operand.vmem [shape: f32[47,6], index: 2, kind: input, shape index: {}]   ;;  %s5040_s3 = inlined_call_operand.vmem [shape: f32[64,6], index: 3, kind: output, shape index: {}]  }
   0x1   :  { %10 = vsyncpa [#allocation3 + $0x1], 0 }
   0x2   :  { %11 = vsyncpa [#allocation5], 0  ;;  %s2690_s12 = smov 0   ;;  %s2692_s13 = smov 0  }
   0x3   :  { %s2694_s14 = smov 0   ;;  %s2696_s15 = smov 0  }
   0x4 LB: > { %s2352_s16 = sadd.s32 4294967295, %s2658_s15   ;;  %s2710_s17 = sadd.s32 1, %s2658_s15   ;;  %s2658_s15 = sphi %s2696_s15, %s5486_s15   ;;  %s2654_s14 = sphi %s2694_s14, %s5485_s14   ;;  %s2650_s13 = sphi %s2692_s13, %s5484_s13   ;;  %s2646_s12 = sphi %s2690_s12, %s5483_s12  }
   0x5   : > { %s21_s18 = ssub.s32 %s2658_s15, %s2710_s17  ;;  %s24_s19 = sadd.s32 1, %s2654_s14 }
   0x6   : > { %p22_p0 = scmp.eq.s32.totalorder %s21_s18, 0  ;;  %p31_p1 = scmp.ne.s32.totalorder %s2654_s14, %s2650_s13 }
   0x7   : > { %p32_p2 = scmp.eq.s32.totalorder %s2658_s15, 0  ;;  %p37_p3 = scmp.ne.s32.totalorder %s2650_s13, %s2646_s12 }
   0x8   : > { %s2720_s20 = scalar_select %p22_p0, %s2654_s14, %s24_s19  }
   0x9   : > { %p2722_p4 = por %p32_p2, %p31_p1  ;;  %p2728_p5 = scmp.eq.s32.totalorder %s2352_s16, 0 }
   0xa   : > { %p2354_p6 = scmp.ge.s32.totalorder %s2658_s15, 1  ;;  %p116_p7 = scmp.lt.s32.totalorder %s2658_s15, 3 }
   0xb   : > { %p2736_p8 = por %p2728_p5, %p37_p3  ;;  %s127_s27 = sshll.u32 %s5038_s1, 4  ;;  %s128_s27 = int_to_ptr.hbm [resolvable:$true] %s127_s27 }
   0xc   : > { %p2740_p9 = pnand %p2354_p6, %p116_p7  ;;  %s2660_s28 = smov [#allocation4]  }
   0xd   : > { %s129_s29 = sshll.u32 %s2660_s28, 4  ;;  %s2661_s30 = smov 256   ;;  %s130_s29 = int_to_ptr.vmem [resolvable:$true] %s129_s29 }
   0xe   : > { %p2467_p10 = pneg %p2740_p9  ;;  %s2662_s4 = smov 16  }
   0xf   : > { %p2356_p12 = scmp.ge.s32.totalorder %s2658_s15, 2 }
  0x10   : > { %p2468_p11 = pnand %p2467_p10, %p2728_p5 }
  0x11   : > { %142 = sbr.rel (%p2356_p12) target bundleno = 36 (0x24), region = 24 }
  0x12   : > { %2470 = dma.hbm_to_vmem [thread:$0]  (!%p2468_p11), %s128_s27, 2560, %s130_s29, [#allocation5], %s2661_s30, %s2661_s30, %s2662_s4  }
  0x16   : > { %s146_s5 = sand.u32 1, %s2654_s14   ;;  %s2440_s6 = sshll.u32 %s2658_s15, 5 }
  0x17   : > { %s2452_s7 = smul.u32 192, %s146_s5  ;;  %s155_s10 = scalar_lea.hbm %s5037_s0, %s2440_s6 }
  0x18   : > { %s168_s11 = sshll.u32 %s155_s10, 4  ;;  %s2663_s26 = smov 1024   ;;  %s169_s11 = int_to_ptr.hbm [resolvable:$true] %s168_s11 }
  0x19   : > { %s2456_s12 = scalar_select %p2722_p4, [#allocation0], [#allocation8] }
  0x1a   : > { %s150_s18 = scalar_lea.vmem [#allocation2], %s2452_s7  ;;  %2457 = sst [smem:[#allocation7]] (%p2722_p4), %s2663_s26 }
  0x1b   : > { %s170_s19 = sshll.u32 %s150_s18, 4  ;;  %s160_s25 = sld [smem:[%s2456_s12]]   ;;  %s171_s19 = int_to_ptr.vmem [resolvable:$true] %s170_s19 }
  0x1c   : > { %s2664_s27 = smov 512   ;;  %s2665_s28 = smov 4  }
  0x1d   : > { %2458 = sst [smem:[#allocation7 + $0x1]] (%p2722_p4), %s2664_s27  ;;  %s2666_s29 = smov 128  }
  0x1e   : > { %2459 = sst [smem:[#allocation7 + $0x2]] (%p2722_p4), %s2665_s28  ;;  %s2667_s4 = smov 8  }
  0x1f   : > { %2460 = sst [smem:[#allocation7 + $0x3]] (%p2722_p4), %s2666_s29  ;;  %s147_s7 = scalar_lea.sflag [#allocation3], %s146_s5 }
  0x20   : > { %2461 = sst [smem:[#allocation7 + $0x4]] (%p2722_p4), %s2666_s29  ;;  %s2668_s8 = smov [#allocation6]  }
  0x21   : > { %s2359_s30 = sshll.u32 %s160_s25, 26  ;;  %2462 = sst [smem:[#allocation7 + $0x5]] (%p2722_p4), %s2667_s4 }
  0x22   : > { %s2360_s6 = sadd.s32 134217728, %s2359_s30 }
  0x23   : > { %2463 = dma.general (%p2722_p4), %s169_s11, 3072, %s171_s19, %s147_s7, %s2668_s8, [#allocation7], %s2360_s6, 0  }
  0x24 PF: > { %195 = sbr.rel (%p2740_p9) target bundleno = 1457 (0x5b1), region = 32 }
  0x29   : > { %s197_s9 = sand.u32 1, %s2650_s13  }
  0x2a   : > { %s2453_s10 = smul.u32 192, %s197_s9  ;;  %s198_s12 = scalar_lea.sflag [#allocation3], %s197_s9 }
  0x2c   : > { %s2776_s18 = scalar_lea.vmem [#allocation2], %s2453_s10 }
  0x2d   : > { %2637 = dma.done.wait (%p2736_p8), %s198_s12, 3072  }
  0x2e   : > { %2639 = vsyncadd (%p2736_p8), %s198_s12, 4294964224 }
  0x2f   : > { %2641 = dma.done.wait (%p2728_p5), [#allocation5], 2560  }
  0x30   : > { %2643 = vsyncadd (%p2728_p5), [#allocation5], 4294964736  ;;  %v2786_v0 = vld [vmem:[#allocation4 + $0x90] sm:$0xff]  ;;  %v2788_v1 = vld [vmem:[#allocation4 + $0x98] sm:$0xff]  ;;  %vm261_vm0 = vcmask 654336   ;;  %vm2033_vm1 = vcmask 1045504  }
  0x31   : > { %v2790_v2 = vld [vmem:[#allocation4 + $0x80] sm:$0xff]  ;;  %280 = vmatpush.msra.mxu0 %v2786_v0  ;;  %2441 = vmatpush.msra.mxu1 %v2786_v0  ;;  %v2794_v3 = vld [vmem:[#allocation4 + $0x88] sm:$0xff]  ;;  %v2798_v4 = vld [vmem:[#allocation4 + $0x70] sm:$0xff]  ;;  %vm2020_vm5 = vcmask 48128   ;;  %s2363_s21 = sshll.u32 %s2352_s16, 2 }
  0x32   : > { %355 = vmatpush.msra.mxu2 %v2786_v0  ;;  %384 = vmatpush.msra.mxu3 %v2788_v1  ;;  %v2802_v5 = vld [vmem:[#allocation4 + $0x78] sm:$0xff]  ;;  %v2806_v6 = vld [vmem:[#allocation4 + $0x60] sm:$0xff]  ;;  %v2810_v7 = vld [vmem:[#allocation4 + $0x68] sm:$0xff]  ;;  %p232_p13 = scmp.lt.s32.totalorder %s2363_s21, 7 }
  0x33   : > { %281 = vmatpush.msra.mxu0 %v2790_v2  ;;  %2442 = vmatpush.msra.mxu1 %v2790_v2  ;;  %v2814_v8 = vld [vmem:[#allocation4 + $0x50] sm:$0xff]  ;;  %v2818_v9 = vld [vmem:[#allocation4 + $0x58] sm:$0xff]  ;;  %v2822_v10 = vld [vmem:[#allocation4 + $0x40] sm:$0xff] }
  0x34   : > { %356 = vmatpush.msra.mxu2 %v2790_v2  ;;  %385 = vmatpush.msra.mxu3 %v2794_v3  ;;  %v2824_v11 = vld [vmem:[#allocation4 + $0x48] sm:$0xff]  ;;  %v2826_v12 = vld [vmem:[#allocation4 + $0x30] sm:$0xff]  ;;  %v2830_v13 = vld [vmem:[#allocation4 + $0x38] sm:$0xff]  ;;  %s5488_s21 = smov (!%p232_p13, %s2363_s21), 7 }
  0x35   : > { %282 = vmatpush.msra.mxu0 %v2798_v4  ;;  %2443 = vmatpush.msra.mxu1 %v2798_v4  ;;  %v2834_v14 = vld [vmem:[#allocation4 + $0x20] sm:$0xff]  ;;  %v2838_v15 = vld [vmem:[#allocation4 + $0x28] sm:$0xff]  ;;  %v2844_v16 = vld [vmem:[#allocation4 + $0x10] sm:$0xff]  ;;  %s2364_s22 = sshll.u32 %s5488_s21, 3 }
  0x36   : > { %357 = vmatpush.msra.mxu2 %v2798_v4  ;;  %386 = vmatpush.msra.mxu3 %v2802_v5  ;;  %v2846_v17 = vld [vmem:[#allocation4 + $0x18] sm:$0xff]  ;;  %v2850_v18 = vld [vmem:[#allocation4] sm:$0xff]  ;;  %v2854_v19 = vld [vmem:[#allocation4 + $0x8] sm:$0xff]  ;;  %s5012_s15 = scalar_lea.vmem %s5040_s3, %s2364_s22 }
  0x37   : > { %283 = vmatpush.msra.mxu0 %v2806_v6  ;;  %2444 = vmatpush.msra.mxu1 %v2806_v6  ;;  %v257_v20 = vld [vmem:[%s2776_s18] sm:$0xff]  ;;  %v2867_v22 = vld [vmem:[%s2776_s18 + $0x18] sm:$0xff]  ;;  %v258_v23 = vld [vmem:[%s2776_s18 + $0x8] sm:$0xff] }
  0x38   : > { %358 = vmatpush.msra.mxu2 %v2806_v6  ;;  %387 = vmatpush.msra.mxu3 %v2810_v7  ;;  %v2373_v21 = vld [vmem:[%s2776_s18 + $0x20] sm:$0xff]  ;;  %v2374_v24 = vld [vmem:[%s2776_s18 + $0x28] sm:$0xff]  ;;  %v259_v25 = vld [vmem:[%s2776_s18 + $0x10] sm:$0xff] }
  0x39   : > { %284 = vmatpush.msra.mxu0 %v2814_v8  ;;  %2445 = vmatpush.msra.mxu1 %v2814_v8  ;;  %v2375_v26 = vld [vmem:[%s2776_s18 + $0x30] sm:$0xff]  ;;  %v2376_v27 = vld [vmem:[%s2776_s18 + $0x38] sm:$0xff]  ;;  %v2924_v28 = vld [vmem:[%s2776_s18 + $0x40] sm:$0xff] }
  0x3a   : > { %359 = vmatpush.msra.mxu2 %v2814_v8  ;;  %388 = vmatpush.msra.mxu3 %v2818_v9  ;;  %v2397_v29 = vld [vmem:[%s2776_s18 + $0x60] sm:$0xff]  ;;  %v2386_v30 = vld [vmem:[%s2776_s18 + $0x48] sm:$0xff]  ;;  %v2387_v32 = vld [vmem:[%s2776_s18 + $0x50] sm:$0xff] }
  0x3b   : > { %285 = vmatpush.msra.mxu0 %v2822_v10  ;;  %2446 = vmatpush.msra.mxu1 %v2822_v10  ;;  %v2398_v31 = vld [vmem:[%s2776_s18 + $0x68] sm:$0xff]  ;;  %v2399_v33 = vld [vmem:[%s2776_s18 + $0x70] sm:$0xff]  ;;  %v2388_v34 = vld [vmem:[%s2776_s18 + $0x58] sm:$0xff] }
  0x3c   : > { %360 = vmatpush.msra.mxu2 %v2822_v10  ;;  %389 = vmatpush.msra.mxu3 %v2824_v11  ;;  %v2400_v35 = vld [vmem:[%s2776_s18 + $0x78] sm:$0xff]  ;;  %v2409_v36 = vld [vmem:[%s2776_s18 + $0x80] sm:$0xff]  ;;  %v2410_v38 = vld [vmem:[%s2776_s18 + $0x88] sm:$0xff] }
  0x3d   : > { %286 = vmatpush.msra.mxu0 %v2826_v12  ;;  %2447 = vmatpush.msra.mxu1 %v2826_v12  ;;  %v2421_v37 = vld [vmem:[%s2776_s18 + $0xa0] sm:$0xff]  ;;  %v2422_v39 = vld [vmem:[%s2776_s18 + $0xa8] sm:$0xff]  ;;  %v2411_v40 = vld [vmem:[%s2776_s18 + $0x90] sm:$0xff] }
  0x3e   : > { %361 = vmatpush.msra.mxu2 %v2826_v12  ;;  %390 = vmatpush.msra.mxu3 %v2830_v13  ;;  %v2423_v41 = vld [vmem:[%s2776_s18 + $0xb0] sm:$0xff]  ;;  %v2412_v42 = vld [vmem:[%s2776_s18 + $0x98] sm:$0xff] }
  0x3f   : > { %287 = vmatpush.msra.mxu0 %v2834_v14  ;;  %2448 = vmatpush.msra.mxu1 %v2834_v14  ;;  %v2424_v43 = vld [vmem:[%s2776_s18 + $0xb8] sm:$0xff] }
  0x40   : > { %362 = vmatpush.msra.mxu2 %v2834_v14  ;;  %391 = vmatpush.msra.mxu3 %v2838_v15 }
  0x41   : > { %288 = vmatpush.msra.mxu0 %v2844_v16  ;;  %2449 = vmatpush.msra.mxu1 %v2844_v16 }
  0x42   : > { %363 = vmatpush.msra.mxu2 %v2844_v16  ;;  %392 = vmatpush.msra.mxu3 %v2846_v17 }
  0x43   : > { %289 = vmatpush.msra.mxu0 %v2850_v18  ;;  %2450 = vmatpush.msra.mxu1 %v2850_v18 }
  0x44   : > { %364 = vmatpush.msra.mxu2 %v2850_v18  ;;  %393 = vmatpush.msra.mxu3 %v2854_v19 }
  0x45   : > { %2365 = vmatmul.msk.f32.vlgmr.msra.gmra.mxu0 %vm261_vm0, %v257_v20  ;;  %309 = vmatpush.msrb.mxu1 %v2788_v1 }
  0x46   : > { %2377 = vmatmul.msk.f32.vlgmr.msra.gmra.mxu2 %vm261_vm0, %v2373_v21  ;;  %2381 = vmatmul.msk.f32.vlgmr.msra.gmra.mxu3 %vm261_vm0, %v2373_v21 }
  0x47   : > { %310 = vmatpush.msrb.mxu1 %v2794_v3  ;;  %430 = vmatpush.msrb.mxu0 %v2786_v0 }
  0x48   : > { %2368 = vmatmul.msk.f32.vlgmr.msra.gmra.mxu1 %vm261_vm0, %v2867_v22  ;;  %505 = vmatpush.msrb.mxu2 %v2786_v0 }
  0x49   : > { %311 = vmatpush.msrb.mxu1 %v2802_v5  ;;  %431 = vmatpush.msrb.mxu0 %v2790_v2 }
  0x4a   : > { %534 = vmatpush.msrb.mxu3 %v2788_v1  ;;  %506 = vmatpush.msrb.mxu2 %v2790_v2 }
  0x4b   : > { %312 = vmatpush.msrb.mxu1 %v2810_v7  ;;  %432 = vmatpush.msrb.mxu0 %v2798_v4 }
  0x4c   : > { %535 = vmatpush.msrb.mxu3 %v2794_v3  ;;  %507 = vmatpush.msrb.mxu2 %v2798_v4 }
  0x4d   : > { %2366 = vmatmul.msk.f32.gmra.mxu0 %vm261_vm0, %v258_v23  ;;  %313 = vmatpush.msrb.mxu1 %v2818_v9 }
  0x4e   : > { %2378 = vmatmul.msk.f32.gmra.mxu2 %vm261_vm0, %v2374_v24  ;;  %2382 = vmatmul.msk.f32.gmra.mxu3 %vm261_vm0, %v2374_v24 }
  0x4f   : > { %314 = vmatpush.msrb.mxu1 %v2824_v11  ;;  %433 = vmatpush.msrb.mxu0 %v2806_v6 }
  0x50   : > { %536 = vmatpush.msrb.mxu3 %v2802_v5  ;;  %508 = vmatpush.msrb.mxu2 %v2806_v6 }
  0x51   : > { %315 = vmatpush.msrb.mxu1 %v2830_v13  ;;  %434 = vmatpush.msrb.mxu0 %v2814_v8 }
  0x52   : > { %537 = vmatpush.msrb.mxu3 %v2810_v7  ;;  %509 = vmatpush.msrb.mxu2 %v2814_v8 }
  0x53   : > { %316 = vmatpush.msrb.mxu1 %v2838_v15  ;;  %435 = vmatpush.msrb.mxu0 %v2822_v10 }
  0x54   : > { %538 = vmatpush.msrb.mxu3 %v2818_v9  ;;  %510 = vmatpush.msrb.mxu2 %v2822_v10 }
  0x55   : > { %2367 = vmatmul.msk.f32.gmra.mxu0 %vm261_vm0, %v259_v25  ;;  %317 = vmatpush.msrb.mxu1 %v2846_v17 }
  0x56   : > { %2379 = vmatmul.msk.f32.gmra.mxu2 %vm261_vm0, %v2375_v26  ;;  %2383 = vmatmul.msk.f32.gmra.mxu3 %vm261_vm0, %v2375_v26 }
  0x57   : > { %436 = vmatpush.msrb.mxu0 %v2826_v12  ;;  %318 = vmatpush.msrb.mxu1 %v2854_v19 }
  0x58   : > { %2369 = vmatmul.msk.f32.vlgmr.msrb.gmra.mxu1 %vm261_vm0, %v257_v20  ;;  %539 = vmatpush.msrb.mxu3 %v2824_v11 }
  0x59   : > { %437 = vmatpush.msrb.mxu0 %v2834_v14  ;;  %459 = vmatpush.msra.mxu1 %v2788_v1 }
  0x5a   : > { %511 = vmatpush.msrb.mxu2 %v2826_v12  ;;  %540 = vmatpush.msrb.mxu3 %v2830_v13 }
  0x5b   : > { %438 = vmatpush.msrb.mxu0 %v2844_v16  ;;  %460 = vmatpush.msra.mxu1 %v2794_v3 }
  0x5c   : > { %512 = vmatpush.msrb.mxu2 %v2834_v14  ;;  %541 = vmatpush.msrb.mxu3 %v2838_v15 }
  0x5d   : > { %439 = vmatpush.msrb.mxu0 %v2850_v18  ;;  %461 = vmatpush.msra.mxu1 %v2802_v5 }
  0x5e   : > { %2380 = vmatmul.msk.f32.gmra.mxu2 %vm261_vm0, %v2376_v27  ;;  %2384 = vmatmul.msk.f32.gmra.mxu3 %vm261_vm0, %v2376_v27 }
  0x5f   : > { %2389 = vmatmul.msk.f32.vlgmr.msrb.gmra.mxu0 %vm261_vm0, %v2924_v28  ;;  %462 = vmatpush.msra.mxu1 %v2810_v7 }
  0x60   : > { %2370 = vmatmul.msk.f32.gmra.mxu1 %vm261_vm0, %v258_v23  ;;  %513 = vmatpush.msrb.mxu2 %v2844_v16 }
  0x61   : > { %542 = vmatpush.msrb.mxu3 %v2846_v17  ;;  %463 = vmatpush.msra.mxu1 %v2818_v9 }
  0x62   : > { %514 = vmatpush.msrb.mxu2 %v2850_v18  ;;  %580 = vmatpush.msra.mxu0 %v2786_v0 }
  0x63   : > { %543 = vmatpush.msrb.mxu3 %v2854_v19  ;;  %464 = vmatpush.msra.mxu1 %v2824_v11 }
  0x64   : > { %581 = vmatpush.msra.mxu0 %v2790_v2  ;;  %655 = vmatpush.msra.mxu2 %v2786_v0 }
  0x65   : > { %465 = vmatpush.msra.mxu1 %v2830_v13  ;;  %684 = vmatpush.msra.mxu3 %v2788_v1 }
  0x66   : > { %2401 = vmatmul.msk.f32.vlgmr.msrb.gmra.mxu2 %vm261_vm0, %v2397_v29  ;;  %2405 = vmatmul.msk.f32.vlgmr.msrb.gmra.mxu3 %vm261_vm0, %v2397_v29 }
  0x67   : > { %2390 = vmatmul.msk.f32.gmra.mxu0 %vm261_vm0, %v2386_v30  ;;  %466 = vmatpush.msra.mxu1 %v2838_v15 }
  0x68   : > { %2371 = vmatmul.msk.f32.gmra.mxu1 %vm261_vm0, %v259_v25  ;;  %582 = vmatpush.msra.mxu0 %v2798_v4 }
  0x69   : > { %467 = vmatpush.msra.mxu1 %v2846_v17  ;;  %656 = vmatpush.msra.mxu2 %v2790_v2 }
  0x6a   : > { %583 = vmatpush.msra.mxu0 %v2806_v6  ;;  %685 = vmatpush.msra.mxu3 %v2794_v3 }
  0x6b   : > { %468 = vmatpush.msra.mxu1 %v2854_v19  ;;  %657 = vmatpush.msra.mxu2 %v2798_v4 }
  0x6c   : > { %584 = vmatpush.msra.mxu0 %v2814_v8  ;;  %686 = vmatpush.msra.mxu3 %v2802_v5 }
  0x6d   : > { %658 = vmatpush.msra.mxu2 %v2806_v6  ;;  %609 = vmatpush.msrb.mxu1 %v2788_v1 }
  0x6e   : > { %2402 = vmatmul.msk.f32.gmra.mxu2 %vm261_vm0, %v2398_v31  ;;  %2406 = vmatmul.msk.f32.gmra.mxu3 %vm261_vm0, %v2398_v31 }
  0x6f   : > { %2391 = vmatmul.msk.f32.gmra.mxu0 %vm261_vm0, %v2387_v32  ;;  %687 = vmatpush.msra.mxu3 %v2810_v7 }
  0x70   : > { %2372 = vmatmul.msk.f32.gmra.mxu1 %vm261_vm0, %v2867_v22  ;;  %585 = vmatpush.msra.mxu0 %v2822_v10 }
  0x71   : > { %659 = vmatpush.msra.mxu2 %v2814_v8  ;;  %688 = vmatpush.msra.mxu3 %v2818_v9 }
  0x72   : > { %586 = vmatpush.msra.mxu0 %v2826_v12  ;;  %610 = vmatpush.msrb.mxu1 %v2794_v3 }
  0x73   : > { %660 = vmatpush.msra.mxu2 %v2822_v10  ;;  %689 = vmatpush.msra.mxu3 %v2824_v11 }
  0x74   : > { %587 = vmatpush.msra.mxu0 %v2834_v14  ;;  %611 = vmatpush.msrb.mxu1 %v2802_v5 }
  0x75   : > { %661 = vmatpush.msra.mxu2 %v2826_v12  ;;  %690 = vmatpush.msra.mxu3 %v2830_v13 }
  0x76   : > { %2403 = vmatmul.msk.f32.gmra.mxu2 %vm261_vm0, %v2399_v33  ;;  %2407 = vmatmul.msk.f32.gmra.mxu3 %vm261_vm0, %v2399_v33 }
  0x77   : > { %2392 = vmatmul.msk.f32.gmra.mxu0 %vm261_vm0, %v2388_v34  ;;  %662 = vmatpush.msra.mxu2 %v2834_v14 }
  0x78   : > { %2393 = vmatmul.msk.f32.vlgmr.msra.gmra.mxu1 %vm261_vm0, %v2924_v28  ;;  %588 = vmatpush.msra.mxu0 %v2844_v16 }
  0x79   : > { %691 = vmatpush.msra.mxu3 %v2838_v15  ;;  %663 = vmatpush.msra.mxu2 %v2844_v16 }
  0x7a   : > { %589 = vmatpush.msra.mxu0 %v2850_v18  ;;  %612 = vmatpush.msrb.mxu1 %v2810_v7 }
  0x7b   : > { %692 = vmatpush.msra.mxu3 %v2846_v17  ;;  %664 = vmatpush.msra.mxu2 %v2850_v18 }
  0x7c   : > { %613 = vmatpush.msrb.mxu1 %v2818_v9 }
  0x7d   : > { %693 = vmatpush.msra.mxu3 %v2854_v19 }
  0x7e   : > { %2404 = vmatmul.msk.f32.gmra.mxu2 %vm261_vm0, %v2400_v35  ;;  %2408 = vmatmul.msk.f32.gmra.mxu3 %vm261_vm0, %v2400_v35 }
  0x7f   : > { %2413 = vmatmul.msk.f32.vlgmr.msra.gmra.mxu0 %vm261_vm0, %v2409_v36  ;;  %614 = vmatpush.msrb.mxu1 %v2824_v11 }
  0x80   : > { %2394 = vmatmul.msk.f32.gmra.mxu1 %vm261_vm0, %v2386_v30 }
  0x81   : > { %615 = vmatpush.msrb.mxu1 %v2830_v13 }
  0x83   : > { %616 = vmatpush.msrb.mxu1 %v2838_v15 }
  0x85   : > { %617 = vmatpush.msrb.mxu1 %v2846_v17 }
  0x86   : > { %2425 = vmatmul.msk.f32.vlgmr.msra.gmra.mxu2 %vm261_vm0, %v2421_v37  ;;  %2429 = vmatmul.msk.f32.vlgmr.msra.gmra.mxu3 %vm261_vm0, %v2421_v37 }
  0x87   : > { %2414 = vmatmul.msk.f32.gmra.mxu0 %vm261_vm0, %v2410_v38  ;;  %618 = vmatpush.msrb.mxu1 %v2854_v19 }
  0x88   : > { %2395 = vmatmul.msk.f32.gmra.mxu1 %vm261_vm0, %v2387_v32 }
  0x8e   : > { %2426 = vmatmul.msk.f32.gmra.mxu2 %vm261_vm0, %v2422_v39  ;;  %2430 = vmatmul.msk.f32.gmra.mxu3 %vm261_vm0, %v2422_v39 }
  0x8f   : > { %2415 = vmatmul.msk.f32.gmra.mxu0 %vm261_vm0, %v2411_v40 }
  0x90   : > { %2396 = vmatmul.msk.f32.gmra.mxu1 %vm261_vm0, %v2388_v34 }
  0x96   : > { %2427 = vmatmul.msk.f32.gmra.mxu2 %vm261_vm0, %v2423_v41  ;;  %2431 = vmatmul.msk.f32.gmra.mxu3 %vm261_vm0, %v2423_v41 }
  0x97   : > { %2416 = vmatmul.msk.f32.gmra.mxu0 %vm261_vm0, %v2412_v42 }
  0x98   : > { %2417 = vmatmul.msk.f32.vlgmr.msrb.gmra.mxu1 %vm261_vm0, %v2409_v36 }
  0x9e   : > { %2428 = vmatmul.msk.f32.gmra.mxu2 %vm261_vm0, %v2424_v43  ;;  %2432 = vmatmul.msk.f32.gmra.mxu3 %vm261_vm0, %v2424_v43 }
  0xa0   : > { %2418 = vmatmul.msk.f32.gmra.mxu1 %vm261_vm0, %v2410_v38 }
  0xa8   : > { %2419 = vmatmul.msk.f32.gmra.mxu1 %vm261_vm0, %v2411_v40 }
  0xb0   : > { %2420 = vmatmul.msk.f32.gmra.mxu1 %vm261_vm0, %v2412_v42 }
  0xc2   : > { %v3036_v44 = vpop.f32.mrf.mxu0 }
  0xc5   : > { %v3048_v50 = vpop.f32.mrf.mxu1 }
  0xc9   : > { %v3038_v45 = vpop.f32.mrf.mxu2  ;;  %v3040_v46 = vpop.f32.mrf.mxu3 }
  0xca   : > { %v3042_v47 = vpop.f32.mrf.mxu0  ;;  %v945_v48 = vmul.f32 %v3040_v46, %v3038_v45  ;;  %v741_v49 = vmul.f32 %v3040_v46, %v3036_v44 }
  0xcc   : > { %949 = vadd.xlane.f32.xlu1 %v945_v48  ;;  %745 = vadd.xlane.f32.xlu0 %v741_v49 }
  0xd1   : > { %v3050_v51 = vpop.f32.mrf.mxu2  ;;  %v3052_v52 = vpop.f32.mrf.mxu3 }
  0xd2   : > { %v3054_v53 = vpop.f32.mrf.mxu0  ;;  %v946_v54 = vmul.f32 %v3052_v52, %v3050_v51  ;;  %v742_v5 = vmul.f32 %v3052_v52, %v3042_v47 }
  0xd4   : > { %951 = vadd.xlane.f32.xlu1 %v946_v54 }
  0xd5   : > { %v3058_v55 = vpop.f32.mrf.mxu1 }
  0xd6   : > { %v707_v56 = vmul.f32 %v3058_v55, %v3036_v44  ;;  %v911_v62 = vmul.f32 %v3038_v45, %v3058_v55 }
  0xd8   : > { %711 = vadd.xlane.f32.xlu0 %v707_v56 }
  0xd9   : > { %v3062_v57 = vpop.f32.mrf.mxu2  ;;  %v3064_v58 = vpop.f32.mrf.mxu3 }
  0xda   : > { %5147 = vst [vmem:[#allocation11_spill] sm:$0xff] %v3064_v58  ;;  %v743_v59 = vmul.f32 %v3064_v58, %v3054_v53  ;;  %v947_v0 = vmul.f32 %v3064_v58, %v3062_v57 }
  0xdc   : > { %v3068_v60 = vpop.f32.mrf.mxu0  ;;  %749 = vadd.xlane.f32.xlu1 %v743_v59 }
  0xdd   : > { %v3070_v61 = vpop.f32.mrf.mxu1  ;;  %v1149_v8 = vmul.f32 %v3068_v60, %v3040_v46  ;;  %v1115_v23 = vmul.f32 %v3068_v60, %v3058_v55 }
  0xde   : > { %v708_v63 = vmul.f32 %v3070_v61, %v3042_v47  ;;  %v912_v11 = vmul.f32 %v3050_v51, %v3070_v61 }
  0xe0   : > { %915 = vadd.xlane.f32.xlu0 %v911_v62  ;;  %713 = vadd.xlane.f32.xlu2 %v708_v63 }
  0xe1   : > { %v3078_v1 = vpop.f32.mrf.mxu2  ;;  %v3080_v2 = vpop.f32.mrf.mxu3 }
  0xe2   : > { %v744_v6 = vmul.f32 %v3080_v2, %v3048_v50  ;;  %v948_v13 = vmul.f32 %v3080_v2, %v3078_v1 }
  0xe4   : > { %v3082_v3 = vpop.f32.mrf.mxu0  ;;  %953 = vadd.xlane.f32.xlu1 %v947_v0 }
  0xe5   : > { %v3084_v4 = vpop.f32.mrf.mxu1  ;;  %v1150_v25 = vmul.f32 %v3082_v3, %v3052_v52  ;;  %v1116_v38 = vmul.f32 %v3082_v3, %v3070_v61 }
  0xe6   : > { %v709_v17 = vmul.f32 %v3084_v4, %v3054_v53  ;;  %v913_v28 = vmul.f32 %v3062_v57, %v3084_v4 }
  0xe8   : > { %747 = vadd.xlane.f32.xlu0 %v742_v5  ;;  %751 = vadd.xlane.f32.xlu2 %v744_v6 }
  0xe9   : > { %v3090_v7 = vpop.f32.mrf.mxu2  ;;  %v3128_v24 = vpop.f32.mrf.mxu3 }
  0xea   : > { %v809_v30 = vmul.f32 %v3128_v24, %v3036_v44  ;;  %v1353_v34 = vmul.f32 %v3090_v7, %v3040_v46  ;;  %v1013_v43 = vmul.f32 %v3128_v24, %v3038_v45  ;;  %v1217_v59 = vmul.f32 %v3128_v24, %v3068_v60 }
  0xeb   : > { %v1319_v6 = vmul.f32 %v3090_v7, %v3058_v55 }
  0xec   : > { %v3094_v9 = vpop.f32.mrf.mxu0  ;;  %1153 = vadd.xlane.f32.xlu1 %v1149_v8 }
  0xed   : > { %v3096_v10 = vpop.f32.mrf.mxu1  ;;  %v1151_v0 = vmul.f32 %v3094_v9, %v3064_v58 }
  0xee   : > { %v710_v19 = vmul.f32 %v3096_v10, %v3048_v50  ;;  %v914_v33 = vmul.f32 %v3078_v1, %v3096_v10 }
  0xf0   : > { %917 = vadd.xlane.f32.xlu0 %v912_v11  ;;  %v1421_v11 = vmul.f32 %v3128_v24, %v3090_v7 }
  0xf1   : > { %v3100_v12 = vpop.f32.mrf.mxu2  ;;  %v3144_v31 = vpop.f32.mrf.mxu3 }
  0xf2   : > { %v3106_v14 = vmul.f32 %v3100_v12, %v3070_v61  ;;  %v1354_v8 = vmul.f32 %v3100_v12, %v3052_v52 }
  0xf4   : > { %v3108_v15 = vpop.f32.mrf.mxu0  ;;  %955 = vadd.xlane.f32.xlu1 %v948_v13 }
  0xf5   : > { %v3110_v16 = vpop.f32.mrf.mxu1 }
  0xf6   : > { %5148 = vst [vmem:[#allocation12_spill] sm:$0xff] %v3110_v16  ;;  %v1183_v18 = vmul.f32 %v3110_v16, %v3068_v60  ;;  %v1387_v22 = vmul.f32 %v3090_v7, %v3110_v16  ;;  %v775_v40 = vmul.f32 %v3110_v16, %v3036_v44  ;;  %v979_v54 = vmul.f32 %v3110_v16, %v3038_v45 }
  0xf8   : > { %715 = vadd.xlane.f32.xlu0 %v709_v17  ;;  %1187 = vadd.xlane.f32.xlu2 %v1183_v18  ;;  %v1152_v17 = vmul.f32 %v3108_v15, %v3080_v2 }
  0xf9   : > { %v3154_v36 = vpop.f32.mrf.mxu3  ;;  %v3204_v18 = vpop.f32.mrf.mxu2 }
  0xfa   : > { %v3162_v39 = vmul.f32 %v3154_v36, %v3094_v9 }
  0xfc   : > { %v3118_v20 = vpop.f32.mrf.mxu0  ;;  %717 = vadd.xlane.f32.xlu1 %v710_v19 }
  0xfd   : > { %v3122_v21 = vmul.f32 %v3118_v20, %v3058_v55  ;;  %v3132_v26 = vpop.f32.mrf.mxu1  ;;  %v3140_v29 = vmul.f32 %v3118_v20, %v3128_v24 }
  0xfe   : > { %v776_v27 = vmul.f32 %v3132_v26, %v3042_v47  ;;  %v980_v32 = vmul.f32 %v3132_v26, %v3050_v51  ;;  %v1184_v37 = vmul.f32 %v3132_v26, %v3082_v3  ;;  %v1388_v42 = vmul.f32 %v3100_v12, %v3132_v26 }
 0x100   : > { %1391 = vadd.xlane.f32.xlu2 %v1387_v22  ;;  %1119 = vadd.xlane.f32.xlu0 %v1115_v23  ;;  %v1117_v22 = vmul.f32 %v3094_v9, %v3084_v4 }
 0x101   : > { %v3172_v48 = vpop.f32.mrf.mxu3 }
 0x102   : > { %v3176_v49 = vmul.f32 %v3172_v48, %v3108_v15  ;;  %v812_v19 = vmul.f32 %v3172_v48, %v3048_v50 }
 0x104   : > { %1155 = vadd.xlane.f32.xlu1 %v1150_v25 }
 0x105   : > { %v3152_v35 = vpop.f32.mrf.mxu1 }
 0x106   : > { %v777_v56 = vmul.f32 %v3152_v35, %v3054_v53  ;;  %v981_v5 = vmul.f32 %v3152_v35, %v3062_v57  ;;  %v1185_v13 = vmul.f32 %v3152_v35, %v3094_v9 }
 0x108   : > { %781 = vadd.xlane.f32.xlu2 %v776_v27  ;;  %919 = vadd.xlane.f32.xlu0 %v913_v28  ;;  %v1557_v27 = vmul.f32 %v3118_v20, %v3040_v46  ;;  %v810_v28 = vmul.f32 %v3144_v31, %v3042_v47 }
 0x10c   : > { %813 = vadd.xlane.f32.xlu1 %v809_v30  ;;  %v1591_v30 = vmul.f32 %v3118_v20, %v3110_v16 }
 0x10d   : > { %v3166_v41 = vpop.f32.mrf.mxu1 }
 0x10e   : > { %5149 = vst [vmem:[#allocation13_spill] sm:$0xff] %v3166_v41 }
 0x110   : > { %985 = vadd.xlane.f32.xlu2 %v980_v32  ;;  %921 = vadd.xlane.f32.xlu0 %v914_v33  ;;  %v3220_v32 = vpop.f32.mrf.mxu2 }
 0x114   : > { %1357 = vadd.xlane.f32.xlu1 %v1353_v34  ;;  %v1356_v34 = vmul.f32 %v3220_v32, %v3080_v2 }
 0x115   : > { %v3184_v62 = vpop.f32.mrf.mxu1 }
 0x116   : > { %5150 = vst [vmem:[#allocation14_spill] sm:$0xff] %v3184_v62  ;;  %v3188_v63 = vmul.f32 %v3184_v62, %v3118_v20 }
 0x118   : > { %1189 = vadd.xlane.f32.xlu2 %v1184_v37  ;;  %1121 = vadd.xlane.f32.xlu0 %v1116_v38  ;;  %v1014_v38 = vmul.f32 %v3144_v31, %v3050_v51 }
 0x11c   : > { %779 = vadd.xlane.f32.xlu1 %v775_v40  ;;  %v778_v40 = vmul.f32 %v3166_v41, %v3048_v50 }
 0x120   : > { %1393 = vadd.xlane.f32.xlu2 %v1388_v42  ;;  %1017 = vadd.xlane.f32.xlu0 %v1013_v43  ;;  %v3232_v42 = vpop.f32.mrf.mxu3 }
 0x124   : > { %983 = vadd.xlane.f32.xlu1 %v979_v54  ;;  %v877_v54 = vmul.f32 %v3232_v42, %v3036_v44 }
 0x128   : > { %783 = vadd.xlane.f32.xlu2 %v777_v56  ;;  %1221 = vadd.xlane.f32.xlu0 %v1217_v59  ;;  %v1218_v59 = vmul.f32 %v3144_v31, %v3082_v3 }
 0x12c   : > { %1157 = vadd.xlane.f32.xlu1 %v1151_v0  ;;  %v982_v0 = vmul.f32 %v3166_v41, %v3078_v1 }
 0x130   : > { %987 = vadd.xlane.f32.xlu2 %v981_v5  ;;  %1323 = vadd.xlane.f32.xlu0 %v1319_v6 }
 0x134   : > { %1359 = vadd.xlane.f32.xlu1 %v1354_v8  ;;  %v1047_v8 = vmul.f32 %v3184_v62, %v3038_v45 }
 0x138   : > { %1425 = vadd.xlane.f32.xlu0 %v1421_v11  ;;  %1191 = vadd.xlane.f32.xlu2 %v1185_v13  ;;  %v1186_v13 = vmul.f32 %v3166_v41, %v3108_v15 }
 0x13c   : > { %1159 = vadd.xlane.f32.xlu1 %v1152_v17 }
 0x13f   : > { %v3210_v23 = vpop.xlane.xlu1 %949  ;;  %v3212_v25 = vpop.xlane.xlu0 %745 }
 0x140   : > { %5151 = vst [vmem:[#allocation15_spill] sm:$0xff] %v3210_v23  ;;  %819 = vadd.xlane.f32.xlu2 %v812_v19  ;;  %1123 = vadd.xlane.f32.xlu0 %v1117_v22  ;;  %v1251_v19 = vmul.f32 %v3184_v62, %v3068_v60 }
 0x144   : > { %1561 = vadd.xlane.f32.xlu1 %v1557_v27 }
 0x147   : > { %v3222_v33 = vpop.xlane.xlu1 %951 }
 0x148   : > { %5152 = vst [vmem:[#allocation16_spill] sm:$0xff] %v3222_v33  ;;  %815 = vadd.xlane.f32.xlu0 %v810_v28  ;;  %1595 = vadd.xlane.f32.xlu2 %v1591_v30  ;;  %v1422_v28 = vmul.f32 %v3144_v31, %v3100_v12  ;;  %v1390_v30 = vmul.f32 %v3220_v32, %v3166_v41 }
 0x14b   : > { %v3226_v37 = vpop.xlane.xlu0 %711 }
 0x14c   : > { %1363 = vadd.xlane.f32.xlu1 %v1356_v34 }
 0x14f   : > { %v3234_v43 = vpop.xlane.xlu1 %749 }
 0x150   : > { %1019 = vadd.xlane.f32.xlu0 %v1014_v38  ;;  %785 = vadd.xlane.f32.xlu2 %v778_v40 }
 0x153   : > { %v3238_v56 = vpop.xlane.xlu0 %915  ;;  %v3246_v6 = vpop.xlane.xlu2 %713 }
 0x154   : > { %5153 = vst [vmem:[#allocation17_spill] sm:$0xff] %v3238_v56  ;;  %881 = vadd.xlane.f32.xlu1 %v877_v54  ;;  %v1118_v54 = vmul.f32 %v3108_v15, %v3096_v10 }
 0x157   : > { %v3244_v5 = vpop.xlane.xlu1 %953 }
 0x158   : > { %5154 = vst [vmem:[#allocation18_spill] sm:$0xff] %v3244_v5  ;;  %1223 = vadd.xlane.f32.xlu0 %v1218_v59  ;;  %989 = vadd.xlane.f32.xlu2 %v982_v0  ;;  %v1081_v59 = vmul.f32 %v3232_v42, %v3038_v45 }
 0x15b   : > { %v3250_v11 = vpop.xlane.xlu0 %747  ;;  %v3259_v22 = vpop.xlane.xlu2 %751 }
 0x15c   : > { %1051 = vadd.xlane.f32.xlu1 %v1047_v8  ;;  %v1355_v8 = vmul.f32 %v3204_v18, %v3064_v58 }
 0x15f   : > { %v3254_v17 = vpop.xlane.xlu1 %1153 }
 0x160   : > { %5155 = vst [vmem:[#allocation19_spill] sm:$0xff] %v3254_v17  ;;  %1325 = vadd.xlane.f32.xlu0 %v3106_v14  ;;  %1193 = vadd.xlane.f32.xlu2 %v1186_v13  ;;  %v1455_v14 = vmul.f32 %v3184_v62, %v3090_v7 }
 0x163   : > { %v3261_v27 = vpop.xlane.xlu0 %917 }
 0x164   : > { %5156 = vst [vmem:[#allocation20_spill] sm:$0xff] %v3261_v27  ;;  %1255 = vadd.xlane.f32.xlu1 %v1251_v19 }
 0x167   : > { %v3267_v34 = vpop.xlane.xlu1 %955 }
 0x168   : > { %5157 = vst [vmem:[#allocation21_spill] sm:$0xff] %v3267_v34  ;;  %1427 = vadd.xlane.f32.xlu0 %v1422_v28  ;;  %1397 = vadd.xlane.f32.xlu2 %v1390_v30  ;;  %v811_v28 = vmul.f32 %v3154_v36, %v3054_v53  ;;  %v1285_v30 = vmul.f32 %v3232_v42, %v3068_v60 }
 0x169   : > { %v1489_v60 = vmul.f32 %v3232_v42, %v3090_v7  ;;  %v3321_v7 = vld [vmem:[%s5039_s2] ss:$0 sm:$0xff]  ;;  %v753_v34 = vadd.f32 %v3212_v25, %v3226_v37 }
 0x16b   : > { %v3271_v38 = vpop.xlane.xlu0 %715  ;;  %v3273_v40 = vpop.xlane.xlu2 %1187 }
 0x16c   : > { %5158 = vst [vmem:[#allocation22_spill] sm:$0xff] %v3273_v40  ;;  %1459 = vadd.xlane.f32.xlu1 %v1455_v14  ;;  %v3291_v14 = vpop.f32.mrf.mxu1 }
 0x16f   : > { %v3279_v0 = vpop.xlane.xlu1 %717 }
 0x170   : > { %1125 = vadd.xlane.f32.xlu0 %v1118_v54  ;;  %1085 = vadd.xlane.f32.xlu2 %v1081_v59  ;;  %v1048_v54 = vmul.f32 %v3291_v14, %v3050_v51 }
 0x173   : > { %v3283_v13 = vpop.xlane.xlu2 %1391  ;;  %v3285_v19 = vpop.xlane.xlu0 %1119 }
 0x174   : > { %5159 = vst [vmem:[#allocation23_spill] sm:$0xff] %v3283_v13  ;;  %1361 = vadd.xlane.f32.xlu1 %v1355_v8  ;;  %v1015_v8 = vmul.f32 %v3154_v36, %v3062_v57  ;;  %v3351_v17 = vpop.f32.mrf.mxu1 }
 0x175   : > { %5160 = vst [vmem:[#allocation24_spill] sm:$0xff] %v3285_v19  ;;  %v845_v23 = vmul.f32 %v3351_v17, %v3054_v53 }
 0x177   : > { %v3293_v45 = vpop.xlane.xlu1 %1155 }
 0x178   : > { %5161 = vst [vmem:[#allocation25_spill] sm:$0xff] %v3293_v45  ;;  %817 = vadd.xlane.f32.xlu0 %v811_v28  ;;  %1289 = vadd.xlane.f32.xlu2 %v1285_v30  ;;  %v1252_v28 = vmul.f32 %v3291_v14, %v3082_v3 }
 0x17b   : > { %v3297_v59 = vpop.xlane.xlu2 %781  ;;  %v3299_v13 = vpop.xlane.xlu0 %919 }
 0x17c   : > { %5162 = vst [vmem:[#allocation26_spill] sm:$0xff] %v3299_v13  ;;  %1053 = vadd.xlane.f32.xlu1 %v1048_v54  ;;  %v843_v54 = vmul.f32 %v3184_v62, %v3036_v44  ;;  %v3316_v13 = vld [vmem:[%s5039_s2 + $0x1] ss:$0 sm:$0xff]  ;;  %v1456_v44 = vmul.f32 %v3291_v14, %v3100_v12 }
 0x17f   : > { %v814_v19 = vpop.xlane.xlu1 %813 }
 0x180   : > { %1021 = vadd.xlane.f32.xlu0 %v1015_v8  ;;  %1493 = vadd.xlane.f32.xlu2 %v1489_v60  ;;  %v3326_v60 = vpop.f32.mrf.mxu3  ;;  %v825_v58 = vmul.f32 %v814_v19, %v814_v19 }
 0x181   : > { %v878_v27 = vmul.f32 %v3326_v60, %v3042_v47 }
 0x183   : > { %v3307_v30 = vpop.xlane.xlu2 %985  ;;  %v3309_v45 = vpop.xlane.xlu0 %921 }
 0x184   : > { %5163 = vst [vmem:[#allocation27_spill] sm:$0xff] %v3307_v30  ;;  %1257 = vadd.xlane.f32.xlu1 %v1252_v28  ;;  %v757_v28 = vmul.f32 %v3212_v25, %v3212_v25  ;;  %v723_v30 = vmul.f32 %v3226_v37, %v3226_v37 }
 0x185   : > { %5164 = vst [vmem:[#allocation28_spill] sm:$0xff] %v3309_v45  ;;  %v767_v45 = vmul.f32 %v3316_v13, %v3212_v25 }
 0x187   : > { %v3323_v8 = vpop.xlane.xlu1 %1357 }
 0x188   : > { %5165 = vst [vmem:[#allocation29_spill] sm:$0xff] %v3323_v8  ;;  %1225 = vadd.xlane.f32.xlu0 %v3162_v39  ;;  %847 = vadd.xlane.f32.xlu2 %v843_v54  ;;  %v733_v8 = vmul.f32 %v3321_v7, %v3226_v37  ;;  %v3345_v54 = vld [vmem:[%s5039_s2 + $0x2] ss:$0 sm:$0xff] }
 0x18b   : > { %v3338_v40 = vpop.xlane.xlu2 %1189  ;;  %v3340_v39 = vpop.xlane.xlu0 %1121 }
 0x18c   : > { %5166 = vst [vmem:[#allocation30_spill] sm:$0xff] %v3338_v40  ;;  %1461 = vadd.xlane.f32.xlu1 %v1456_v44  ;;  %v3356_v40 = vld [vmem:[%s5039_s2 + $0x3] ss:$0 sm:$0xff]  ;;  %v771_v44 = vadd.f32 %v767_v45, %v733_v8 }
 0x18d   : > { %5167 = vst [vmem:[#allocation31_spill] sm:$0xff] %v3340_v39  ;;  %v761_v39 = vadd.f32 %v757_v28, %v723_v30  ;;  %v835_v16 = vmul.f32 %v3356_v40, %v814_v19 }
 0x18f   : > { %v780_v5 = vpop.xlane.xlu1 %779 }
 0x190   : > { %v787_v62 = vadd.f32 %v780_v5, %v753_v34  ;;  %v791_v56 = vmul.f32 %v780_v5, %v780_v5  ;;  %v801_v33 = vmul.f32 %v3345_v54, %v780_v5  ;;  %883 = vadd.xlane.f32.xlu2 %v878_v27  ;;  %1527 = vadd.xlane.f32.xlu0 %v3122_v21 }
 0x191   : > { %v1082_v21 = vmul.f32 %v3326_v60, %v3050_v51  ;;  %v735_v27 = vmul.f32 %v3321_v7, %v3271_v38  ;;  %v755_v51 = vadd.f32 %v3234_v43, %v3271_v38 }
 0x192   : > { %v795_v25 = vadd.f32 %v791_v56, %v761_v39  ;;  %v805_v37 = vadd.f32 %v801_v33, %v771_v44  ;;  %v3362_v41 = vadd.f32 %v814_v19, %v787_v62  ;;  %v1016_v33 = vmul.f32 %v3172_v48, %v3078_v1 }
 0x193   : > { %v3365_v30 = vpop.xlane.xlu2 %1393  ;;  %v3367_v45 = vpop.xlane.xlu0 %1017  ;;  %v725_v62 = vmul.f32 %v3271_v38, %v3271_v38 }
 0x194   : > { %5168 = vst [vmem:[#allocation32_spill] sm:$0xff] %v3365_v30  ;;  %851 = vadd.xlane.f32.xlu1 %v845_v23  ;;  %v3369_v34 = vadd.f32 %v825_v58, %v795_v25  ;;  %v3371_v5 = vadd.f32 %v835_v16, %v805_v37  ;;  %v759_v58 = vmul.f32 %v3234_v43, %v3234_v43 }
 0x195   : > { %5169 = vst [vmem:[#allocation33_spill] sm:$0xff] %v3367_v45  ;;  %v769_v16 = vmul.f32 %v3316_v13, %v3234_v43  ;;  %v1049_v23 = vmul.f32 %v3351_v17, %v3062_v57  ;;  %v1286_v43 = vmul.f32 %v3326_v60, %v3082_v3  ;;  %v3415_v3 = vpop.f32.mrf.mxu1 }
 0x196   : > { %v763_v19 = vadd.f32 %v759_v58, %v725_v62  ;;  %v1253_v62 = vmul.f32 %v3351_v17, %v3094_v9 }
 0x197   : > { %v3379_v56 = vpop.xlane.xlu1 %983  ;;  %v773_v39 = vadd.f32 %v769_v16, %v735_v27  ;;  %v1490_v16 = vmul.f32 %v3326_v60, %v3100_v12  ;;  %v1389_v12 = vmul.f32 %v3204_v18, %v3152_v35 }
 0x198   : > { %1087 = vadd.xlane.f32.xlu2 %v1082_v21  ;;  %1023 = vadd.xlane.f32.xlu0 %v1016_v33 }
 0x19b   : > { %v784_v8 = vpop.xlane.xlu2 %783  ;;  %v3391_v28 = vpop.xlane.xlu0 %1221 }
 0x19c   : > { %5170 = vst [vmem:[#allocation34_spill] sm:$0xff] %v3391_v28  ;;  %v3393_v44 = vadd.f32 %v784_v8, %v755_v51  ;;  %v793_v25 = vmul.f32 %v784_v8, %v784_v8  ;;  %v803_v37 = vmul.f32 %v3345_v54, %v784_v8  ;;  %1055 = vadd.xlane.f32.xlu1 %v1049_v23 }
 0x19d   : > { %v1322_v51 = vmul.f32 %v3220_v32, %v3096_v10 }
 0x19e   : > { %v3396_v21 = vadd.f32 %v793_v25, %v763_v19  ;;  %v3398_v33 = vadd.f32 %v803_v37, %v773_v39  ;;  %v1321_v39 = vmul.f32 %v3204_v18, %v3084_v4  ;;  %v3431_v37 = vpop.f32.mrf.mxu3 }
 0x19f   : > { %v3402_v38 = vpop.xlane.xlu1 %1157  ;;  %5178 = vst [vmem:[#allocation42_spill] sm:$0xff] %v3431_v37 }
 0x1a0   : > { %5171 = vst [vmem:[#allocation35_spill] sm:$0xff] %v3402_v38  ;;  %1291 = vadd.xlane.f32.xlu2 %v1286_v43  ;;  %1227 = vadd.xlane.f32.xlu0 %v3176_v49  ;;  %v846_v49 = vmul.f32 %v3415_v3, %v3048_v50  ;;  %v1050_v43 = vmul.f32 %v3415_v3, %v3078_v1 }
 0x1a3   : > { %v3407_v27 = vpop.xlane.xlu2 %987  ;;  %v3409_v58 = vpop.xlane.xlu0 %1323 }
 0x1a4   : > { %5172 = vst [vmem:[#allocation36_spill] sm:$0xff] %v3407_v27  ;;  %1259 = vadd.xlane.f32.xlu1 %v1253_v62  ;;  %v1254_v27 = vmul.f32 %v3415_v3, %v3108_v15 }
 0x1a5   : > { %5173 = vst [vmem:[#allocation37_spill] sm:$0xff] %v3409_v58 }
 0x1a7   : > { %v3417_v23 = vpop.xlane.xlu1 %1359 }
 0x1a8   : > { %5174 = vst [vmem:[#allocation38_spill] sm:$0xff] %v3417_v23  ;;  %1495 = vadd.xlane.f32.xlu2 %v1490_v16  ;;  %1329 = vadd.xlane.f32.xlu0 %v1322_v51  ;;  %v758_v51 = vmul.f32 %v3250_v11, %v3250_v11 }
 0x1ab   : > { %v3421_v19 = vpop.xlane.xlu0 %1425  ;;  %v3423_v8 = vpop.xlane.xlu2 %1191 }
 0x1ac   : > { %5175 = vst [vmem:[#allocation39_spill] sm:$0xff] %v3421_v19  ;;  %853 = vadd.xlane.f32.xlu1 %v846_v49  ;;  %v768_v49 = vmul.f32 %v3316_v13, %v3250_v11  ;;  %v754_v19 = vadd.f32 %v3250_v11, %v3246_v6 }
 0x1ad   : > { %5176 = vst [vmem:[#allocation40_spill] sm:$0xff] %v3423_v8  ;;  %v792_v8 = vmul.f32 %v3297_v59, %v3297_v59 }
 0x1ae   : > { %v788_v58 = vadd.f32 %v3297_v59, %v754_v19  ;;  %v1424_v19 = vmul.f32 %v3172_v48, %v3220_v32 }
 0x1af   : > { %v3429_v25 = vpop.xlane.xlu1 %1159 }
 0x1b0   : > { %5177 = vst [vmem:[#allocation41_spill] sm:$0xff] %v3429_v25  ;;  %1395 = vadd.xlane.f32.xlu2 %v1389_v12  ;;  %1327 = vadd.xlane.f32.xlu0 %v1321_v39  ;;  %v879_v25 = vmul.f32 %v3431_v37, %v3054_v53  ;;  %v844_v12 = vmul.f32 %v3291_v14, %v3042_v47 }
 0x1b1   : > { %v724_v39 = vmul.f32 %v3246_v6, %v3246_v6  ;;  %v802_v53 = vmul.f32 %v3345_v54, %v3297_v59  ;;  %v1083_v59 = vmul.f32 %v3431_v37, %v3062_v57  ;;  %v1458_v57 = vmul.f32 %v3415_v3, %v3220_v32 }
 0x1b3   : > { %v820_v62 = vpop.xlane.xlu2 %819  ;;  %v3435_v16 = vpop.xlane.xlu0 %1123  ;;  %v762_v47 = vadd.f32 %v758_v51, %v724_v39 }
 0x1b4   : > { %5179 = vst [vmem:[#allocation43_spill] sm:$0xff] %v3435_v16  ;;  %1057 = vadd.xlane.f32.xlu1 %v1050_v43  ;;  %v734_v43 = vmul.f32 %v3321_v7, %v3246_v6 }
 0x1b5   : > { %v796_v38 = vadd.f32 %v792_v8, %v762_v47  ;;  %v3490_v47 = vpop.f32.mrf.mxu0 }
 0x1b6   : > { %v772_v23 = vadd.f32 %v768_v49, %v734_v43 }
 0x1b7   : > { %v3449_v16 = vpop.xlane.xlu1 %1561 }
 0x1b8   : > { %5180 = vst [vmem:[#allocation44_spill] sm:$0xff] %v3449_v16  ;;  %885 = vadd.xlane.f32.xlu2 %v879_v25  ;;  %849 = vadd.xlane.f32.xlu0 %v844_v12  ;;  %v806_v30 = vadd.f32 %v802_v53, %v772_v23  ;;  %v770_v23 = vmul.f32 %v3316_v13, %v3259_v22 }
 0x1bb   : > { %v816_v16 = vpop.xlane.xlu0 %815  ;;  %v3460_v28 = vpop.xlane.xlu2 %1595 }
 0x1bc   : > { %5181 = vst [vmem:[#allocation45_spill] sm:$0xff] %v3460_v28  ;;  %v3462_v45 = vadd.f32 %v816_v16, %v788_v58  ;;  %v826_v6 = vmul.f32 %v816_v16, %v816_v16  ;;  %v836_v11 = vmul.f32 %v3356_v40, %v816_v16  ;;  %1261 = vadd.xlane.f32.xlu1 %v1254_v27 }
 0x1bd   : > { %v726_v58 = vmul.f32 %v3279_v0, %v3279_v0  ;;  %v736_v27 = vmul.f32 %v3321_v7, %v3279_v0 }
 0x1be   : > { %5182 = vst [vmem:[#allocation46_spill] sm:$0xff] %v3462_v45  ;;  %v3465_v25 = vadd.f32 %v826_v6, %v796_v38  ;;  %v3467_v51 = vadd.f32 %v836_v11, %v806_v30  ;;  %v760_v30 = vmul.f32 %v3259_v22, %v3259_v22  ;;  %v756_v38 = vadd.f32 %v3259_v22, %v3279_v0 }
 0x1bf   : > { %v3473_v8 = vpop.xlane.xlu1 %1363  ;;  %v774_v7 = vadd.f32 %v770_v23, %v736_v27  ;;  %v828_v6 = vmul.f32 %v820_v62, %v820_v62  ;;  %v1287_v11 = vmul.f32 %v3431_v37, %v3094_v9  ;;  %v838_v22 = vmul.f32 %v3356_v40, %v820_v62  ;;  %v3504_v27 = vpop.f32.mrf.mxu3 }
 0x1c0   : > { %5183 = vst [vmem:[#allocation47_spill] sm:$0xff] %v3465_v25  ;;  %1089 = vadd.xlane.f32.xlu2 %v1083_v59  ;;  %1431 = vadd.xlane.f32.xlu0 %v1424_v19  ;;  %v764_v12 = vadd.f32 %v760_v30, %v726_v58  ;;  %v880_v9 = vmul.f32 %v3504_v27, %v3048_v50 }
 0x1c1   : > { %5184 = vst [vmem:[#allocation48_spill] sm:$0xff] %v3467_v51  ;;  %v1558_v23 = vmul.f32 %v3490_v47, %v3052_v52  ;;  %v1084_v50 = vmul.f32 %v3504_v27, %v3078_v1  ;;  %v1288_v1 = vmul.f32 %v3504_v27, %v3108_v15  ;;  %v1492_v15 = vmul.f32 %v3504_v27, %v3220_v32 }
 0x1c2   : > { %5185 = vst [vmem:[#allocation49_spill] sm:$0xff] %v3473_v8 }
 0x1c3   : > { %v3487_v16 = vpop.xlane.xlu0 %1019  ;;  %v786_v49 = vpop.xlane.xlu2 %785 }
 0x1c4   : > { %5186 = vst [vmem:[#allocation50_spill] sm:$0xff] %v3487_v16  ;;  %v790_v39 = vadd.f32 %v786_v49, %v756_v38  ;;  %v794_v43 = vmul.f32 %v786_v49, %v786_v49  ;;  %1465 = vadd.xlane.f32.xlu1 %v1458_v57  ;;  %v804_v53 = vmul.f32 %v3345_v54, %v786_v49 }
 0x1c5   : > { %v3790_v16 = vmul.f32 %v3326_v60, %v3490_v47 }
 0x1c6   : > { %v798_v0 = vadd.f32 %v794_v43, %v764_v12  ;;  %v3494_v59 = vadd.f32 %v820_v62, %v790_v39  ;;  %v808_v13 = vadd.f32 %v804_v53, %v774_v7  ;;  %v1524_v62 = vmul.f32 %v3490_v47, %v3070_v61 }
 0x1c7   : > { %v3497_v19 = vpop.xlane.xlu1 %881  ;;  %v1423_v39 = vmul.f32 %v3154_v36, %v3204_v18  ;;  %v1457_v53 = vmul.f32 %v3351_v17, %v3204_v18 }
 0x1c8   : > { %5187 = vst [vmem:[#allocation51_spill] sm:$0xff] %v3494_v59  ;;  %1293 = vadd.xlane.f32.xlu2 %v1287_v11  ;;  %1629 = vadd.xlane.f32.xlu0 %v3140_v29  ;;  %v3500_v58 = vadd.f32 %v828_v6, %v798_v0  ;;  %v3502_v54 = vadd.f32 %v838_v22, %v808_v13  ;;  %v3517_v29 = vpop.f32.mrf.mxu0 }
 0x1c9   : > { %v3622_v45 = vmul.f32 %v3517_v29, %v3154_v36 }
 0x1ca   : > { %5188 = vst [vmem:[#allocation52_spill] sm:$0xff] %v3500_v58 }
 0x1cb   : > { %5189 = vst [vmem:[#allocation53_spill] sm:$0xff] %v3502_v54  ;;  %v3506_v30 = vpop.xlane.xlu0 %1223  ;;  %v3508_v38 = vpop.xlane.xlu2 %989  ;;  %v5225_v54 = vld [vmem:[#allocation18_spill] sm:$0xff] }
 0x1cc   : > { %5190 = vst [vmem:[#allocation54_spill] sm:$0xff] %v3506_v30  ;;  %1663 = vadd.xlane.f32.xlu1 %v3188_v63  ;;  %v3525_v63 = vpop.f32.mrf.mxu2  ;;  %v3720_v58 = vmul.f32 %v5225_v54, %v5225_v54 }
 0x1cd   : > { %5191 = vst [vmem:[#allocation55_spill] sm:$0xff] %v3508_v38 }
 0x1cf   : > { %v3515_v57 = vpop.xlane.xlu1 %1051 }
 0x1d0   : > { %887 = vadd.xlane.f32.xlu2 %v880_v9  ;;  %1529 = vadd.xlane.f32.xlu0 %v1524_v62  ;;  %v3533_v7 = vpop.f32.mrf.mxu0 }
 0x1d1   : > { %v1526_v11 = vmul.f32 %v3533_v7, %v3096_v10  ;;  %v1560_v9 = vmul.f32 %v3533_v7, %v3080_v2 }
 0x1d3   : > { %v3521_v49 = vpop.xlane.xlu0 %1325  ;;  %v3523_v12 = vpop.xlane.xlu2 %1193 }
 0x1d4   : > { %5192 = vst [vmem:[#allocation56_spill] sm:$0xff] %v3521_v49  ;;  %1563 = vadd.xlane.f32.xlu1 %v1558_v23  ;;  %v3547_v13 = vpop.f32.mrf.mxu2 }
 0x1d5   : > { %5193 = vst [vmem:[#allocation57_spill] sm:$0xff] %v3523_v12  ;;  %v3607_v25 = vmul.f32 %v3547_v13, %v3070_v61  ;;  %v3626_v61 = vmul.f32 %v3547_v13, %v3132_v26 }
 0x1d7   : > { %v3531_v43 = vpop.xlane.xlu1 %1255 }
 0x1d8   : > { %1091 = vadd.xlane.f32.xlu2 %v1084_v50  ;;  %1429 = vadd.xlane.f32.xlu0 %v1423_v39  ;;  %v1727_v50 = vmul.f32 %v3525_v63, %v3058_v55 }
 0x1db   : > { %v3537_v6 = vpop.xlane.xlu0 %1427  ;;  %v3539_v0 = vpop.xlane.xlu2 %1397 }
 0x1dc   : > { %5194 = vst [vmem:[#allocation58_spill] sm:$0xff] %v3537_v6  ;;  %1463 = vadd.xlane.f32.xlu1 %v1457_v53  ;;  %v3561_v53 = vpop.f32.mrf.mxu2  ;;  %v5235_v6 = vld [vmem:[#allocation21_spill] sm:$0xff] }
 0x1dd   : > { %5195 = vst [vmem:[#allocation59_spill] sm:$0xff] %v3539_v0 }
 0x1de   : > { %5199 = vst [vmem:[#allocation63_spill] sm:$0xff] %v3561_v53 }
 0x1df   : > { %v3545_v22 = vpop.xlane.xlu1 %1459 }
 0x1e0   : > { %5196 = vst [vmem:[#allocation60_spill] sm:$0xff] %v3545_v22  ;;  %1295 = vadd.xlane.f32.xlu2 %v1288_v1  ;;  %1533 = vadd.xlane.f32.xlu0 %v1526_v11  ;;  %v1761_v1 = vmul.f32 %v3525_v63, %v3040_v46  ;;  %v1626_v46 = vmul.f32 %v3490_v47, %v3144_v31 }
 0x1e3   : > { %v3551_v62 = vpop.xlane.xlu0 %1125  ;;  %v3553_v23 = vpop.xlane.xlu2 %1085 }
 0x1e4   : > { %5197 = vst [vmem:[#allocation61_spill] sm:$0xff] %v3551_v62  ;;  %1567 = vadd.xlane.f32.xlu1 %v1560_v9 }
 0x1e7   : > { %v3559_v39 = vpop.xlane.xlu1 %1361 }
 0x1e8   : > { %5198 = vst [vmem:[#allocation62_spill] sm:$0xff] %v3559_v39  ;;  %1499 = vadd.xlane.f32.xlu2 %v1492_v15  ;;  %1731 = vadd.xlane.f32.xlu0 %v1727_v50  ;;  %v1693_v50 = vmul.f32 %v3232_v42, %v3118_v20  ;;  %v3593_v20 = vmul.f32 %v3525_v63, %v3128_v24 }
 0x1e9   : > { %v3611_v24 = vmul.f32 %v3517_v29, %v3152_v35 }
 0x1eb   : > { %v818_v11 = vpop.xlane.xlu0 %817  ;;  %v3565_v0 = vpop.xlane.xlu2 %1289 }
 0x1ec   : > { %v3568_v9 = vadd.f32 %v818_v11, %v3393_v44  ;;  %v827_v8 = vmul.f32 %v818_v11, %v818_v11  ;;  %v837_v32 = vmul.f32 %v3356_v40, %v818_v11  ;;  %1765 = vadd.xlane.f32.xlu1 %v1761_v1  ;;  %v1660_v40 = vmul.f32 %v3291_v14, %v3490_v47  ;;  %v3599_v11 = vpop.f32.mrf.mxu2 }
 0x1ee   : > { %v3572_v55 = vadd.f32 %v827_v8, %v3396_v21  ;;  %v3575_v15 = vadd.f32 %v837_v32, %v3398_v33  ;;  %v1592_v33 = vmul.f32 %v3490_v47, %v3132_v26  ;;  %v5203_v8 = vld [vmem:[#allocation12_spill] sm:$0xff]  ;;  %v1525_v32 = vmul.f32 %v3517_v29, %v3084_v4 }
 0x1ef   : > { %v3581_v51 = vpop.xlane.xlu1 %1053  ;;  %v3597_v1 = vmul.f32 %v3525_v63, %v5203_v8  ;;  %5205 = vst [vmem:[#allocation12_spill] sm:$0xff] %v3611_v24  ;;  %v2515_v8 = vld [vmem:[%s5039_s2 + $0x7] ss:$0 sm:$0xff]  ;;  %v3647_v26 = vmul.f32 %v3561_v53, %v3152_v35  ;;  %v3668_v35 = vmul.f32 %v3599_v11, %v3080_v2 }
 0x1f0   : > { %5200 = vst [vmem:[#allocation64_spill] sm:$0xff] %v3581_v51  ;;  %1697 = vadd.xlane.f32.xlu2 %v1693_v50  ;;  %1631 = vadd.xlane.f32.xlu0 %v1626_v46  ;;  %v5204_v50 = vld [vmem:[#allocation11_spill] sm:$0xff]  ;;  %v3759_v12 = vmul.f32 %v2515_v8, %v5235_v6 }
 0x1f1   : > { %v1559_v46 = vmul.f32 %v3517_v29, %v5204_v50  ;;  %5206 = vst [vmem:[#allocation11_spill] sm:$0xff] %v3626_v61  ;;  %v3635_v51 = vld [vmem:[%s5039_s2 + $0x6] ss:$0 sm:$0xff]  ;;  %v3643_v39 = vmul.f32 %v3561_v53, %v5204_v50  ;;  %v3664_v50 = vmul.f32 %v3599_v11, %v3096_v10 }
 0x1f2   : > { %5210 = vst [vmem:[#allocation70_spill] sm:$0xff] %v3647_v26  ;;  %v5216_v26 = vld [vmem:[#allocation13_spill] sm:$0xff] }
 0x1f3   : > { %v3585_v44 = vpop.xlane.xlu0 %1021  ;;  %v3587_v21 = vpop.xlane.xlu2 %1493  ;;  %5209 = vst [vmem:[#allocation69_spill] sm:$0xff] %v3643_v39  ;;  %v3678_v39 = vmul.f32 %v3533_v7, %v5216_v26  ;;  %v3682_v10 = vmul.f32 %v3599_v11, %v5216_v26  ;;  %v5222_v26 = vld [vmem:[#allocation17_spill] sm:$0xff] }
 0x1f4   : > { %5201 = vst [vmem:[#allocation65_spill] sm:$0xff] %v3585_v44  ;;  %1665 = vadd.xlane.f32.xlu1 %v1660_v40  ;;  %v3618_v40 = vmul.f32 %v3547_v13, %v3052_v52  ;;  %v3630_v44 = vmul.f32 %v3547_v13, %v3144_v31  ;;  %v3639_v52 = vmul.f32 %v3561_v53, %v3084_v4 }
 0x1f5   : > { %5202 = vst [vmem:[#allocation66_spill] sm:$0xff] %v3587_v21  ;;  %v3651_v31 = vmul.f32 %v3561_v53, %v3154_v36  ;;  %v1628_v4 = vmul.f32 %v3533_v7, %v3172_v48  ;;  %v3672_v36 = vmul.f32 %v3599_v11, %v3172_v48  ;;  %v5219_v48 = vld [vmem:[#allocation16_spill] sm:$0xff]  ;;  %v3723_v21 = vmul.f32 %v2515_v8, %v5225_v54  ;;  %v3751_v54 = vld [vmem:[%s5039_s2 + $0x14] ss:$0 sm:$0xff] }
 0x1f6   : > { %5207 = vst [vmem:[#allocation67_spill] sm:$0xff] %v3630_v44  ;;  %v3656_v44 = vld [vmem:[%s5039_s2 + $0xd] ss:$0 sm:$0xff] }
 0x1f7   : > { %5208 = vst [vmem:[#allocation68_spill] sm:$0xff] %v3639_v52  ;;  %v3658_v61 = vpop.xlane.xlu1 %1257  ;;  %v5218_v52 = vld [vmem:[#allocation15_spill] sm:$0xff] }
 0x1f8   : > { %5211 = vst [vmem:[#allocation71_spill] sm:$0xff] %v3651_v31  ;;  %1597 = vadd.xlane.f32.xlu2 %v1592_v33  ;;  %1531 = vadd.xlane.f32.xlu0 %v1525_v32  ;;  %v1491_v31 = vmul.f32 %v3431_v37, %v3204_v18  ;;  %v961_v2 = vmul.f32 %v5218_v52, %v5218_v52  ;;  %v3699_v32 = vld [vmem:[%s5039_s2 + $0x4] ss:$0 sm:$0xff] }
 0x1f9   : > { %5212 = vst [vmem:[#allocation72_spill] sm:$0xff] %v3658_v61  ;;  %v3691_v33 = vmul.f32 %v5219_v48, %v5219_v48  ;;  %v3694_v18 = vmul.f32 %v2515_v8, %v5219_v48  ;;  %v3708_v61 = vld [vmem:[%s5039_s2 + $0xe] ss:$0 sm:$0xff] }
 0x1fa   : > { %5213 = vst [vmem:[#allocation73_spill] sm:$0xff] %v3664_v50  ;;  %v5228_v50 = vld [vmem:[#allocation19_spill] sm:$0xff] }
 0x1fb   : > { %5214 = vst [vmem:[#allocation74_spill] sm:$0xff] %v3668_v35  ;;  %v3687_v35 = vmul.f32 %v2515_v8, %v5218_v52  ;;  %v3727_v62 = vmul.f32 %v5228_v50, %v5228_v50  ;;  %v3731_v24 = vmul.f32 %v3656_v44, %v5228_v50 }
 0x1fc   : > { %5215 = vst [vmem:[#allocation75_spill] sm:$0xff] %v3672_v36  ;;  %v927_v36 = vmul.f32 %v5222_v26, %v5222_v26  ;;  %1565 = vadd.xlane.f32.xlu1 %v1559_v46 }
 0x1fd   : > { %5217 = vst [vmem:[#allocation13_spill] sm:$0xff] %v3682_v10  ;;  %v937_v10 = vmul.f32 %v3635_v51, %v5222_v26 }
 0x1fe   : > { %5220 = vst [vmem:[#allocation15_spill] sm:$0xff] %v3691_v33  ;;  %v5223_v33 = vld [vmem:[#allocation14_spill] sm:$0xff] }
 0x1ff   : > { %5221 = vst [vmem:[#allocation76_spill] sm:$0xff] %v3694_v18  ;;  %v3712_v48 = vmul.f32 %v3525_v63, %v5223_v33  ;;  %v3716_v18 = vmul.f32 %v3232_v42, %v3525_v63  ;;  %v3736_v42 = vld [vmem:[%s5039_s2 + $0x5] ss:$0 sm:$0xff]  ;;  %v3738_v63 = vpop.xlane.xlu0 %1225  ;;  %v848_v33 = vpop.xlane.xlu2 %847 }
 0x200   : > { %5226 = vst [vmem:[#allocation14_spill] sm:$0xff] %v3720_v58  ;;  %v5231_v58 = vld [vmem:[#allocation20_spill] sm:$0xff]  ;;  %v855_v59 = vadd.f32 %v848_v33, %v3362_v41  ;;  %v859_v22 = vmul.f32 %v848_v33, %v848_v33  ;;  %v869_v41 = vmul.f32 %v3699_v32, %v848_v33  ;;  %v903_v38 = vmul.f32 %v3736_v42, %v3497_v19  ;;  %v3786_v30 = vpop.xlane.xlu1 %1461 }
 0x201   : > { %5224 = vst [vmem:[#allocation17_spill] sm:$0xff] %v3716_v18  ;;  %v3742_v18 = vmul.f32 %v5231_v58, %v5231_v58  ;;  %1497 = vadd.xlane.f32.xlu2 %v1491_v31  ;;  %1635 = vadd.xlane.f32.xlu0 %v1628_v4  ;;  %v5252_v4 = vld [vmem:[#allocation27_spill] sm:$0xff] }
 0x202   : > { %5227 = vst [vmem:[#allocation77_spill] sm:$0xff] %v3723_v21  ;;  %v3746_v21 = vmul.f32 %v3635_v51, %v5231_v58  ;;  %v863_v8 = vadd.f32 %v859_v22, %v3369_v34  ;;  %v873_v33 = vadd.f32 %v869_v41, %v3371_v5 }
 0x203   : > { %5229 = vst [vmem:[#allocation19_spill] sm:$0xff] %v3736_v42  ;;  %v3816_v42 = vld [vmem:[%s5039_s2 + $0x8] ss:$0 sm:$0xff] }
 0x204   : > { %5230 = vst [vmem:[#allocation78_spill] sm:$0xff] %v3738_v63  ;;  %v3756_v63 = vmul.f32 %v5235_v6, %v5235_v6  ;;  %v5239_v6 = vld [vmem:[#allocation23_spill] sm:$0xff] }
 0x205   : > { %5232 = vst [vmem:[#allocation79_spill] sm:$0xff] %v3742_v18  ;;  %v5238_v18 = vld [vmem:[#allocation22_spill] sm:$0xff]  ;;  %v3781_v49 = vmul.f32 %v5239_v6, %v5239_v6  ;;  %v3794_v34 = vmul.f32 %v3751_v54, %v5239_v6 }
 0x206   : > { %5233 = vst [vmem:[#allocation80_spill] sm:$0xff] %v3746_v21  ;;  %v3763_v58 = vmul.f32 %v5238_v18, %v5238_v18  ;;  %v3768_v21 = vld [vmem:[%s5039_s2 + $0xc] ss:$0 sm:$0xff]  ;;  %v3773_v46 = vmul.f32 %v3708_v61, %v5238_v18 }
 0x207   : > { %5234 = vst [vmem:[#allocation81_spill] sm:$0xff] %v3751_v54 }
 0x208   : > { %5236 = vst [vmem:[#allocation82_spill] sm:$0xff] %v3756_v63  ;;  %v893_v63 = vmul.f32 %v3497_v19, %v3497_v19 }
 0x209   : > { %5237 = vst [vmem:[#allocation83_spill] sm:$0xff] %v3759_v12  ;;  %v889_v12 = vadd.f32 %v3497_v19, %v855_v59  ;;  %v5242_v59 = vld [vmem:[#allocation24_spill] sm:$0xff]  ;;  %v5243_v19 = vld [vmem:[#allocation25_spill] sm:$0xff]  ;;  %1601 = vadd.xlane.f32.xlu2 %v3678_v39  ;;  %1833 = vadd.xlane.f32.xlu0 %v3593_v20 }
 0x20a   : > { %5240 = vst [vmem:[#allocation22_spill] sm:$0xff] %v3781_v49  ;;  %v3798_v22 = vmul.f32 %v5242_v59, %v5242_v59  ;;  %v897_v49 = vadd.f32 %v893_v63, %v863_v8  ;;  %v3803_v5 = vmul.f32 %v3768_v21, %v5242_v59  ;;  %v3807_v47 = vmul.f32 %v5243_v19, %v5243_v19 }
 0x20b   : > { %5241 = vst [vmem:[#allocation23_spill] sm:$0xff] %v3786_v30  ;;  %v923_v28 = vadd.f32 %v5222_v26, %v889_v12  ;;  %v3811_v41 = vmul.f32 %v3656_v44, %v5243_v19  ;;  %v907_v63 = vadd.f32 %v903_v38, %v873_v33  ;;  %v1662_v26 = vmul.f32 %v3415_v3, %v3533_v7  ;;  %v3836_v38 = vld [vmem:[%s5039_s2 + $0x9] ss:$0 sm:$0xff] }
 0x20c   : > { %5244 = vst [vmem:[#allocation24_spill] sm:$0xff] %v3807_v47  ;;  %v931_v12 = vadd.f32 %v927_v36, %v897_v49  ;;  %v3823_v8 = vmul.f32 %v3326_v60, %v3547_v13  ;;  %v5247_v47 = vld [vmem:[#allocation26_spill] sm:$0xff]  ;;  %v3838_v49 = vpop.xlane.xlu2 %883  ;;  %v3844_v60 = vmul.f32 %v3547_v13, %v3291_v14  ;;  %v3848_v36 = vmul.f32 %v5252_v4, %v5252_v4  ;;  %v3864_v14 = vld [vmem:[%s5039_s2 + $0x13] ss:$0 sm:$0xff] }
 0x20d   : > { %5245 = vst [vmem:[#allocation84_spill] sm:$0xff] %v3811_v41  ;;  %v957_v31 = vadd.f32 %v5218_v52, %v923_v28  ;;  %v3827_v41 = vmul.f32 %v5247_v47, %v5247_v47  ;;  %v3831_v19 = vmul.f32 %v3635_v51, %v5247_v47  ;;  %v941_v28 = vadd.f32 %v937_v10, %v907_v63  ;;  %v3840_v52 = vpop.xlane.xlu0 %1527  ;;  %v5255_v63 = vld [vmem:[#allocation28_spill] sm:$0xff] }
 0x20e   : > { %5246 = vst [vmem:[#allocation85_spill] sm:$0xff] %v3823_v8  ;;  %v995_v33 = vmul.f32 %v3379_v56, %v3379_v56  ;;  %v965_v8 = vadd.f32 %v961_v2, %v931_v12  ;;  %1669 = vadd.xlane.f32.xlu1 %v1662_v26  ;;  %v3855_v10 = vmul.f32 %v3816_v42, %v5252_v4  ;;  %v3871_v2 = vld [vmem:[%s5039_s2 + $0xa] ss:$0 sm:$0xff]  ;;  %v5259_v26 = vld [vmem:[#allocation33_spill] sm:$0xff] }
 0x20f   : > { %5248 = vst [vmem:[#allocation86_spill] sm:$0xff] %v3827_v41  ;;  %v3859_v41 = vmul.f32 %v5255_v63, %v5255_v63  ;;  %v1005_v13 = vmul.f32 %v3816_v42, %v3379_v56  ;;  %v975_v12 = vadd.f32 %v3687_v35, %v941_v28  ;;  %v1039_v4 = vmul.f32 %v3836_v38, %v5259_v26 }
 0x210   : > { %5249 = vst [vmem:[#allocation87_spill] sm:$0xff] %v3831_v19  ;;  %v991_v19 = vadd.f32 %v3379_v56, %v957_v31  ;;  %v3876_v31 = vmul.f32 %v3635_v51, %v5255_v63  ;;  %v1063_v35 = vmul.f32 %v3515_v57, %v3515_v57  ;;  %v3892_v51 = vld [vmem:[%s5039_s2 + $0xb] ss:$0 sm:$0xff]  ;;  %v1073_v47 = vmul.f32 %v3871_v2, %v3515_v57 }
 0x211   : > { %5250 = vst [vmem:[#allocation88_spill] sm:$0xff] %v3838_v49  ;;  %v1009_v28 = vadd.f32 %v1005_v13, %v975_v12  ;;  %v1107_v20 = vmul.f32 %v3892_v51, %v3553_v23  ;;  %1799 = vadd.xlane.f32.xlu2 %v3597_v1  ;;  %1733 = vadd.xlane.f32.xlu0 %v3607_v25  ;;  %v4031_v25 = vld [vmem:[%s5039_s2 + $0x11] ss:$0 sm:$0xff] }
 0x212   : > { %5251 = vst [vmem:[#allocation89_spill] sm:$0xff] %v3844_v60  ;;  %v999_v60 = vadd.f32 %v995_v33, %v965_v8 }
 0x213   : > { %5253 = vst [vmem:[#allocation90_spill] sm:$0xff] %v3848_v36  ;;  %v5260_v36 = vld [vmem:[#allocation29_spill] sm:$0xff]  ;;  %v1043_v49 = vadd.f32 %v1039_v4, %v1009_v28  ;;  %v5265_v28 = vld [vmem:[#allocation31_spill] sm:$0xff] }
 0x214   : > { %5254 = vst [vmem:[#allocation91_spill] sm:$0xff] %v3855_v10  ;;  %v1025_v10 = vadd.f32 %v5259_v26, %v991_v19  ;;  %v3883_v56 = vmul.f32 %v5260_v36, %v5260_v36 }
 0x215   : > { %5256 = vst [vmem:[#allocation92_spill] sm:$0xff] %v3859_v41  ;;  %v1029_v41 = vmul.f32 %v5259_v26, %v5259_v26  ;;  %v3901_v26 = vmul.f32 %v3864_v14, %v5260_v36  ;;  %v1077_v4 = vadd.f32 %v1073_v47, %v1043_v49  ;;  %v3947_v47 = vmul.f32 %v3351_v17, %v3517_v29 }
 0x216   : > { %5257 = vst [vmem:[#allocation93_spill] sm:$0xff] %v3864_v14  ;;  %v1059_v19 = vadd.f32 %v3515_v57, %v1025_v10  ;;  %v5261_v10 = vld [vmem:[#allocation30_spill] sm:$0xff]  ;;  %v3920_v57 = vld [vmem:[%s5039_s2 + $0xf] ss:$0 sm:$0xff]  ;;  %1867 = vadd.xlane.f32.xlu1 %v3712_v48  ;;  %v3951_v49 = vmul.f32 %v3561_v53, %v3351_v17 }
 0x217   : > { %5258 = vst [vmem:[#allocation94_spill] sm:$0xff] %v3876_v31  ;;  %v852_v31 = vpop.xlane.xlu1 %851  ;;  %v1033_v8 = vadd.f32 %v1029_v41, %v999_v60  ;;  %v1097_v41 = vmul.f32 %v3553_v23, %v3553_v23  ;;  %v3915_v12 = vmul.f32 %v5261_v10, %v5261_v10 }
 0x218   : > { %v3896_v33 = vadd.f32 %v852_v31, %v3568_v9  ;;  %v861_v63 = vmul.f32 %v852_v31, %v852_v31  ;;  %v871_v13 = vmul.f32 %v3699_v32, %v852_v31  ;;  %v1093_v60 = vadd.f32 %v3553_v23, %v1059_v19  ;;  %5268 = vst [vmem:[#allocation98_spill] sm:$0xff] %v3951_v49 }
 0x219   : > { %v1067_v9 = vadd.f32 %v1063_v35, %v1033_v8  ;;  %5262 = vst [vmem:[#allocation33_spill] sm:$0xff] %v3915_v12  ;;  %v3927_v35 = vpop.xlane.xlu2 %1087  ;;  %v3937_v8 = vmul.f32 %v5265_v28, %v5265_v28  ;;  %v3943_v23 = vmul.f32 %v3768_v21, %v5265_v28  ;;  %v5297_v28 = vld [vmem:[#allocation43_spill] sm:$0xff]  ;;  %1699 = vadd.xlane.f32.xlu2 %v3790_v16 }
 0x21a   : > { %v3911_v39 = vadd.f32 %v861_v63, %v3572_v55  ;;  %v3925_v31 = vadd.f32 %v871_v13, %v3575_v15  ;;  %v3929_v55 = vpop.xlane.xlu0 %1023  ;;  %v3933_v63 = vmul.f32 %v3708_v61, %v5261_v10  ;;  %v1127_v12 = vadd.f32 %v5242_v59, %v1093_v60  ;;  %v5269_v13 = vld [vmem:[#allocation32_spill] sm:$0xff]  ;;  %v3964_v59 = vld [vmem:[%s5039_s2 + $0x12] ss:$0 sm:$0xff]  ;;  %v4008_v10 = vld [vmem:[%s5039_s2 + $0x10] ss:$0 sm:$0xff]  ;;  %1633 = vadd.xlane.f32.xlu0 %v3622_v45 }
 0x21b   : > { %5263 = vst [vmem:[#allocation29_spill] sm:$0xff] %v3929_v55  ;;  %v1101_v19 = vadd.f32 %v1097_v41, %v1067_v9  ;;  %v1111_v15 = vadd.f32 %v1107_v20, %v1077_v4  ;;  %v3955_v41 = vmul.f32 %v5269_v13, %v5269_v13  ;;  %v3959_v48 = vmul.f32 %v3751_v54, %v5269_v13  ;;  %v5272_v20 = vld [vmem:[#allocation34_spill] sm:$0xff]  ;;  %v5273_v13 = vld [vmem:[#allocation35_spill] sm:$0xff] }
 0x21c   : > { %5264 = vst [vmem:[#allocation95_spill] sm:$0xff] %v3933_v63  ;;  %v1161_v60 = vadd.f32 %v5228_v50, %v1127_v12  ;;  %v1233_v17 = vmul.f32 %v5272_v20, %v5272_v20  ;;  %v1243_v4 = vmul.f32 %v3920_v57, %v5272_v20  ;;  %v3981_v63 = vmul.f32 %v5273_v13, %v5273_v13 }
 0x21d   : > { %5266 = vst [vmem:[#allocation96_spill] sm:$0xff] %v3937_v8  ;;  %v1135_v9 = vadd.f32 %v3798_v22, %v1101_v19  ;;  %v1145_v53 = vadd.f32 %v3803_v5, %v1111_v15  ;;  %v3985_v50 = vmul.f32 %v3656_v44, %v5273_v13  ;;  %v3990_v22 = vld [vmem:[%s5039_s2 + $0x15] ss:$0 sm:$0xff] }
 0x21e   : > { %5267 = vst [vmem:[#allocation97_spill] sm:$0xff] %v3943_v23  ;;  %v1195_v12 = vadd.f32 %v5238_v18, %v1161_v60  ;;  %v5281_v18 = vld [vmem:[#allocation38_spill] sm:$0xff]  ;;  %1767 = vadd.xlane.f32.xlu1 %v3618_v40 }
 0x21f   : > { %5270 = vst [vmem:[#allocation99_spill] sm:$0xff] %v3955_v41  ;;  %v3973_v41 = vpop.xlane.xlu1 %1055  ;;  %v1169_v5 = vadd.f32 %v3727_v62, %v1135_v9  ;;  %v1179_v62 = vadd.f32 %v3731_v24, %v1145_v53  ;;  %v4016_v9 = vmul.f32 %v5281_v18, %v5281_v18  ;;  %v4022_v8 = vmul.f32 %v3864_v14, %v5281_v18 }
 0x220   : > { %5271 = vst [vmem:[#allocation100_spill] sm:$0xff] %v3959_v48  ;;  %v3977_v48 = vmul.f32 %v3431_v37, %v3517_v29  ;;  %v5277_v29 = vld [vmem:[#allocation36_spill] sm:$0xff]  ;;  %v5279_v37 = vld [vmem:[#allocation37_spill] sm:$0xff]  ;;  %v1229_v23 = vadd.f32 %v5272_v20, %v1195_v12  ;;  %v4040_v20 = vmul.f32 %v3599_v11, %v3415_v3  ;;  %v1267_v12 = vmul.f32 %v3531_v43, %v3531_v43 }
 0x221   : > { %5274 = vst [vmem:[#allocation34_spill] sm:$0xff] %v3981_v63  ;;  %v3997_v19 = vmul.f32 %v5277_v29, %v5277_v29  ;;  %v4001_v15 = vmul.f32 %v3816_v42, %v5277_v29  ;;  %v1335_v49 = vmul.f32 %v5279_v37, %v5279_v37  ;;  %v1345_v1 = vmul.f32 %v3964_v59, %v5279_v37 }
 0x222   : > { %5275 = vst [vmem:[#allocation101_spill] sm:$0xff] %v3985_v50  ;;  %v1203_v60 = vadd.f32 %v3763_v58, %v1169_v5  ;;  %v5284_v50 = vld [vmem:[#allocation39_spill] sm:$0xff]  ;;  %v1213_v24 = vadd.f32 %v3773_v46, %v1179_v62  ;;  %v4036_v58 = vpop.xlane.xlu0 %1227  ;;  %v1263_v18 = vadd.f32 %v3531_v43, %v1229_v23  ;;  %v5288_v46 = vld [vmem:[#allocation40_spill] sm:$0xff]  ;;  %v5292_v23 = vld [vmem:[#allocation41_spill] sm:$0xff] }
 0x223   : > { %5276 = vst [vmem:[#allocation102_spill] sm:$0xff] %v3990_v22  ;;  %v4026_v53 = vmul.f32 %v5284_v50, %v5284_v50  ;;  %v4044_v5 = vmul.f32 %v3990_v22, %v5284_v50  ;;  %v4052_v62 = vmul.f32 %v5288_v46, %v5288_v46  ;;  %v4056_v3 = vmul.f32 %v3708_v61, %v5288_v46 }
 0x224   : > { %5278 = vst [vmem:[#allocation36_spill] sm:$0xff] %v4001_v15  ;;  %v4067_v40 = vmul.f32 %v5292_v23, %v5292_v23  ;;  %v1297_v63 = vadd.f32 %v3565_v0, %v1263_v18  ;;  %v4079_v13 = vmul.f32 %v3656_v44, %v5292_v23  ;;  %v4091_v15 = vmul.f32 %v5297_v28, %v5297_v28 }
 0x225   : > { %5280 = vst [vmem:[#allocation37_spill] sm:$0xff] %v4008_v10 }
 0x226   : > { %5282 = vst [vmem:[#allocation103_spill] sm:$0xff] %v4016_v9  ;;  %v4034_v9 = vpop.xlane.xlu2 %1291  ;;  %v1331_v18 = vadd.f32 %v5279_v37, %v1297_v63  ;;  %1667 = vadd.xlane.f32.xlu1 %v3947_v47  ;;  %v5313_v47 = vld [vmem:[#allocation57_spill] sm:$0xff] }
 0x227   : > { %5283 = vst [vmem:[#allocation104_spill] sm:$0xff] %v4022_v8  ;;  %v1237_v8 = vadd.f32 %v1233_v17, %v1203_v60  ;;  %v1277_v17 = vmul.f32 %v4008_v10, %v3531_v43  ;;  %v1247_v60 = vadd.f32 %v1243_v4, %v1213_v24  ;;  %v1311_v43 = vmul.f32 %v4031_v25, %v3565_v0  ;;  %v4083_v24 = vpop.xlane.xlu1 %1259 }
 0x228   : > { %5285 = vst [vmem:[#allocation39_spill] sm:$0xff] %v4034_v9 }
 0x229   : > { %5286 = vst [vmem:[#allocation105_spill] sm:$0xff] %v4036_v58  ;;  %v1271_v46 = vadd.f32 %v1267_v12, %v1237_v8  ;;  %v1281_v4 = vadd.f32 %v1277_v17, %v1247_v60  ;;  %v4095_v8 = vmul.f32 %v3768_v21, %v5297_v28  ;;  %v4110_v60 = vmul.f32 %v3504_v27, %v3599_v11 }
 0x22a   : > { %5287 = vst [vmem:[#allocation106_spill] sm:$0xff] %v4040_v20  ;;  %v4061_v20 = vld [vmem:[%s5039_s2 + $0x19] ss:$0 sm:$0xff] }
 0x22b   : > { %5289 = vst [vmem:[#allocation107_spill] sm:$0xff] %v4052_v62  ;;  %v4072_v62 = vld [vmem:[%s5039_s2 + $0x1a] ss:$0 sm:$0xff]  ;;  %v1315_v17 = vadd.f32 %v1311_v43, %v1281_v4 }
 0x22c   : > { %5290 = vst [vmem:[#allocation108_spill] sm:$0xff] %v4056_v3  ;;  %v1301_v3 = vmul.f32 %v3565_v0, %v3565_v0  ;;  %v5298_v0 = vld [vmem:[#allocation44_spill] sm:$0xff] }
 0x22d   : > { %5291 = vst [vmem:[#allocation109_spill] sm:$0xff] %v4061_v20  ;;  %v4101_v12 = vmul.f32 %v5298_v0, %v5298_v0  ;;  %v1349_v4 = vadd.f32 %v1345_v1, %v1315_v17  ;;  %v5309_v17 = vld [vmem:[#allocation56_spill] sm:$0xff] }
 0x22e   : > { %5293 = vst [vmem:[#allocation110_spill] sm:$0xff] %v4067_v40  ;;  %v4087_v40 = vmul.f32 %v3504_v27, %v3533_v7  ;;  %v1305_v44 = vadd.f32 %v1301_v3, %v1271_v46  ;;  %v4105_v7 = vmul.f32 %v4061_v20, %v5298_v0  ;;  %v5300_v46 = vld [vmem:[#allocation45_spill] sm:$0xff]  ;;  %v1365_v3 = vadd.f32 %v5260_v36, %v1331_v18  ;;  %v5302_v27 = vld [vmem:[#allocation54_spill] sm:$0xff] }
 0x22f   : > { %5294 = vst [vmem:[#allocation111_spill] sm:$0xff] %v4072_v62  ;;  %v4114_v37 = vmul.f32 %v5300_v46, %v5300_v46  ;;  %v4118_v16 = vmul.f32 %v4072_v62, %v5300_v46  ;;  %v4131_v11 = vmul.f32 %v5302_v27, %v5302_v27  ;;  %v4135_v62 = vpop.xlane.xlu0 %1329  ;;  %v4139_v36 = vmul.f32 %v3920_v57, %v5302_v27 }
 0x230   : > { %5295 = vst [vmem:[#allocation112_spill] sm:$0xff] %v4079_v13  ;;  %v1339_v63 = vadd.f32 %v1335_v49, %v1305_v44  ;;  %v5301_v13 = vld [vmem:[#allocation50_spill] sm:$0xff]  ;;  %v5306_v49 = vld [vmem:[#allocation55_spill] sm:$0xff]  ;;  %v1399_v23 = vadd.f32 %v5239_v6, %v1365_v3  ;;  %v4158_v20 = vmul.f32 %v3964_v59, %v5309_v17  ;;  %v1383_v6 = vadd.f32 %v3901_v26, %v1349_v4  ;;  %v5320_v26 = vld [vmem:[#allocation60_spill] sm:$0xff] }
 0x231   : > { %5296 = vst [vmem:[#allocation113_spill] sm:$0xff] %v4083_v24  ;;  %v4123_v43 = vmul.f32 %v5301_v13, %v5301_v13  ;;  %v4127_v45 = vmul.f32 %v3836_v38, %v5301_v13  ;;  %v4143_v44 = vmul.f32 %v5306_v49, %v5306_v49  ;;  %v4150_v1 = vmul.f32 %v3816_v42, %v5306_v49  ;;  %v5316_v3 = vld [vmem:[#allocation22_spill] sm:$0xff]  ;;  %v5330_v49 = vld [vmem:[#allocation52_spill] sm:$0xff] }
 0x232   : > { %5299 = vst [vmem:[#allocation43_spill] sm:$0xff] %v4110_v60  ;;  %v4133_v60 = vpop.xlane.xlu2 %1495  ;;  %v1373_v18 = vadd.f32 %v3883_v56, %v1339_v63  ;;  %v4163_v56 = vld [vmem:[%s5039_s2 + $0x16] ss:$0 sm:$0xff]  ;;  %v4168_v63 = vmul.f32 %v5313_v47, %v5313_v47  ;;  %v4172_v42 = vmul.f32 %v3708_v61, %v5313_v47  ;;  %v1471_v4 = vmul.f32 %v5320_v26, %v5320_v26  ;;  %v4189_v61 = vld [vmem:[%s5039_s2 + $0x17] ss:$0 sm:$0xff] }
 0x233   : > { %5303 = vst [vmem:[#allocation44_spill] sm:$0xff] %v4131_v11  ;;  %1701 = vadd.xlane.f32.xlu1 %v3977_v48 }
 0x234   : > { %5304 = vst [vmem:[#allocation45_spill] sm:$0xff] %v4135_v62  ;;  %v4154_v62 = vmul.f32 %v5309_v17, %v5309_v17 }
 0x235   : > { %5305 = vst [vmem:[#allocation50_spill] sm:$0xff] %v4139_v36 }
 0x236   : > { %5307 = vst [vmem:[#allocation114_spill] sm:$0xff] %v4143_v44 }
 0x237   : > { %5308 = vst [vmem:[#allocation115_spill] sm:$0xff] %v4150_v1  ;;  %v1433_v1 = vadd.f32 %v5284_v50, %v1399_v23  ;;  %v4229_v27 = vpop.xlane.xlu0 %1327 }
 0x238   : > { %5310 = vst [vmem:[#allocation116_spill] sm:$0xff] %v4154_v62  ;;  %v1407_v62 = vadd.f32 %v5316_v3, %v1373_v18  ;;  %v1417_v18 = vadd.f32 %v3794_v34, %v1383_v6  ;;  %v854_v3 = vpop.xlane.xlu1 %853  ;;  %v5329_v6 = vld [vmem:[#allocation66_spill] sm:$0xff] }
 0x239   : > { %5311 = vst [vmem:[#allocation117_spill] sm:$0xff] %v4158_v20  ;;  %v5317_v20 = vld [vmem:[#allocation58_spill] sm:$0xff]  ;;  %v1467_v23 = vadd.f32 %v5320_v26, %v1433_v1  ;;  %v862_v47 = vmul.f32 %v854_v3, %v854_v3  ;;  %v5328_v1 = vld [vmem:[#allocation73_spill] sm:$0xff] }
 0x23a   : > { %5312 = vst [vmem:[#allocation118_spill] sm:$0xff] %v4163_v56  ;;  %v4178_v44 = vmul.f32 %v5317_v20, %v5317_v20  ;;  %v4182_v17 = vmul.f32 %v3990_v22, %v5317_v20  ;;  %v1441_v50 = vadd.f32 %v4026_v53, %v1407_v62  ;;  %v5324_v22 = vld [vmem:[#allocation12_spill] sm:$0xff]  ;;  %v1451_v34 = vadd.f32 %v4044_v5, %v1417_v18  ;;  %v4208_v53 = vld [vmem:[%s5039_s2 + $0x18] ss:$0 sm:$0xff] }
 0x23b   : > { %5314 = vst [vmem:[#allocation119_spill] sm:$0xff] %v4168_v63  ;;  %1599 = vadd.xlane.f32.xlu2 %v5324_v22  ;;  %v872_v62 = vmul.f32 %v3699_v32, %v854_v3  ;;  %1737 = vadd.xlane.f32.xlu0 %v5328_v1  ;;  %v1505_v22 = vmul.f32 %v5329_v6, %v5329_v6  ;;  %v4227_v1 = vpop.xlane.xlu2 %1395 }
 0x23c   : > { %5315 = vst [vmem:[#allocation120_spill] sm:$0xff] %v4172_v42  ;;  %v5322_v42 = vld [vmem:[#allocation51_spill] sm:$0xff]  ;;  %v4216_v36 = vadd.f32 %v862_v47, %v5330_v49  ;;  %v1515_v18 = vmul.f32 %v4189_v61, %v5329_v6 }
 0x23d   : > { %5318 = vst [vmem:[#allocation22_spill] sm:$0xff] %v4178_v44  ;;  %v4195_v63 = vadd.f32 %v854_v3, %v5322_v42  ;;  %v5325_v44 = vld [vmem:[#allocation61_spill] sm:$0xff]  ;;  %v1475_v42 = vadd.f32 %v1471_v4, %v1441_v50  ;;  %v5335_v4 = vld [vmem:[#allocation62_spill] sm:$0xff] }
 0x23e   : > { %5319 = vst [vmem:[#allocation121_spill] sm:$0xff] %v4182_v17  ;;  %v1481_v17 = vmul.f32 %v4163_v56, %v5320_v26  ;;  %v4202_v20 = vmul.f32 %v5325_v44, %v5325_v44  ;;  %v1501_v26 = vadd.f32 %v5329_v6, %v1467_v23  ;;  %v4220_v5 = vmul.f32 %v3768_v21, %v5325_v44  ;;  %v5333_v3 = vld [vmem:[#allocation53_spill] sm:$0xff]  ;;  %v5338_v23 = vld [vmem:[#allocation64_spill] sm:$0xff] }
 0x23f   : > { %5321 = vst [vmem:[#allocation60_spill] sm:$0xff] %v4189_v61  ;;  %v4225_v11 = vadd.f32 %v872_v62, %v5333_v3  ;;  %v4233_v50 = vmul.f32 %v5335_v4, %v5335_v4  ;;  %v1509_v49 = vadd.f32 %v1505_v22, %v1475_v42  ;;  %v1539_v21 = vmul.f32 %v3840_v52, %v3840_v52  ;;  %v5339_v42 = vld [vmem:[#allocation65_spill] sm:$0xff] }
 0x240   : > { %5323 = vst [vmem:[#allocation51_spill] sm:$0xff] %v4195_v63  ;;  %v4236_v47 = vadd.f32 %v3840_v52, %v1501_v26  ;;  %v1549_v6 = vmul.f32 %v4208_v53, %v3840_v52  ;;  %v4253_v22 = vmul.f32 %v3871_v2, %v5338_v23  ;;  %v4257_v26 = vmul.f32 %v5339_v42, %v5339_v42 }
 0x241   : > { %5326 = vst [vmem:[#allocation12_spill] sm:$0xff] %v4202_v20  ;;  %v1485_v20 = vadd.f32 %v1481_v17, %v1451_v34  ;;  %v4243_v17 = vmul.f32 %v3864_v14, %v5335_v4  ;;  %v4247_v34 = vmul.f32 %v5338_v23, %v5338_v23  ;;  %v4261_v48 = vmul.f32 %v3836_v38, %v5339_v42  ;;  %v5340_v14 = vld [vmem:[#allocation72_spill] sm:$0xff] }
 0x242   : > { %5327 = vst [vmem:[#allocation122_spill] sm:$0xff] %v4208_v53  ;;  %v4263_v3 = vadd.f32 %v1539_v21, %v1509_v49  ;;  %v4271_v52 = vmul.f32 %v4008_v10, %v5340_v14  ;;  %v4287_v21 = vmul.f32 %v3786_v30, %v3786_v30  ;;  %v5347_v4 = vld [vmem:[#allocation88_spill] sm:$0xff]  ;;  %v4300_v53 = vmul.f32 %v3927_v35, %v3927_v35 }
 0x243   : > { %5331 = vst [vmem:[#allocation73_spill] sm:$0xff] %v4216_v36  ;;  %v1519_v62 = vadd.f32 %v1515_v18, %v1485_v20  ;;  %v4267_v20 = vmul.f32 %v5340_v14, %v5340_v14  ;;  %v5343_v18 = vld [vmem:[#allocation78_spill] sm:$0xff]  ;;  %1703 = vadd.xlane.f32.xlu2 %v4087_v40  ;;  %v4313_v40 = vmul.f32 %v3836_v38, %v3929_v55 }
 0x244   : > { %5332 = vst [vmem:[#allocation66_spill] sm:$0xff] %v4220_v5  ;;  %v4275_v5 = vmul.f32 %v5343_v18, %v5343_v18  ;;  %v4283_v49 = vmul.f32 %v3920_v57, %v5343_v18  ;;  %v4325_v14 = vmul.f32 %v4034_v9, %v4034_v9  ;;  %v4333_v38 = vmul.f32 %v4036_v58, %v4036_v58 }
 0x245   : > { %5334 = vst [vmem:[#allocation52_spill] sm:$0xff] %v4225_v11  ;;  %v4277_v44 = vadd.f32 %v1549_v6, %v1519_v62  ;;  %v5348_v62 = vld [vmem:[#allocation19_spill] sm:$0xff]  ;;  %v850_v11 = vpop.xlane.xlu0 %849 }
 0x246   : > { %5336 = vst [vmem:[#allocation53_spill] sm:$0xff] %v4233_v50  ;;  %v4291_v50 = vmul.f32 %v4163_v56, %v3786_v30  ;;  %v904_v6 = vmul.f32 %v5348_v62, %v5347_v4  ;;  %v4308_v56 = vmul.f32 %v3929_v55, %v3929_v55  ;;  %v4321_v30 = vmul.f32 %v3871_v2, %v3973_v41  ;;  %v886_v55 = vpop.xlane.xlu2 %885 }
 0x247   : > { %5337 = vst [vmem:[#allocation123_spill] sm:$0xff] %v4243_v17  ;;  %v4279_v17 = vpop.xlane.xlu1 %1057  ;;  %v895_v36 = vmul.f32 %v886_v55, %v886_v55 }
 0x248   : > { %5341 = vst [vmem:[#allocation64_spill] sm:$0xff] %v4267_v20  ;;  %v4304_v20 = vmul.f32 %v3892_v51, %v3927_v35 }
 0x249   : > { %5342 = vst [vmem:[#allocation65_spill] sm:$0xff] %v4271_v52  ;;  %v894_v52 = vmul.f32 %v5347_v4, %v5347_v4 }
 0x24a   : > { %5344 = vst [vmem:[#allocation78_spill] sm:$0xff] %v4283_v49  ;;  %v5358_v49 = vld [vmem:[#allocation68_spill] sm:$0xff] }
 0x24b   : > { %5345 = vst [vmem:[#allocation124_spill] sm:$0xff] %v4287_v21  ;;  %v4317_v21 = vmul.f32 %v3973_v41, %v3973_v41  ;;  %1735 = vadd.xlane.f32.xlu1 %v5358_v49  ;;  %v4362_v49 = vmul.f32 %v4189_v61, %v4133_v60  ;;  %v5369_v61 = vld [vmem:[#allocation17_spill] sm:$0xff] }
 0x24c   : > { %5346 = vst [vmem:[#allocation125_spill] sm:$0xff] %v4291_v50  ;;  %v5350_v50 = vld [vmem:[#allocation74_spill] sm:$0xff]  ;;  %1901 = vadd.xlane.f32.xlu2 %v5369_v61 }
 0x24d   : > { %5349 = vst [vmem:[#allocation88_spill] sm:$0xff] %v4308_v56  ;;  %1771 = vadd.xlane.f32.xlu0 %v5350_v50  ;;  %v4329_v56 = vmul.f32 %v4031_v25, %v4034_v9  ;;  %v4337_v50 = vmul.f32 %v3920_v57, %v4036_v58  ;;  %v905_v9 = vmul.f32 %v5348_v62, %v886_v55 }
 0x24e   : > { %5351 = vst [vmem:[#allocation74_spill] sm:$0xff] %v4313_v40  ;;  %v4341_v40 = vmul.f32 %v4083_v24, %v4083_v24  ;;  %v4353_v57 = vmul.f32 %v4133_v60, %v4133_v60  ;;  %v870_v58 = vmul.f32 %v3699_v32, %v850_v11 }
 0x24f   : > { %5352 = vst [vmem:[#allocation126_spill] sm:$0xff] %v4325_v14  ;;  %v891_v14 = vadd.f32 %v886_v55, %v3896_v33  ;;  %v899_v33 = vadd.f32 %v895_v36, %v3911_v39  ;;  %v5361_v55 = vld [vmem:[#allocation26_spill] sm:$0xff] }
 0x250   : > { %5353 = vst [vmem:[#allocation127_spill] sm:$0xff] %v4329_v56  ;;  %v5357_v56 = vld [vmem:[#allocation46_spill] sm:$0xff] }
 0x251   : > { %5354 = vst [vmem:[#allocation128_spill] sm:$0xff] %v4333_v38  ;;  %v856_v63 = vadd.f32 %v850_v11, %v5357_v56  ;;  %v4349_v38 = vmul.f32 %v4008_v10, %v4083_v24  ;;  %v925_v62 = vadd.f32 %v5361_v55, %v891_v14  ;;  %v4366_v10 = vmul.f32 %v4227_v1, %v4227_v1  ;;  %v5364_v24 = vld [vmem:[#allocation48_spill] sm:$0xff]  ;;  %v5365_v39 = vld [vmem:[#allocation86_spill] sm:$0xff] }
 0x252   : > { %5355 = vst [vmem:[#allocation129_spill] sm:$0xff] %v4337_v50  ;;  %v860_v50 = vmul.f32 %v850_v11, %v850_v11  ;;  %v874_v32 = vadd.f32 %v870_v58, %v5364_v24  ;;  %v4370_v11 = vpop.xlane.xlu1 %1261  ;;  %v5367_v36 = vld [vmem:[#allocation18_spill] sm:$0xff] }
 0x253   : > { %5356 = vst [vmem:[#allocation130_spill] sm:$0xff] %v4341_v40  ;;  %v909_v40 = vadd.f32 %v905_v9, %v3925_v31  ;;  %v890_v56 = vadd.f32 %v5347_v4, %v856_v63  ;;  %v933_v31 = vadd.f32 %v5365_v39, %v899_v33  ;;  %v5366_v9 = vld [vmem:[#allocation87_spill] sm:$0xff]  ;;  %v959_v63 = vadd.f32 %v5367_v36, %v925_v62  ;;  %v5368_v4 = vld [vmem:[#allocation20_spill] sm:$0xff]  ;;  %v5371_v33 = vld [vmem:[#allocation14_spill] sm:$0xff] }
 0x254   : > { %5359 = vst [vmem:[#allocation46_spill] sm:$0xff] %v4349_v38  ;;  %v908_v24 = vadd.f32 %v904_v6, %v874_v32  ;;  %v5372_v39 = vld [vmem:[#allocation77_spill] sm:$0xff]  ;;  %v1569_v36 = vadd.f32 %v5298_v0, %v4236_v47  ;;  %v5375_v6 = vld [vmem:[#allocation80_spill] sm:$0xff]  ;;  %v1090_v32 = vpop.xlane.xlu2 %1089  ;;  %v1577_v47 = vadd.f32 %v4101_v12, %v4263_v3 }
 0x255   : > { %5360 = vst [vmem:[#allocation68_spill] sm:$0xff] %v4353_v57  ;;  %v5363_v57 = vld [vmem:[#allocation47_spill] sm:$0xff]  ;;  %v943_v14 = vadd.f32 %v5366_v9, %v909_v40  ;;  %v924_v55 = vadd.f32 %v5368_v4, %v890_v56  ;;  %v967_v40 = vadd.f32 %v5371_v33, %v933_v31  ;;  %v5373_v9 = vld [vmem:[#allocation16_spill] sm:$0xff]  ;;  %v993_v61 = vadd.f32 %v5277_v29, %v959_v63  ;;  %v5378_v0 = vld [vmem:[#allocation69_spill] sm:$0xff] }
 0x256   : > { %5362 = vst [vmem:[#allocation26_spill] sm:$0xff] %v4362_v49  ;;  %v864_v38 = vadd.f32 %v860_v50, %v5363_v57  ;;  %v4379_v49 = vmul.f32 %v3751_v54, %v4227_v1  ;;  %v4383_v50 = vmul.f32 %v4229_v27, %v4229_v27  ;;  %v5370_v57 = vld [vmem:[#allocation13_spill] sm:$0xff]  ;;  %v4394_v4 = vmul.f32 %v3964_v59, %v4229_v27  ;;  %v5374_v54 = vld [vmem:[#allocation79_spill] sm:$0xff]  ;;  %v5377_v33 = vld [vmem:[#allocation36_spill] sm:$0xff] }
 0x257   : > { %1805 = vadd.xlane.f32.xlu0 %v5370_v57  ;;  %v977_v62 = vadd.f32 %v5372_v39, %v943_v14  ;;  %v958_v56 = vadd.f32 %v5373_v9, %v924_v55  ;;  %v4398_v57 = vpop.xlane.xlu0 %1431  ;;  %v5376_v31 = vld [vmem:[#allocation27_spill] sm:$0xff]  ;;  %v1001_v55 = vadd.f32 %v3997_v19, %v967_v40  ;;  %v1027_v63 = vadd.f32 %v5339_v42, %v993_v61  ;;  %v5380_v39 = vld [vmem:[#allocation76_spill] sm:$0xff] }
 0x258   : > { %v898_v58 = vadd.f32 %v894_v52, %v864_v38  ;;  %v942_v38 = vadd.f32 %v5375_v6, %v908_v24  ;;  %1769 = vadd.xlane.f32.xlu1 %v5378_v0  ;;  %v5382_v6 = vld [vmem:[#allocation91_spill] sm:$0xff]  ;;  %v1099_v3 = vmul.f32 %v1090_v32, %v1090_v32 }
 0x259   : > { %v992_v14 = vadd.f32 %v5376_v31, %v958_v56  ;;  %v1011_v29 = vadd.f32 %v5377_v33, %v977_v62  ;;  %v1035_v19 = vadd.f32 %v4257_v26, %v1001_v55  ;;  %v1061_v42 = vadd.f32 %v3973_v41, %v1027_v63  ;;  %v5381_v62 = vld [vmem:[#allocation90_spill] sm:$0xff]  ;;  %v5384_v63 = vld [vmem:[#allocation75_spill] sm:$0xff] }
 0x25a   : > { %v932_v52 = vadd.f32 %v5374_v54, %v898_v58  ;;  %v4409_v54 = vmul.f32 %v4279_v17, %v4279_v17  ;;  %v5379_v58 = vld [vmem:[#allocation15_spill] sm:$0xff]  ;;  %v976_v9 = vadd.f32 %v5380_v39, %v942_v38  ;;  %v1109_v31 = vmul.f32 %v3892_v51, %v1090_v32  ;;  %v4420_v33 = vpop.xlane.xlu1 %1465 }
 0x25b   : > { %v1026_v56 = vadd.f32 %v5301_v13, %v992_v14  ;;  %v1045_v40 = vadd.f32 %v4261_v48, %v1011_v29  ;;  %v1069_v38 = vadd.f32 %v4317_v21, %v1035_v19  ;;  %v1095_v26 = vadd.f32 %v1090_v32, %v1061_v42  ;;  %v5383_v14 = vld [vmem:[#allocation11_spill] sm:$0xff] }
 0x25c   : > { %v966_v24 = vadd.f32 %v5379_v58, %v932_v52  ;;  %v1010_v12 = vadd.f32 %v5382_v6, %v976_v9  ;;  %1801 = vadd.xlane.f32.xlu2 %v5383_v14  ;;  %v1587_v41 = vadd.f32 %v4105_v7, %v4277_v44  ;;  %v4430_v48 = vmul.f32 %v3871_v2, %v4279_v17  ;;  %v1294_v44 = vpop.xlane.xlu2 %1293  ;;  %v5386_v9 = vld [vmem:[#allocation35_spill] sm:$0xff]  ;;  %v5392_v6 = vld [vmem:[#allocation96_spill] sm:$0xff] }
 0x25d   : > { %v1060_v52 = vadd.f32 %v5338_v23, %v1026_v56  ;;  %v1079_v13 = vadd.f32 %v4321_v30, %v1045_v40  ;;  %v1103_v21 = vadd.f32 %v1099_v3, %v1069_v38  ;;  %v1129_v32 = vadd.f32 %v5297_v28, %v1095_v26  ;;  %v4448_v28 = vld [vmem:[%s5039_s2 + $0x1b] ss:$0 sm:$0xff]  ;;  %v5390_v40 = vld [vmem:[#allocation101_spill] sm:$0xff]  ;;  %v5394_v38 = vld [vmem:[#allocation107_spill] sm:$0xff] }
 0x25e   : > { %v1000_v61 = vadd.f32 %v5381_v62, %v966_v24  ;;  %v1044_v29 = vadd.f32 %v4127_v45, %v1010_v12  ;;  %v1603_v2 = vadd.f32 %v5300_v46, %v1569_v36  ;;  %v1611_v58 = vadd.f32 %v4114_v37, %v1577_v47  ;;  %v5385_v24 = vld [vmem:[#allocation31_spill] sm:$0xff]  ;;  %v5389_v47 = vld [vmem:[#allocation34_spill] sm:$0xff]  ;;  %v5391_v62 = vld [vmem:[#allocation40_spill] sm:$0xff] }
 0x25f   : > { %1839 = vadd.xlane.f32.xlu0 %v5384_v63  ;;  %v1094_v23 = vadd.f32 %v3927_v35, %v1060_v52  ;;  %v1113_v30 = vadd.f32 %v1109_v31, %v1079_v13  ;;  %v1137_v39 = vadd.f32 %v4091_v15, %v1103_v21  ;;  %v1163_v56 = vadd.f32 %v5386_v9, %v1129_v32  ;;  %v5393_v3 = vld [vmem:[#allocation97_spill] sm:$0xff]  ;;  %v4469_v52 = vld [vmem:[%s5039_s2 + $0x1c] ss:$0 sm:$0xff]  ;;  %v5395_v26 = vld [vmem:[#allocation108_spill] sm:$0xff] }
 0x260   : > { %v1034_v55 = vadd.f32 %v4123_v43, %v1000_v61  ;;  %v1078_v7 = vadd.f32 %v4253_v22, %v1044_v29  ;;  %v1630_v43 = vpop.xlane.xlu0 %1629  ;;  %v4455_v22 = vmul.f32 %v4370_v11, %v4370_v11  ;;  %v1621_v15 = vadd.f32 %v4118_v16, %v1587_v41  ;;  %v5396_v29 = vld [vmem:[#allocation67_spill] sm:$0xff]  ;;  %v5397_v63 = vld [vmem:[#allocation24_spill] sm:$0xff] }
 0x261   : > { %v1128_v45 = vadd.f32 %v5385_v24, %v1094_v23  ;;  %v1147_v35 = vadd.f32 %v4095_v8, %v1113_v30  ;;  %v5388_v8 = vld [vmem:[#allocation25_spill] sm:$0xff]  ;;  %v1171_v19 = vadd.f32 %v5389_v47, %v1137_v39  ;;  %v1197_v61 = vadd.f32 %v5391_v62, %v1163_v56  ;;  %v5404_v47 = vld [vmem:[#allocation130_spill] sm:$0xff]  ;;  %v5406_v62 = vld [vmem:[#allocation51_spill] sm:$0xff] }
 0x262   : > { %v1068_v0 = vadd.f32 %v4247_v34, %v1034_v55  ;;  %v5387_v34 = vld [vmem:[#allocation70_spill] sm:$0xff]  ;;  %v1112_v37 = vadd.f32 %v4304_v20, %v1078_v7  ;;  %v4464_v31 = vadd.f32 %v1630_v43, %v1603_v2  ;;  %v1641_v20 = vmul.f32 %v1630_v43, %v1630_v43  ;;  %v4471_v16 = vpop.xlane.xlu1 %1663 }
 0x263   : > { %1803 = vadd.xlane.f32.xlu1 %v5387_v34  ;;  %v1162_v36 = vadd.f32 %v5388_v8, %v1128_v45  ;;  %v1181_v42 = vadd.f32 %v5390_v40, %v1147_v35  ;;  %v1205_v13 = vadd.f32 %v5394_v38, %v1171_v19  ;;  %v1231_v41 = vadd.f32 %v5343_v18, %v1197_v61  ;;  %v5399_v2 = vld [vmem:[#allocation78_spill] sm:$0xff]  ;;  %v5400_v45 = vld [vmem:[#allocation113_spill] sm:$0xff]  ;;  %v5401_v35 = vld [vmem:[#allocation84_spill] sm:$0xff] }
 0x264   : > { %v1102_v46 = vadd.f32 %v4300_v53, %v1068_v0  ;;  %v1146_v53 = vadd.f32 %v5393_v3, %v1112_v37  ;;  %v1651_v55 = vmul.f32 %v4448_v28, %v1630_v43  ;;  %1835 = vadd.xlane.f32.xlu2 %v5396_v29  ;;  %v1303_v21 = vmul.f32 %v1294_v44, %v1294_v44  ;;  %v5398_v0 = vld [vmem:[#allocation106_spill] sm:$0xff]  ;;  %v888_v56 = vpop.xlane.xlu2 %887  ;;  %v5403_v37 = vld [vmem:[#allocation33_spill] sm:$0xff]  ;;  %v5412_v29 = vld [vmem:[#allocation52_spill] sm:$0xff] }
 0x265   : > { %v1215_v14 = vadd.f32 %v5395_v26, %v1181_v42  ;;  %v1313_v30 = vmul.f32 %v4031_v25, %v1294_v44  ;;  %v4480_v32 = vadd.f32 %v1641_v20, %v1611_v58  ;;  %v1239_v7 = vadd.f32 %v4275_v5, %v1205_v13  ;;  %v5402_v34 = vld [vmem:[#allocation30_spill] sm:$0xff] }
 0x266   : > { %v1136_v12 = vadd.f32 %v5392_v6, %v1102_v46  ;;  %v1265_v39 = vadd.f32 %v5400_v45, %v1231_v41  ;;  %v1655_v18 = vadd.f32 %v1651_v55, %v1621_v15  ;;  %v1180_v43 = vadd.f32 %v5401_v35, %v1146_v53  ;;  %v5405_v5 = vld [vmem:[#allocation46_spill] sm:$0xff]  ;;  %v5408_v6 = vld [vmem:[#allocation37_spill] sm:$0xff]  ;;  %v5409_v53 = vld [vmem:[#allocation19_spill] sm:$0xff] }
 0x267   : > { %1873 = vadd.xlane.f32.xlu0 %v5398_v0  ;;  %v1249_v24 = vadd.f32 %v5399_v2, %v1215_v14  ;;  %v1685_v9 = vmul.f32 %v4469_v52, %v4471_v16  ;;  %v1196_v46 = vadd.f32 %v5402_v34, %v1162_v36  ;;  %v1273_v19 = vadd.f32 %v5404_v47, %v1239_v7  ;;  %v5407_v15 = vld [vmem:[#allocation98_spill] sm:$0xff]  ;;  %v5410_v14 = vld [vmem:[#allocation28_spill] sm:$0xff]  ;;  %v5417_v35 = vld [vmem:[#allocation89_spill] sm:$0xff] }
 0x268   : > { %v1170_v23 = vadd.f32 %v5397_v63, %v1136_v12  ;;  %v4491_v8 = vpop.xlane.xlu0 %1529  ;;  %v1299_v42 = vadd.f32 %v1294_v44, %v1265_v39  ;;  %v892_v61 = vadd.f32 %v888_v56, %v5406_v62  ;;  %v4499_v12 = vmul.f32 %v5408_v6, %v4370_v11  ;;  %v5411_v44 = vld [vmem:[#allocation73_spill] sm:$0xff]  ;;  %v5414_v7 = vld [vmem:[#allocation54_spill] sm:$0xff]  ;;  %v5426_v6 = vld [vmem:[#allocation83_spill] sm:$0xff] }
 0x269   : > { %v1283_v40 = vadd.f32 %v5405_v5, %v1249_v24  ;;  %v4501_v3 = vadd.f32 %v1685_v9, %v1655_v18  ;;  %v896_v36 = vmul.f32 %v888_v56, %v888_v56  ;;  %v906_v20 = vmul.f32 %v5409_v53, %v888_v56  ;;  %v5416_v18 = vld [vmem:[#allocation44_spill] sm:$0xff]  ;;  %v5419_v34 = vld [vmem:[#allocation94_spill] sm:$0xff]  ;;  %v5422_v5 = vld [vmem:[#allocation71_spill] sm:$0xff] }
 0x26a   : > { %v1204_v58 = vadd.f32 %v5403_v37, %v1170_v23  ;;  %v1307_v38 = vadd.f32 %v1303_v21, %v1273_v19  ;;  %v1333_v26 = vadd.f32 %v4229_v27, %v1299_v42  ;;  %v926_v41 = vadd.f32 %v5410_v14, %v892_v61  ;;  %v5413_v23 = vld [vmem:[#allocation95_spill] sm:$0xff]  ;;  %v4510_v24 = vpop.xlane.xlu1 %1563  ;;  %v5415_v21 = vld [vmem:[#allocation21_spill] sm:$0xff]  ;;  %v5418_v9 = vld [vmem:[#allocation92_spill] sm:$0xff] }
 0x26b   : > { %1871 = vadd.xlane.f32.xlu1 %v5407_v15  ;;  %v1317_v13 = vadd.f32 %v1313_v30, %v1283_v40  ;;  %v900_v55 = vadd.f32 %v896_v36, %v5411_v44  ;;  %v910_v63 = vadd.f32 %v906_v20, %v5412_v29  ;;  %v1214_v0 = vadd.f32 %v5413_v23, %v1180_v43  ;;  %v5420_v47 = vld [vmem:[#allocation50_spill] sm:$0xff]  ;;  %v5421_v19 = vld [vmem:[#allocation72_spill] sm:$0xff]  ;;  %v5427_v53 = vld [vmem:[#allocation65_spill] sm:$0xff] }
 0x26c   : > { %v1230_v2 = vadd.f32 %v5414_v7, %v1196_v46  ;;  %v1341_v45 = vadd.f32 %v4383_v50, %v1307_v38  ;;  %v960_v30 = vadd.f32 %v5415_v21, %v926_v41  ;;  %v1238_v27 = vadd.f32 %v5416_v18, %v1204_v58  ;;  %1869 = vadd.xlane.f32.xlu2 %v5417_v35  ;;  %v5423_v40 = vld [vmem:[#allocation64_spill] sm:$0xff]  ;;  %v5424_v58 = vld [vmem:[#allocation122_spill] sm:$0xff]  ;;  %v5428_v38 = vld [vmem:[#allocation39_spill] sm:$0xff]  ;;  %v1092_v14 = vpop.xlane.xlu2 %1091 }
 0x26d   : > { %v1351_v39 = vadd.f32 %v4394_v4, %v1317_v13  ;;  %v934_v56 = vadd.f32 %v5418_v9, %v900_v55  ;;  %v944_v37 = vadd.f32 %v5419_v34, %v910_v63  ;;  %v1248_v43 = vadd.f32 %v5420_v47, %v1214_v0  ;;  %v5425_v61 = vld [vmem:[#allocation82_spill] sm:$0xff]  ;;  %v5430_v29 = vld [vmem:[#allocation109_spill] sm:$0xff]  ;;  %v5431_v23 = vld [vmem:[#allocation55_spill] sm:$0xff] }
 0x26e   : > { %v1264_v46 = vadd.f32 %v5421_v19, %v1230_v2  ;;  %v1272_v50 = vadd.f32 %v5423_v40, %v1238_v27  ;;  %v4525_v4 = vmul.f32 %v4491_v8, %v4491_v8  ;;  %v4529_v42 = vmul.f32 %v5424_v58, %v4491_v8  ;;  %v5429_v44 = vld [vmem:[#allocation126_spill] sm:$0xff]  ;;  %v5432_v2 = vld [vmem:[#allocation127_spill] sm:$0xff]  ;;  %v5433_v18 = vld [vmem:[#allocation56_spill] sm:$0xff] }
 0x26f   : > { %1837 = vadd.xlane.f32.xlu0 %v5422_v5  ;;  %v4533_v62 = vmul.f32 %v4510_v24, %v4510_v24  ;;  %v968_v15 = vadd.f32 %v5425_v61, %v934_v56  ;;  %v978_v36 = vadd.f32 %v5426_v6, %v944_v37  ;;  %v1282_v20 = vadd.f32 %v5427_v53, %v1248_v43  ;;  %v5434_v35 = vld [vmem:[#allocation114_spill] sm:$0xff]  ;;  %v5435_v56 = vld [vmem:[#allocation115_spill] sm:$0xff]  ;;  %v5436_v37 = vld [vmem:[#allocation116_spill] sm:$0xff] }
 0x270   : > { %v1298_v13 = vadd.f32 %v5428_v38, %v1264_v46  ;;  %v1430_v41 = vpop.xlane.xlu0 %1429  ;;  %v1306_v55 = vadd.f32 %v5429_v44, %v1272_v50  ;;  %v4542_v63 = vmul.f32 %v5430_v29, %v4510_v24  ;;  %v994_v0 = vadd.f32 %v5431_v23, %v960_v30  ;;  %v5437_v43 = vld [vmem:[#allocation29_spill] sm:$0xff]  ;;  %v5438_v5 = vld [vmem:[#allocation62_spill] sm:$0xff]  ;;  %v5441_v53 = vld [vmem:[#allocation88_spill] sm:$0xff] }
 0x271   : > { %v1100_v7 = vmul.f32 %v1092_v14, %v1092_v14  ;;  %v1316_v21 = vadd.f32 %v5432_v2, %v1282_v20  ;;  %v1002_v9 = vadd.f32 %v5434_v35, %v968_v15  ;;  %v1012_v34 = vadd.f32 %v5435_v56, %v978_v36  ;;  %v5439_v50 = vld [vmem:[#allocation117_spill] sm:$0xff]  ;;  %v5440_v30 = vld [vmem:[#allocation38_spill] sm:$0xff]  ;;  %v5443_v15 = vld [vmem:[#allocation103_spill] sm:$0xff] }
 0x272   : > { %v1332_v27 = vadd.f32 %v5433_v18, %v1298_v13  ;;  %v1340_v47 = vadd.f32 %v5436_v37, %v1306_v55  ;;  %v1028_v19 = vadd.f32 %v5437_v43, %v994_v0  ;;  %v1110_v46 = vmul.f32 %v3892_v51, %v1092_v14  ;;  %v5442_v38 = vld [vmem:[#allocation74_spill] sm:$0xff]  ;;  %v1464_v44 = vpop.xlane.xlu1 %1463  ;;  %v5444_v55 = vld [vmem:[#allocation53_spill] sm:$0xff]  ;;  %v5445_v0 = vld [vmem:[#allocation123_spill] sm:$0xff] }
 0x273   : > { %v1367_v40 = vadd.f32 %v5438_v5, %v1333_v26  ;;  %v1350_v61 = vadd.f32 %v5439_v50, %v1316_v21  ;;  %v1036_v20 = vadd.f32 %v5441_v53, %v1002_v9  ;;  %v1046_v13 = vadd.f32 %v5442_v38, %v1012_v34  ;;  %v5446_v51 = vld [vmem:[#allocation85_spill] sm:$0xff]  ;;  %v5447_v26 = vld [vmem:[#allocation104_spill] sm:$0xff]  ;;  %v5449_v34 = vld [vmem:[#allocation99_spill] sm:$0xff] }
 0x274   : > { %v1366_v6 = vadd.f32 %v5440_v30, %v1332_v27  ;;  %v1374_v23 = vadd.f32 %v5443_v15, %v1340_v47  ;;  %v1062_v36 = vadd.f32 %v4279_v17, %v1028_v19  ;;  %v1375_v2 = vadd.f32 %v5444_v55, %v1341_v45  ;;  %1903 = vadd.xlane.f32.xlu2 %v5446_v51  ;;  %v5448_v21 = vld [vmem:[#allocation32_spill] sm:$0xff] }
 0x275   : > { %v1385_v18 = vadd.f32 %v5445_v0, %v1351_v39  ;;  %v1384_v35 = vadd.f32 %v5447_v26, %v1350_v61  ;;  %v1070_v27 = vadd.f32 %v4409_v54, %v1036_v20  ;;  %v1080_v9 = vadd.f32 %v4430_v48, %v1046_v13  ;;  %v5450_v45 = vld [vmem:[#allocation100_spill] sm:$0xff]  ;;  %v5451_v39 = vld [vmem:[#allocation58_spill] sm:$0xff]  ;;  %v1296_v61 = vpop.xlane.xlu2 %1295  ;;  %v5453_v20 = vld [vmem:[#allocation61_spill] sm:$0xff] }
 0x276   : > { %v1400_v56 = vadd.f32 %v5448_v21, %v1366_v6  ;;  %v1408_v37 = vadd.f32 %v5449_v34, %v1374_v23  ;;  %v1096_v43 = vadd.f32 %v1092_v14, %v1062_v36  ;;  %v1401_v47 = vadd.f32 %v4227_v1, %v1367_v40  ;;  %v5452_v6 = vld [vmem:[#allocation22_spill] sm:$0xff]  ;;  %v5454_v13 = vld [vmem:[#allocation121_spill] sm:$0xff]  ;;  %v5455_v40 = vld [vmem:[#allocation23_spill] sm:$0xff] }
 0x277   : > { %v1409_v17 = vadd.f32 %v4366_v10, %v1375_v2  ;;  %v1418_v19 = vadd.f32 %v5450_v45, %v1384_v35  ;;  %v1104_v50 = vadd.f32 %v1100_v7, %v1070_v27  ;;  %v1114_v30 = vadd.f32 %v1110_v46, %v1080_v9  ;;  %v5456_v15 = vld [vmem:[#allocation12_spill] sm:$0xff]  ;;  %v5457_v36 = vld [vmem:[#allocation66_spill] sm:$0xff]  ;;  %v5459_v2 = vld [vmem:[#allocation41_spill] sm:$0xff] }
 0x278   : > { %v1434_v5 = vadd.f32 %v5451_v39, %v1400_v56  ;;  %v4571_v53 = vpop.xlane.xlu0 %1533  ;;  %v1442_v54 = vadd.f32 %v5452_v6, %v1408_v37  ;;  %v1130_v48 = vadd.f32 %v5453_v20, %v1096_v43  ;;  %v1419_v38 = vadd.f32 %v4379_v49, %v1385_v18  ;;  %v5458_v7 = vld [vmem:[#allocation124_spill] sm:$0xff]  ;;  %v5460_v26 = vld [vmem:[#allocation102_spill] sm:$0xff]  ;;  %v5461_v21 = vld [vmem:[#allocation125_spill] sm:$0xff] }
 0x279   : > { %v1435_v14 = vadd.f32 %v1430_v41, %v1401_v47  ;;  %v1452_v1 = vadd.f32 %v5454_v13, %v1418_v19  ;;  %v1138_v23 = vadd.f32 %v5456_v15, %v1104_v50  ;;  %v1148_v55 = vadd.f32 %v5457_v36, %v1114_v30  ;;  %v5462_v18 = vld [vmem:[#allocation110_spill] sm:$0xff]  ;;  %v5463_v9 = vld [vmem:[#allocation112_spill] sm:$0xff] }
 0x27a   : > { %v1468_v10 = vadd.f32 %v5455_v40, %v1434_v5  ;;  %v1476_v46 = vadd.f32 %v5458_v7, %v1442_v54  ;;  %v1164_v0 = vadd.f32 %v5459_v2, %v1130_v48  ;;  %v1439_v51 = vmul.f32 %v1430_v41, %v1430_v41  ;;  %v4587_v37 = vpop.xlane.xlu1 %1567  ;;  %v5464_v43 = vld [vmem:[#allocation68_spill] sm:$0xff]  ;;  %v5465_v5 = vld [vmem:[#allocation43_spill] sm:$0xff]  ;;  %v5466_v50 = vld [vmem:[#allocation26_spill] sm:$0xff] }
 0x27b   : > { %v1449_v35 = vmul.f32 %v5460_v26, %v1430_v41  ;;  %v1486_v56 = vadd.f32 %v5461_v21, %v1452_v1  ;;  %v1172_v27 = vadd.f32 %v5462_v18, %v1138_v23  ;;  %v1182_v34 = vadd.f32 %v5463_v9, %v1148_v55  ;;  %v5468_v48 = vld [vmem:[#allocation57_spill] sm:$0xff]  ;;  %v5469_v1 = vld [vmem:[#allocation119_spill] sm:$0xff]  ;;  %v5472_v7 = vld [vmem:[#allocation128_spill] sm:$0xff] }
 0x27c   : > { %v1502_v49 = vadd.f32 %v4133_v60, %v1468_v10  ;;  %v1510_v47 = vadd.f32 %v5464_v43, %v1476_v46  ;;  %v1443_v45 = vadd.f32 %v1439_v51, %v1409_v17  ;;  %v4590_v39 = vadd.f32 %v1464_v44, %v1435_v14  ;;  %1907 = vadd.xlane.f32.xlu2 %v5465_v5  ;;  %v5467_v60 = vld [vmem:[#allocation118_spill] sm:$0xff]  ;;  %v5470_v10 = vld [vmem:[#allocation120_spill] sm:$0xff]  ;;  %v5473_v2 = vld [vmem:[#allocation129_spill] sm:$0xff] }
 0x27d   : > { %v1453_v19 = vadd.f32 %v1449_v35, %v1419_v38  ;;  %v1520_v41 = vadd.f32 %v5466_v50, %v1486_v56  ;;  %v1473_v6 = vmul.f32 %v1464_v44, %v1464_v44  ;;  %v1483_v54 = vmul.f32 %v5467_v60, %v1464_v44  ;;  %v5475_v35 = vld [vmem:[#allocation42_spill] sm:$0xff] }
 0x27e   : > { %v1536_v30 = vadd.f32 %v4491_v8, %v1502_v49  ;;  %v1544_v20 = vadd.f32 %v4525_v4, %v1510_v47  ;;  %v1198_v13 = vadd.f32 %v5468_v48, %v1164_v0  ;;  %v1206_v40 = vadd.f32 %v5469_v1, %v1172_v27  ;;  %v1500_v8 = vpop.xlane.xlu2 %1499  ;;  %v5471_v4 = vld [vmem:[#allocation105_spill] sm:$0xff] }
 0x27f   : > { %v1216_v17 = vadd.f32 %v5470_v10, %v1182_v34  ;;  %v1554_v38 = vadd.f32 %v4529_v42, %v1520_v41  ;;  %v4602_v15 = vadd.f32 %v1473_v6, %v1443_v45  ;;  %v4604_v23 = vadd.f32 %v1483_v54, %v1453_v19  ;;  %v5476_v27 = vld [vmem:[#allocation45_spill] sm:$0xff] }
 0x280   : > { %v1570_v14 = vadd.f32 %v4510_v24, %v1536_v30  ;;  %v4606_v36 = vpop.xlane.xlu0 %1731  ;;  %v4609_v44 = vadd.f32 %v4533_v62, %v1544_v20  ;;  %v1232_v55 = vadd.f32 %v5471_v4, %v1198_v13  ;;  %v1240_v46 = vadd.f32 %v5472_v7, %v1206_v40  ;;  %v5474_v24 = vld [vmem:[#allocation63_spill] sm:$0xff]  ;;  %v5477_v19 = vld [vmem:[#allocation49_spill] sm:$0xff] }
 0x281   : > { %v1250_v0 = vadd.f32 %v5473_v2, %v1216_v17  ;;  %v1588_v42 = vadd.f32 %v4542_v63, %v1554_v38  ;;  %v1304_v51 = vmul.f32 %v1296_v61, %v1296_v61  ;;  %v1899_v21 = vmul.f32 %v5475_v35, %v5474_v24  ;;  %v5480_v54 = vld [vmem:[#allocation81_spill] sm:$0xff] }
 0x282   : > { %v1266_v56 = vadd.f32 %v4370_v11, %v1232_v55  ;;  %v1274_v49 = vadd.f32 %v4455_v22, %v1240_v46  ;;  %v1314_v62 = vmul.f32 %v4031_v25, %v1296_v61  ;;  %v1338_v9 = vmul.f32 %v5476_v27, %v5476_v27  ;;  %v4623_v34 = vpop.xlane.xlu1 %1765  ;;  %v4632_v22 = vld [vmem:[%s5039_s2 + $0x1d] ss:$0 sm:$0xff]  ;;  %v5478_v25 = vld [vmem:[#allocation93_spill] sm:$0xff] }
 0x283   : > { %v1284_v18 = vadd.f32 %v4499_v12, %v1250_v0  ;;  %v1348_v63 = vmul.f32 %v3964_v59, %v5476_v27  ;;  %v1372_v11 = vmul.f32 %v5477_v19, %v5477_v19  ;;  %v1382_v12 = vmul.f32 %v5478_v25, %v5477_v19  ;;  %v5479_v59 = vld [vmem:[#allocation59_spill] sm:$0xff] }
 0x284   : > { %v1300_v43 = vadd.f32 %v1296_v61, %v1266_v56  ;;  %v1308_v47 = vadd.f32 %v1304_v51, %v1274_v49  ;;  %1905 = vadd.xlane.f32.xlu2 %v1899_v21  ;;  %v1406_v61 = vmul.f32 %v5479_v59, %v5479_v59  ;;  %v1416_v20 = vmul.f32 %v5480_v54, %v5479_v59 }
 0x285   : > { %v1318_v45 = vadd.f32 %v1314_v62, %v1284_v18  ;;  %v1440_v40 = vmul.f32 %v4398_v57, %v4398_v57  ;;  %v1450_v17 = vmul.f32 %v5460_v26, %v4398_v57  ;;  %v1474_v7 = vmul.f32 %v4420_v33, %v4420_v33  ;;  %v5481_v18 = vld [vmem:[#allocation60_spill] sm:$0xff] }
 0x286   : > { %v1334_v5 = vadd.f32 %v5476_v27, %v1300_v43  ;;  %v1342_v50 = vadd.f32 %v1338_v9, %v1308_v47  ;;  %v4639_v30 = vpop.xlane.xlu2 %1697  ;;  %v1484_v2 = vmul.f32 %v5467_v60, %v4420_v33  ;;  %v1508_v35 = vmul.f32 %v1500_v8, %v1500_v8 }
 0x287   : > { %v1352_v41 = vadd.f32 %v1348_v63, %v1318_v45  ;;  %v1719_v10 = vmul.f32 %v4632_v22, %v4639_v30  ;;  %v1518_v62 = vmul.f32 %v5481_v18, %v1500_v8  ;;  %v1552_v27 = vmul.f32 %v5424_v58, %v4571_v53 }
 0x288   : > { %v4641_v6 = vpop.xlane.xlu0 %1631  ;;  %v1368_v48 = vadd.f32 %v5477_v19, %v1334_v5  ;;  %v1376_v13 = vadd.f32 %v1372_v11, %v1342_v50  ;;  %v1576_v11 = vmul.f32 %v4587_v37, %v4587_v37  ;;  %v1586_v50 = vmul.f32 %v5430_v29, %v4587_v37 }
 0x289   : > { %v1386_v1 = vadd.f32 %v1382_v12, %v1352_v41  ;;  %v4656_v46 = vadd.f32 %v1719_v10, %v4501_v3  ;;  %v1542_v3 = vmul.f32 %v4571_v53, %v4571_v53 }
 0x28a   : > { %v1402_v38 = vadd.f32 %v5479_v59, %v1368_v48  ;;  %v1410_v4 = vadd.f32 %v1406_v61, %v1376_v13  ;;  %v4661_v21 = vpop.xlane.xlu1 %1665 }
 0x28b   : > { %v1420_v55 = vadd.f32 %v1416_v20, %v1386_v1 }
 0x28c   : > { %v1436_v0 = vadd.f32 %v4398_v57, %v1402_v38  ;;  %v1444_v51 = vadd.f32 %v1440_v40, %v1410_v4 }
 0x28d   : > { %v1454_v24 = vadd.f32 %v1450_v17, %v1420_v55 }
 0x28e   : > { %v1470_v26 = vadd.f32 %v4420_v33, %v1436_v0  ;;  %v1478_v56 = vadd.f32 %v1474_v7, %v1444_v51  ;;  %v1598_v60 = vpop.xlane.xlu2 %1597  ;;  %v5482_v33 = vld [vmem:[#allocation111_spill] sm:$0xff] }
 0x28f   : > { %v1488_v49 = vadd.f32 %v1484_v2, %v1454_v24  ;;  %v4671_v47 = vadd.f32 %v1598_v60, %v1570_v14  ;;  %v1608_v45 = vmul.f32 %v1598_v60, %v1598_v60  ;;  %v1618_v19 = vmul.f32 %v5482_v33, %v1598_v60 }
 0x290   : > { %v4669_v9 = vpop.xlane.xlu0 %1531  ;;  %v1504_v57 = vadd.f32 %v1500_v8, %v1470_v26  ;;  %v1512_v63 = vadd.f32 %v1508_v35, %v1478_v56  ;;  %v1652_v8 = vmul.f32 %v4448_v28, %v4641_v6  ;;  %v1709_v60 = vmul.f32 %v4639_v30, %v4639_v30 }
 0x291   : > { %v1522_v43 = vadd.f32 %v1518_v62, %v1488_v49  ;;  %v4682_v41 = vadd.f32 %v1608_v45, %v4609_v44  ;;  %v1622_v14 = vadd.f32 %v1618_v19, %v1588_v42  ;;  %v4740_v45 = vld [vmem:[%s5039_s2 + $0x1e] ss:$0 sm:$0xff] }
 0x292   : > { %v1538_v25 = vadd.f32 %v4571_v53, %v1504_v57  ;;  %v1546_v12 = vadd.f32 %v1542_v3, %v1512_v63  ;;  %v1686_v53 = vmul.f32 %v4469_v52, %v4661_v21  ;;  %v4691_v48 = vpop.xlane.xlu1 %1565 }
 0x293   : > { %v1556_v5 = vadd.f32 %v1552_v27, %v1522_v43  ;;  %v1656_v54 = vadd.f32 %v1652_v8, %v1622_v14  ;;  %v1585_v4 = vmul.f32 %v5430_v29, %v4691_v48  ;;  %v1671_v27 = vadd.f32 %v4471_v16, %v4464_v31 }
 0x294   : > { %v4685_v59 = vadd.f32 %v4587_v37, %v1538_v25  ;;  %v4687_v61 = vadd.f32 %v1576_v11, %v1546_v12  ;;  %v1551_v37 = vmul.f32 %v5424_v58, %v4669_v9  ;;  %v1743_v31 = vmul.f32 %v4606_v36, %v4606_v36  ;;  %v4756_v12 = vld [vmem:[%s5039_s2 + $0x1f] ss:$0 sm:$0xff] }
 0x295   : > { %v1590_v20 = vadd.f32 %v1586_v50, %v1556_v5  ;;  %v1690_v1 = vadd.f32 %v1686_v53, %v1656_v54  ;;  %v1705_v43 = vadd.f32 %v4639_v30, %v1671_v27  ;;  %v1753_v30 = vmul.f32 %v4740_v45, %v4606_v36  ;;  %v4761_v50 = vld [vmem:[%s5039_s2 + $0x20] ss:$0 sm:$0xff] }
 0x296   : > { %v1498_v13 = vpop.xlane.xlu2 %1497 }
 0x297   : > { %v4694_v40 = vadd.f32 %v1498_v13, %v4590_v39  ;;  %v1507_v44 = vmul.f32 %v1498_v13, %v1498_v13  ;;  %v1517_v42 = vmul.f32 %v5481_v18, %v1498_v13  ;;  %v1675_v18 = vmul.f32 %v4471_v16, %v4471_v16 }
 0x298   : > { %v4697_v10 = vpop.xlane.xlu0 %1635  ;;  %v1739_v16 = vadd.f32 %v4606_v36, %v1705_v43  ;;  %v1757_v36 = vadd.f32 %v1753_v30, %v4656_v46 }
 0x299   : > { %v4702_v17 = vadd.f32 %v1507_v44, %v4602_v15  ;;  %v1521_v38 = vadd.f32 %v1517_v42, %v4604_v23  ;;  %v1654_v58 = vmul.f32 %v4448_v28, %v4697_v10  ;;  %v1679_v63 = vadd.f32 %v1675_v18, %v4480_v32 }
 0x29a   : > { %v4711_v51 = vpop.xlane.xlu1 %1669  ;;  %v1773_v53 = vadd.f32 %v4623_v34, %v1739_v16  ;;  %v1541_v16 = vmul.f32 %v4669_v9, %v4669_v9 }
 0x29b   : > { %v1555_v55 = vadd.f32 %v1551_v37, %v1521_v38  ;;  %v1688_v23 = vmul.f32 %v4469_v52, %v4711_v51  ;;  %v1713_v19 = vadd.f32 %v1709_v60, %v1679_v63  ;;  %v4779_v37 = vld [vmem:[%s5039_s2 + $0x21] ss:$0 sm:$0xff]  ;;  %v4800_v63 = vld [vmem:[%s5039_s2 + $0x2a] ss:$0 sm:$0xff] }
 0x29d   : > { %v1589_v7 = vadd.f32 %v1585_v4, %v1555_v55  ;;  %v1747_v5 = vadd.f32 %v1743_v31, %v1713_v19 }
 0x29e   : > { %v4707_v39 = vpop.xlane.xlu2 %1601 }
 0x29f   : > { %v1620_v2 = vmul.f32 %v5482_v33, %v4707_v39 }
 0x2a0   : > { %v1834_v0 = vpop.xlane.xlu0 %1833 }
 0x2a1   : > { %v1624_v15 = vadd.f32 %v1620_v2, %v1590_v20  ;;  %v1787_v20 = vmul.f32 %v4756_v12, %v4623_v34  ;;  %v1845_v55 = vmul.f32 %v1834_v0, %v1834_v0 }
 0x2a2   : > { %v1868_v56 = vpop.xlane.xlu1 %1867 }
 0x2a3   : > { %v1658_v24 = vadd.f32 %v1654_v58, %v1624_v15  ;;  %v1791_v38 = vadd.f32 %v1787_v20, %v1757_v36  ;;  %v1855_v58 = vmul.f32 %v4779_v37, %v1834_v0  ;;  %v1545_v36 = vadd.f32 %v1541_v16, %v4702_v17 }
 0x2a5   : > { %v4717_v35 = vadd.f32 %v1688_v23, %v1658_v24  ;;  %v4794_v24 = vld [vmem:[%s5039_s2 + $0x23] ss:$0 sm:$0xff] }
 0x2a6   : > { %v1800_v29 = vpop.xlane.xlu2 %1799 }
 0x2a7   : > { %v1811_v54 = vmul.f32 %v1800_v29, %v1800_v29  ;;  %v1821_v44 = vmul.f32 %v4761_v50, %v1800_v29 }
 0x2a8   : > { %v4719_v26 = vpop.xlane.xlu0 %1733 }
 0x2a9   : > { %v1744_v16 = vmul.f32 %v4719_v26, %v4719_v26 }
 0x2aa   : > { %v4742_v11 = vpop.xlane.xlu1 %1767 }
 0x2ae   : > { %v4721_v49 = vpop.xlane.xlu2 %1699 }
 0x2af   : > { %v1720_v62 = vmul.f32 %v4632_v22, %v4721_v49 }
 0x2b0   : > { %v4727_v3 = vpop.xlane.xlu0 %1633 }
 0x2b1   : > { %v4733_v57 = vadd.f32 %v1720_v62, %v1690_v1  ;;  %v1807_v1 = vadd.f32 %v1800_v29, %v1773_v53  ;;  %v1879_v29 = vmul.f32 %v1868_v56, %v1868_v56 }
 0x2b2   : > { %v4781_v46 = vpop.xlane.xlu1 %1667 }
 0x2b3   : > { %v1841_v2 = vadd.f32 %v1834_v0, %v1807_v1 }
 0x2b5   : > { %v1875_v62 = vadd.f32 %v1868_v56, %v1841_v2 }
 0x2b6   : > { %v4744_v25 = vpop.xlane.xlu2 %1599 }
 0x2b7   : > { %v1619_v32 = vmul.f32 %v5482_v33, %v4744_v25  ;;  %v1777_v33 = vmul.f32 %v4623_v34, %v4623_v34  ;;  %v4786_v34 = vld [vmem:[%s5039_s2 + $0x22] ss:$0 sm:$0xff]  ;;  %v1609_v17 = vmul.f32 %v4744_v25, %v4744_v25 }
 0x2b8   : > { %v4765_v14 = vpop.xlane.xlu0 %1737  ;;  %v1889_v27 = vmul.f32 %v4786_v34, %v1868_v56  ;;  %v1642_v56 = vmul.f32 %v4641_v6, %v4641_v6 }
 0x2b9   : > { %v4763_v8 = vadd.f32 %v1619_v32, %v1589_v7  ;;  %v1781_v13 = vadd.f32 %v1777_v33, %v1747_v5  ;;  %v1825_v7 = vadd.f32 %v1821_v44, %v1791_v38  ;;  %v1537_v33 = vadd.f32 %v4669_v9, %v4694_v40 }
 0x2ba   : > { %v4810_v53 = vpop.xlane.xlu1 %1701  ;;  %v1638_v44 = vadd.f32 %v4641_v6, %v4671_v47  ;;  %v1646_v38 = vadd.f32 %v1642_v56, %v4682_v41  ;;  %v1610_v9 = vmul.f32 %v4707_v39, %v4707_v39  ;;  %v1606_v40 = vadd.f32 %v4707_v39, %v4685_v59 }
 0x2bb   : > { %v1815_v4 = vadd.f32 %v1811_v54, %v1781_v13  ;;  %v1859_v18 = vadd.f32 %v1855_v58, %v1825_v7  ;;  %v1676_v6 = vmul.f32 %v4661_v21, %v4661_v21  ;;  %v1710_v41 = vmul.f32 %v4721_v49, %v4721_v49 }
 0x2bc   : > { %v1571_v58 = vadd.f32 %v4691_v48, %v1537_v33 }
 0x2bd   : > { %v1849_v15 = vadd.f32 %v1845_v55, %v1815_v4  ;;  %v1893_v32 = vadd.f32 %v1889_v27, %v1859_v18  ;;  %v1575_v4 = vmul.f32 %v4691_v48, %v4691_v48  ;;  %v1680_v18 = vadd.f32 %v1676_v6, %v1646_v38 }
 0x2be   : > { %v4774_v42 = vpop.xlane.xlu2 %1703  ;;  %v1605_v27 = vadd.f32 %v4744_v25, %v1571_v58  ;;  %v1644_v48 = vmul.f32 %v4697_v10, %v4697_v10  ;;  %v1788_v6 = vmul.f32 %v4756_v12, %v4742_v11 }
 0x2bf   : > { %v1883_v0 = vadd.f32 %v1879_v29, %v1849_v15  ;;  %v1579_v59 = vadd.f32 %v1575_v4, %v1545_v36  ;;  %v1614_v15 = vadd.f32 %v1610_v9, %v4687_v61  ;;  %v1672_v29 = vadd.f32 %v4661_v21, %v1638_v44 }
 0x2c0   : > { %v4789_v23 = vpop.xlane.xlu0 %1771  ;;  %v1714_v61 = vadd.f32 %v1710_v41, %v1680_v18  ;;  %v1643_v21 = vmul.f32 %v4727_v3, %v4727_v3  ;;  %v1712_v44 = vmul.f32 %v4774_v42, %v4774_v42  ;;  %v1778_v9 = vmul.f32 %v4742_v11, %v4742_v11 }
 0x2c1   : > { %v1648_v25 = vadd.f32 %v1644_v48, %v1614_v15 }
 0x2c6   : > { %v1902_v60 = vpop.xlane.xlu2 %1901 }
 0x2c7   : > { %v1909_v43 = vadd.f32 %v1902_v60, %v1875_v62  ;;  %v1913_v19 = vmul.f32 %v1902_v60, %v1902_v60  ;;  %v1923_v31 = vmul.f32 %v4794_v24, %v1902_v60  ;;  %v1640_v62 = vadd.f32 %v4697_v10, %v1606_v40 }
 0x2c8   : > { %v1613_v60 = vadd.f32 %v1609_v17, %v1579_v59  ;;  %v1639_v10 = vadd.f32 %v4727_v3, %v1605_v27  ;;  %v1756_v27 = vmul.f32 %v4740_v45, %v4765_v14 }
 0x2c9   : > { %v1917_v30 = vadd.f32 %v1913_v19, %v1883_v0  ;;  %v1931_v5 = vmul.f32 0.027777778, %v1909_v43  ;;  %v4812_v54 = vadd.f32 %v1923_v31, %v1893_v32  ;;  %v1996_v0 = vld [vmem:[%s5039_s2 + $0x24] sm:$0x3f]  ;;  %v1706_v43 = vadd.f32 %v4721_v49, %v1672_v29  ;;  %v4856_v31 = vpop.xlane.xlu1 %1735 }
 0x2ca   : > { %v4830_v2 = vpop.xlane.xlu0 %1805  ;;  %2433 = vmatpush.msk.msrb.mxu0 %vm2033_vm1, %v1996_v0  ;;  %2451 = vmatpush.msk.msrb.mxu2 %vm2033_vm1, %v1996_v0  ;;  %v1653_v19 = vmul.f32 %v4448_v28, %v4727_v3  ;;  %v1647_v32 = vadd.f32 %v1643_v21, %v1613_v60  ;;  %v1674_v49 = vadd.f32 %v4711_v51, %v1640_v62 }
 0x2cb   : > { %v1935_v20 = vmul.f32 0.027777778, %v1917_v30  ;;  %v1939_v13 = vmul.f32 %v1931_v5, %v1931_v5  ;;  %v4815_v1 = vmul.f32 %v4800_v63, %v1931_v5  ;;  %v1678_v30 = vmul.f32 %v4711_v51, %v4711_v51 }
 0x2cc   : > { %v1754_v5 = vmul.f32 %v4740_v45, %v4719_v26  ;;  %v1740_v56 = vadd.f32 %v4719_v26, %v1706_v43  ;;  %v1657_v28 = vadd.f32 %v1653_v19, %v4763_v8  ;;  %v1708_v3 = vadd.f32 %v4774_v42, %v1674_v49 }
 0x2cd   : > { %v1943_v55 = vsub.f32 %v1935_v20, %v1939_v13  ;;  %v2002_v7 = vsub.f32 %v4812_v54, %v4815_v1  ;;  %v1748_v20 = vadd.f32 %v1744_v16, %v1714_v61  ;;  %v1677_v13 = vmul.f32 %v4781_v46, %v4781_v46 }
 0x2ce   : > { %v1758_v51 = vadd.f32 %v1754_v5, %v4733_v57  ;;  %v1687_v26 = vmul.f32 %v4469_v52, %v4781_v46  ;;  %v1682_v4 = vadd.f32 %v1678_v30, %v1648_v25  ;;  %v1673_v40 = vadd.f32 %v4781_v46, %v1639_v10  ;;  %v4916_v5 = vld [vmem:[%s5039_s2 + $0x2b] ss:$0 sm:$0xff] }
 0x2cf   : > { %v4834_v47 = vpop.xlane.xlu2 %1801  ;;  %v4839_v39 = vadd.f32 1e-05, %v1943_v55  ;;  %v1681_v17 = vadd.f32 %v1677_v13, %v1647_v32  ;;  %v1722_v55 = vmul.f32 %v4632_v22, %v4774_v42  ;;  %v1774_v58 = vadd.f32 %v4742_v11, %v1740_v56 }
 0x2d0   : > { %v1691_v41 = vadd.f32 %v1687_v26, %v1657_v28  ;;  %v1711_v52 = vmul.f32 %v4810_v53, %v4810_v53  ;;  %v1716_v59 = vadd.f32 %v1712_v44, %v1682_v4  ;;  %v1742_v15 = vadd.f32 %v4765_v14, %v1708_v3 }
 0x2d1   : > { %2556 = vrsqrt.f32 %v4839_v39  ;;  %v1782_v29 = vadd.f32 %v1778_v9, %v1748_v20  ;;  %v1746_v46 = vmul.f32 %v4765_v14, %v4765_v14  ;;  %v1721_v42 = vmul.f32 %v4632_v22, %v4810_v53  ;;  %v1770_v61 = vpop.xlane.xlu1 %1769 }
 0x2d2   : > { %v4873_v38 = vpop.xlane.xlu0 %1839  ;;  %v1792_v62 = vadd.f32 %v1788_v6, %v1758_v51  ;;  %v1707_v11 = vadd.f32 %v4810_v53, %v1673_v40  ;;  %v1715_v60 = vadd.f32 %v1711_v52, %v1681_v17  ;;  %v1726_v0 = vadd.f32 %v1722_v55, %v4717_v35 }
 0x2d3   : > { %v4898_v48 = vadd.f32 %v1721_v42, %v1691_v41  ;;  %v1812_v21 = vmul.f32 %v4834_v47, %v4834_v47  ;;  %v1750_v22 = vadd.f32 %v1746_v46, %v1716_v59  ;;  %v1776_v19 = vadd.f32 %v4789_v23, %v1742_v15 }
 0x2d4   : > { %v1780_v14 = vmul.f32 %v4789_v23, %v4789_v23  ;;  %v1790_v53 = vmul.f32 %v4756_v12, %v4789_v23  ;;  %vm1957_vm3 = vweird.f32 %v4839_v39  ;;  %v1822_v35 = vmul.f32 %v4761_v50, %v4834_v47 }
 0x2d5   : > { %v1760_v32 = vadd.f32 %v1756_v27, %v1726_v0  ;;  %v1741_v49 = vadd.f32 %v4856_v31, %v1707_v11  ;;  %v1745_v30 = vmul.f32 %v4856_v31, %v4856_v31  ;;  %v1808_v23 = vadd.f32 %v4834_v47, %v1774_v58 }
 0x2d6   : > { %v1816_v28 = vadd.f32 %v1812_v21, %v1782_v29  ;;  %v1784_v3 = vadd.f32 %v1780_v14, %v1750_v22  ;;  %v1755_v44 = vmul.f32 %v4740_v45, %v4856_v31  ;;  %v1814_v4 = vmul.f32 %v4830_v2, %v4830_v2 }
 0x2d7   : > { %v1836_v33 = vpop.xlane.xlu2 %1835  ;;  %v2557_v36 = vpop.eup %2556  ;;  %v1824_v47 = vmul.f32 %v4761_v50, %v4830_v2  ;;  %v1749_v9 = vadd.f32 %v1745_v30, %v1715_v60  ;;  %v1794_v45 = vadd.f32 %v1790_v53, %v1760_v32  ;;  %v1848_v59 = vmul.f32 %v4873_v38, %v4873_v38 }
 0x2d8   : > { %v1952_v8 = vmul.f32 %v2557_v36, %v4839_v39  ;;  %vm1958_vm2 = vweird.f32 %v2557_v36  ;;  %v1846_v10 = vmul.f32 %v1836_v33, %v1836_v33  ;;  %v1856_v20 = vmul.f32 %v4779_v37, %v1836_v33 }
 0x2d9   : > { %vm1959_vm4 = vmor %vm1957_vm3, %vm1958_vm2  ;;  %v1842_v26 = vadd.f32 %v1836_v33, %v1808_v23  ;;  %v1818_v58 = vadd.f32 %v1814_v4, %v1784_v3  ;;  %v1828_v52 = vadd.f32 %v1824_v47, %v1794_v45  ;;  %v1804_v15 = vpop.xlane.xlu1 %1803  ;;  %v1779_v29 = vmul.f32 %v1770_v61, %v1770_v61 }
 0x2da   : > { %v1953_v57 = vmul.f32 %v2557_v36, %v1952_v8  ;;  %v1874_v39 = vpop.xlane.xlu0 %1873  ;;  %v1850_v8 = vadd.f32 %v1846_v10, %v1816_v28  ;;  %v1858_v11 = vmul.f32 %v4779_v37, %v4873_v38  ;;  %v1789_v22 = vmul.f32 %v4756_v12, %v1770_v61 }
 0x2db   : > { %v1882_v60 = vmul.f32 %v1874_v39, %v1874_v39  ;;  %v1813_v14 = vmul.f32 %v1804_v15, %v1804_v15  ;;  %v1892_v53 = vmul.f32 %v4786_v34, %v1874_v39 }
 0x2dc   : > { %v1954_v18 = vmul.f32 0.5, %v1953_v57  ;;  %v1810_v57 = vadd.f32 %v4830_v2, %v1776_v19  ;;  %v1852_v19 = vadd.f32 %v1848_v59, %v1818_v58  ;;  %v1862_v32 = vadd.f32 %v1858_v11, %v1828_v52 }
 0x2de   : > { %v1955_v43 = vsub.f32 1.5, %v1954_v18  ;;  %v1844_v27 = vadd.f32 %v4873_v38, %v1810_v57  ;;  %v1886_v30 = vadd.f32 %v1882_v60, %v1852_v19 }
 0x2df   : > { %v1870_v25 = vpop.xlane.xlu2 %1869 }
 0x2e0   : > { %v1956_v16 = vmul.f32 %v2557_v36, %v1955_v43  ;;  %v1880_v13 = vmul.f32 %v1870_v25, %v1870_v25  ;;  %v1876_v17 = vadd.f32 %v1870_v25, %v1842_v26  ;;  %v1890_v55 = vmul.f32 %v4786_v34, %v1870_v25 }
 0x2e2   : > { %v1960_v56 = vsel %vm1959_vm4, %v2557_v36, %v1956_v16  ;;  %v1826_v36 = vadd.f32 %v1822_v35, %v1792_v62  ;;  %v1884_v6 = vadd.f32 %v1880_v13, %v1850_v8  ;;  %v1775_v62 = vadd.f32 %v1770_v61, %v1741_v49  ;;  %v1838_v2 = vpop.xlane.xlu0 %1837  ;;  %v1872_v8 = vpop.xlane.xlu1 %1871 }
 0x2e3   : > { %v2006_v51 = vmul.f32 %v2002_v7, %v1960_v56  ;;  %v1783_v16 = vadd.f32 %v1779_v29, %v1749_v9  ;;  %v1878_v35 = vadd.f32 %v1874_v39, %v1844_v27  ;;  %v1847_v23 = vmul.f32 %v1838_v2, %v1838_v2 }
 0x2e4   : > { %v1860_v31 = vadd.f32 %v1856_v20, %v1826_v36  ;;  %v1809_v49 = vadd.f32 %v1804_v15, %v1775_v62  ;;  %v1759_v61 = vadd.f32 %v1755_v44, %v4898_v48  ;;  %v1896_v39 = vadd.f32 %v1892_v53, %v1862_v32 }
 0x2e5   : > { %v2011_v40 = vadd.f32 %v4916_v5, %v2006_v51  ;;  %v1817_v3 = vadd.f32 %v1813_v14, %v1783_v16  ;;  %v1823_v51 = vmul.f32 %v4761_v50, %v1804_v15  ;;  %v1881_v48 = vmul.f32 %v1872_v8, %v1872_v8 }
 0x2e6   : > { %v1894_v46 = vadd.f32 %v1890_v55, %v1860_v31  ;;  %v1843_v26 = vadd.f32 %v1838_v2, %v1809_v49  ;;  %v1793_v36 = vadd.f32 %v1789_v22, %v1759_v61  ;;  %v1891_v59 = vmul.f32 %v4786_v34, %v1872_v8 }
 0x2e7   : > { %v1904_v54 = vpop.xlane.xlu2 %1903  ;;  %v2015_v41 = vmax.f32 %v2011_v40, 0.0  ;;  %v1851_v9 = vadd.f32 %v1847_v23, %v1817_v3  ;;  %v1857_v40 = vmul.f32 %v4779_v37, %v1838_v2 }
 0x2e8   : > { %v1910_v1 = vadd.f32 %v1904_v54, %v1876_v17  ;;  %v1914_v7 = vmul.f32 %v1904_v54, %v1904_v54  ;;  %v1924_v33 = vmul.f32 %v4794_v24, %v1904_v54  ;;  %v1877_v50 = vadd.f32 %v1872_v8, %v1843_v26 }
 0x2e9   : > { %2434 = vmatmul.msk.f32.vlgmr.msrb.gmra.mxu0 %vm2020_vm5, %v2015_v41  ;;  %v1885_v57 = vadd.f32 %v1881_v48, %v1851_v9 }
 0x2ea   : > { %v1918_v42 = vadd.f32 %v1914_v7, %v1884_v6  ;;  %v1932_v18 = vmul.f32 0.027777778, %v1910_v1  ;;  %v4940_v0 = vadd.f32 %v1924_v33, %v1894_v46  ;;  %v1827_v6 = vadd.f32 %v1823_v51, %v1793_v36 }
 0x2ec   : > { %v1936_v43 = vmul.f32 0.027777778, %v1918_v42  ;;  %v1940_v21 = vmul.f32 %v1932_v18, %v1932_v18  ;;  %v4943_v25 = vmul.f32 %v4800_v63, %v1932_v18  ;;  %v1861_v1 = vadd.f32 %v1857_v40, %v1827_v6 }
 0x2ee   : > { %v1944_v10 = vsub.f32 %v1936_v43, %v1940_v21  ;;  %v2003_v38 = vsub.f32 %v4940_v0, %v4943_v25  ;;  %v1895_v46 = vadd.f32 %v1891_v59, %v1861_v1 }
 0x2ef   : > { %v1908_v56 = vpop.xlane.xlu2 %1907 }
 0x2f0   : > { %v1948_v28 = vadd.f32 1e-05, %v1944_v10  ;;  %v1912_v20 = vadd.f32 %v1908_v56, %v1878_v35  ;;  %v1916_v13 = vmul.f32 %v1908_v56, %v1908_v56  ;;  %v1926_v12 = vmul.f32 %v4794_v24, %v1908_v56 }
 0x2f2   : > { %2558 = vrsqrt.f32 %v1948_v28  ;;  %v1920_v4 = vadd.f32 %v1916_v13, %v1886_v30  ;;  %v1934_v47 = vmul.f32 0.027777778, %v1912_v20  ;;  %v1930_v17 = vadd.f32 %v1926_v12, %v1896_v39 }
 0x2f3   : > { %vm1967_vm7 = vweird.f32 %v1948_v28 }
 0x2f4   : > { %v1938_v55 = vmul.f32 0.027777778, %v1920_v4  ;;  %v1942_v45 = vmul.f32 %v1934_v47, %v1934_v47  ;;  %v2001_v31 = vmul.f32 %v4800_v63, %v1934_v47  ;;  %v2553_v4 = vld [vmem:[%s5039_s2 + $0x2c] ss:$0 sm:$0xff] }
 0x2f6   : > { %v1946_v44 = vsub.f32 %v1938_v55, %v1942_v45  ;;  %v2005_v54 = vsub.f32 %v1930_v17, %v2001_v31 }
 0x2f7   : > { %v1906_v7 = vpop.xlane.xlu2 %1905 }
 0x2f8   : > { %v2559_v33 = vpop.eup %2558  ;;  %v1950_v41 = vadd.f32 1e-05, %v1946_v44  ;;  %v1911_v58 = vadd.f32 %v1906_v7, %v1877_v50  ;;  %v1915_v52 = vmul.f32 %v1906_v7, %v1906_v7  ;;  %v1925_v15 = vmul.f32 %v4794_v24, %v1906_v7 }
 0x2f9   : > { %v1962_v37 = vmul.f32 %v2559_v33, %v1948_v28  ;;  %vm1968_vm6 = vweird.f32 %v2559_v33  ;;  %v2669_v7 = vmov 6.0  }
 0x2fa   : > { %2560 = vrsqrt.f32 %v1950_v41  ;;  %v1919_v29 = vadd.f32 %v1915_v52, %v1885_v57  ;;  %v1933_v42 = vmul.f32 0.027777778, %v1911_v58  ;;  %v1929_v27 = vadd.f32 %v1925_v15, %v1895_v46  ;;  %vm1969_vm8 = vmor %vm1967_vm7, %vm1968_vm6 }
 0x2fb   : > { %v1963_v18 = vmul.f32 %v2559_v33, %v1962_v37  ;;  %vm1987_vm10 = vweird.f32 %v1950_v41 }
 0x2fc   : > { %v1937_v62 = vmul.f32 0.027777778, %v1919_v29  ;;  %v1941_v11 = vmul.f32 %v1933_v42, %v1933_v42  ;;  %v2000_v60 = vmul.f32 %v4800_v63, %v1933_v42 }
 0x2fd   : > { %v1964_v2 = vmul.f32 0.5, %v1963_v18 }
 0x2fe   : > { %v1945_v43 = vsub.f32 %v1937_v62, %v1941_v11  ;;  %v2004_v21 = vsub.f32 %v1929_v27, %v2000_v60 }
 0x2ff   : > { %v1965_v22 = vsub.f32 1.5, %v1964_v2 }
 0x300   : > { %v2561_v19 = vpop.eup %2560  ;;  %v1949_v14 = vadd.f32 1e-05, %v1945_v43 }
 0x301   : > { %v1982_v34 = vmul.f32 %v2561_v19, %v1950_v41  ;;  %v1966_v53 = vmul.f32 %v2559_v33, %v1965_v22  ;;  %vm1988_vm9 = vweird.f32 %v2561_v19 }
 0x302   : > { %2562 = vrsqrt.f32 %v1949_v14  ;;  %vm1989_vm11 = vmor %vm1987_vm10, %vm1988_vm9  ;;  %vm1977_vm13 = vweird.f32 %v1949_v14 }
 0x303   : > { %v1983_v24 = vmul.f32 %v2561_v19, %v1982_v34  ;;  %v1970_v16 = vsel %vm1969_vm8, %v2559_v33, %v1966_v53  ;;  %2564 = vrcp.f32 %v2669_v7 }
 0x304   : > { %v2007_v35 = vmul.f32 %v2003_v38, %v1970_v16 }
 0x305   : > { %v1984_v10 = vmul.f32 0.5, %v1983_v24 }
 0x306   : > { %v2012_v63 = vadd.f32 %v4916_v5, %v2007_v35 }
 0x307   : > { %v1985_v32 = vsub.f32 1.5, %v1984_v10 }
 0x308   : > { %v2016_v49 = vmax.f32 %v2012_v63, 0.0  ;;  %v2563_v30 = vpop.eup %2562 }
 0x309   : > { %v1986_v23 = vmul.f32 %v2561_v19, %v1985_v32  ;;  %v1972_v56 = vmul.f32 %v2563_v30, %v1949_v14  ;;  %vm1978_vm12 = vweird.f32 %v2563_v30  ;;  %v2565_v33 = vpop.eup %2564 }
 0x30a   : > { %2435 = vmatmul.msk.f32.gmra.mxu0 %vm2020_vm5, %v2016_v49  ;;  %vm1979_vm14 = vmor %vm1977_vm13, %vm1978_vm12  ;;  %v2083_v41 = vmul.f32 6.0, %v2565_v33  ;;  %vm2087_vm15 = vweird.f32 %v2565_v33 }
 0x30b   : > { %v1990_v28 = vsel %vm1989_vm11, %v2561_v19, %v1986_v23  ;;  %v1973_v13 = vmul.f32 %v2563_v30, %v1972_v56 }
 0x30c   : > { %v2009_v20 = vmul.f32 %v2005_v54, %v1990_v28  ;;  %v2084_v57 = vsub.f32 1.0, %v2083_v41 }
 0x30d   : > { %v1974_v0 = vmul.f32 0.5, %v1973_v13 }
 0x30e   : > { %v2014_v12 = vadd.f32 %v4916_v5, %v2009_v20  ;;  %v2085_v58 = vmul.f32 %v2565_v33, %v2084_v57  ;;  %v2554_v20 = vld [vmem:[%s5039_s2 + $0x2d] ss:$0 sm:$0xff] }
 0x30f   : > { %v1975_v38 = vsub.f32 1.5, %v1974_v0  ;;  %v2555_v0 = vld [vmem:[%s5039_s2 + $0x2e] ss:$0 sm:$0xff] }
 0x310   : > { %v2018_v25 = vmax.f32 %v2014_v12, 0.0  ;;  %v2086_v52 = vadd.f32 %v2565_v33, %v2085_v58 }
 0x311   : > { %v1976_v61 = vmul.f32 %v2563_v30, %v1975_v38 }
 0x312   : > { %2437 = vmatmul.msk.f32.vlgmr.msrb.gmra.mxu2 %vm2020_vm5, %v2018_v25  ;;  %v2088_v59 = vsel %vm2087_vm15, %v2565_v33, %v2086_v52 }
 0x313   : > { %v1980_v3 = vsel %vm1979_vm14, %v2563_v30, %v1976_v61 }
 0x314   : > { %v2008_v51 = vmul.f32 %v2004_v21, %v1980_v3 }
 0x316   : > { %v2013_v39 = vadd.f32 %v4916_v5, %v2008_v51 }
 0x318   : > { %v2017_v26 = vmax.f32 %v2013_v39, 0.0 }
 0x31a   : > { %2436 = vmatmul.msk.f32.gmra.mxu0 %vm2020_vm5, %v2017_v26 }
 0x366   : > { %v2054_v47 = vpop.f32.mrf.mxu0 }
 0x367   : > { %v2055_v36 = vadd.f32 %v2553_v4, %v2054_v47 }
 0x369   : > { %v2066_v8 = vmax.f32 %v2055_v36, 0.0 }
 0x36b   : > { %v2070_v9 = vsel %vm2020_vm5, %v2066_v8, 0.0 }
 0x36c   : > { %2071 = vadd.xlane.f32.xlu0 %v2070_v9 }
 0x387   : > { %v2057_v40 = vpop.f32.mrf.mxu0 }
 0x388   : > { %v2058_v17 = vadd.f32 %v2553_v4, %v2057_v40 }
 0x38a   : > { %v2067_v55 = vmax.f32 %v2058_v17, 0.0 }
 0x38c   : > { %v2073_v45 = vsel %vm2020_vm5, %v2067_v55, 0.0 }
 0x38d   : > { %2074 = vadd.xlane.f32.xlu1 %v2073_v45 }
 0x395   : > { %v2063_v5 = vpop.f32.mrf.mxu2 }
 0x396   : > { %v2064_v31 = vadd.f32 %v2553_v4, %v2063_v5 }
 0x397   : > { %v2060_v48 = vpop.f32.mrf.mxu0 }
 0x398   : > { %v2069_v6 = vmax.f32 %v2064_v31, 0.0  ;;  %v2061_v44 = vadd.f32 %v2553_v4, %v2060_v48 }
 0x39a   : > { %v2079_v54 = vsel %vm2020_vm5, %v2069_v6, 0.0  ;;  %v2068_v50 = vmax.f32 %v2061_v44, 0.0 }
 0x39b   : > { %2080 = vadd.xlane.f32.xlu0 %v2079_v54 }
 0x39c   : > { %v2076_v1 = vsel %vm2020_vm5, %v2068_v50, 0.0 }
 0x39d   : > { %2077 = vadd.xlane.f32.xlu2 %v2076_v1 }
 0x3df   : > { %v2072_v37 = vpop.xlane.xlu0 %2071 }
 0x3e0   : > { %v2089_v15 = vmul.f32 %v2088_v59, %v2072_v37 }
 0x3e2   : > { %v2093_v29 = vsub.f32 %v2066_v8, %v2089_v15 }
 0x3e4   : > { %v2097_v46 = vmul.f32 %v2093_v29, %v2093_v29 }
 0x3e6   : > { %v2101_v42 = vsel %vm2020_vm5, %v2097_v46, 0.0 }
 0x3e7   : > { %2102 = vadd.xlane.f32.xlu1 %v2101_v42 }
 0x400   : > { %v2075_v18 = vpop.xlane.xlu1 %2074 }
 0x401   : > { %v2090_v62 = vmul.f32 %v2088_v59, %v2075_v18 }
 0x403   : > { %v2094_v27 = vsub.f32 %v2067_v55, %v2090_v62 }
 0x405   : > { %v2098_v11 = vmul.f32 %v2094_v27, %v2094_v27 }
 0x407   : > { %v2104_v60 = vsel %vm2020_vm5, %v2098_v11, 0.0 }
 0x408   : > { %2105 = vadd.xlane.f32.xlu2 %v2104_v60 }
 0x40e   : > { %v2081_v2 = vpop.xlane.xlu0 %2080 }
 0x40f   : > { %v2092_v43 = vmul.f32 %v2088_v59, %v2081_v2 }
 0x410   : > { %v2078_v22 = vpop.xlane.xlu2 %2077 }
 0x411   : > { %v4975_v21 = vsub.f32 %v2069_v6, %v2092_v43  ;;  %v2091_v19 = vmul.f32 %v2088_v59, %v2078_v22 }
 0x413   : > { %v2100_v34 = vmul.f32 %v4975_v21, %v4975_v21  ;;  %v4979_v14 = vsub.f32 %v2068_v50, %v2091_v19 }
 0x415   : > { %v2110_v53 = vsel %vm2020_vm5, %v2100_v34, 0.0  ;;  %v2099_v24 = vmul.f32 %v4979_v14, %v4979_v14 }
 0x416   : > { %2111 = vadd.xlane.f32.xlu1 %v2110_v53 }
 0x417   : > { %v2107_v16 = vsel %vm2020_vm5, %v2099_v24, 0.0 }
 0x418   : > { %2108 = vadd.xlane.f32.xlu0 %v2107_v16 }
 0x45a   : > { %v2103_v35 = vpop.xlane.xlu1 %2102 }
 0x45b   : > { %v2113_v10 = vmul.f32 %v2103_v35, %v2088_v59 }
 0x45d   : > { %v2117_v63 = vadd.f32 1e-05, %v2113_v10 }
 0x45f   : > { %2566 = vrsqrt.f32 %v2117_v63  ;;  %vm2127_vm1 = vweird.f32 %v2117_v63 }
 0x465   : > { %v2567_v32 = vpop.eup %2566 }
 0x466   : > { %v2122_v49 = vmul.f32 %v2567_v32, %v2117_v63  ;;  %vm2128_vm0 = vweird.f32 %v2567_v32 }
 0x467   : > { %vm2129_vm2 = vmor %vm2127_vm1, %vm2128_vm0 }
 0x468   : > { %v2123_v30 = vmul.f32 %v2567_v32, %v2122_v49 }
 0x46a   : > { %v2124_v23 = vmul.f32 0.5, %v2123_v30 }
 0x46c   : > { %v2125_v56 = vsub.f32 1.5, %v2124_v23 }
 0x46e   : > { %v2126_v28 = vmul.f32 %v2567_v32, %v2125_v56 }
 0x470   : > { %v2130_v13 = vsel %vm2129_vm2, %v2567_v32, %v2126_v28 }
 0x471   : > { %v2161_v12 = vmul.f32 %v2130_v13, %v2093_v29 }
 0x473   : > { %v2166_v25 = vmul.f32 %v2554_v20, %v2161_v12 }
 0x475   : > { %v2171_v38 = vadd.f32 %v2555_v0, %v2166_v25 }
 0x477   : > { %v2175_v61 = vsel %vm2020_vm5, %v2171_v38, -inf }
 0x478   : > { %2176 = vmax.xlane.f32.xlu2 %v2175_v61 }
 0x47b   : > { %v2106_v3 = vpop.xlane.xlu2 %2105 }
 0x47c   : > { %v2114_v51 = vmul.f32 %v2106_v3, %v2088_v59 }
 0x47e   : > { %v2118_v39 = vadd.f32 1e-05, %v2114_v51 }
 0x480   : > { %2568 = vrsqrt.f32 %v2118_v39  ;;  %vm2137_vm4 = vweird.f32 %v2118_v39 }
 0x486   : > { %v2569_v26 = vpop.eup %2568 }
 0x487   : > { %v2132_v4 = vmul.f32 %v2569_v26, %v2118_v39  ;;  %vm2138_vm3 = vweird.f32 %v2569_v26 }
 0x488   : > { %vm2139_vm6 = vmor %vm2137_vm4, %vm2138_vm3 }
 0x489   : > { %v2133_v47 = vmul.f32 %v2569_v26, %v2132_v4  ;;  %v2112_v36 = vpop.xlane.xlu1 %2111 }
 0x48a   : > { %v2116_v8 = vmul.f32 %v2112_v36, %v2088_v59 }
 0x48b   : > { %v2134_v9 = vmul.f32 0.5, %v2133_v47  ;;  %v2109_v17 = vpop.xlane.xlu0 %2108 }
 0x48c   : > { %v2120_v40 = vadd.f32 1e-05, %v2116_v8  ;;  %v2115_v45 = vmul.f32 %v2109_v17, %v2088_v59 }
 0x48d   : > { %v2135_v55 = vsub.f32 1.5, %v2134_v9 }
 0x48e   : > { %2570 = vrsqrt.f32 %v2120_v40  ;;  %v2119_v31 = vadd.f32 1e-05, %v2115_v45  ;;  %vm2157_vm8 = vweird.f32 %v2120_v40 }
 0x48f   : > { %v2136_v5 = vmul.f32 %v2569_v26, %v2135_v55 }
 0x490   : > { %2572 = vrsqrt.f32 %v2119_v31  ;;  %vm2147_vm11 = vweird.f32 %v2119_v31 }
 0x491   : > { %v2140_v6 = vsel %vm2139_vm6, %v2569_v26, %v2136_v5 }
 0x492   : > { %v2162_v48 = vmul.f32 %v2140_v6, %v2094_v27 }
 0x494   : > { %v2571_v44 = vpop.eup %2570  ;;  %v2167_v54 = vmul.f32 %v2554_v20, %v2162_v48 }
 0x495   : > { %v2152_v50 = vmul.f32 %v2571_v44, %v2120_v40  ;;  %vm2158_vm7 = vweird.f32 %v2571_v44 }
 0x496   : > { %v2172_v1 = vadd.f32 %v2555_v0, %v2167_v54  ;;  %v2573_v7 = vpop.eup %2572  ;;  %vm2159_vm9 = vmor %vm2157_vm8, %vm2158_vm7 }
 0x497   : > { %v2153_v33 = vmul.f32 %v2571_v44, %v2152_v50  ;;  %v2142_v41 = vmul.f32 %v2573_v7, %v2119_v31  ;;  %vm2148_vm10 = vweird.f32 %v2573_v7 }
 0x498   : > { %v2178_v57 = vsel %vm2020_vm5, %v2172_v1, -inf  ;;  %vm2149_vm12 = vmor %vm2147_vm11, %vm2148_vm10 }
 0x499   : > { %v2154_v58 = vmul.f32 0.5, %v2153_v33  ;;  %2179 = vmax.xlane.f32.xlu0 %v2178_v57  ;;  %v2143_v52 = vmul.f32 %v2573_v7, %v2142_v41 }
 0x49b   : > { %v2155_v59 = vsub.f32 1.5, %v2154_v58  ;;  %v2144_v37 = vmul.f32 0.5, %v2143_v52 }
 0x49d   : > { %v2156_v15 = vmul.f32 %v2571_v44, %v2155_v59  ;;  %v2145_v29 = vsub.f32 1.5, %v2144_v37 }
 0x49f   : > { %v2160_v46 = vsel %vm2159_vm9, %v2571_v44, %v2156_v15  ;;  %v2146_v42 = vmul.f32 %v2573_v7, %v2145_v29 }
 0x4a0   : > { %v2164_v18 = vmul.f32 %v2160_v46, %v4975_v21 }
 0x4a1   : > { %v2150_v27 = vsel %vm2149_vm12, %v2573_v7, %v2146_v42 }
 0x4a2   : > { %v2169_v62 = vmul.f32 %v2554_v20, %v2164_v18  ;;  %v2163_v11 = vmul.f32 %v2150_v27, %v4979_v14 }
 0x4a4   : > { %v2174_v60 = vadd.f32 %v2555_v0, %v2169_v62  ;;  %v2168_v2 = vmul.f32 %v2554_v20, %v2163_v11 }
 0x4a6   : > { %v2184_v43 = vsel %vm2020_vm5, %v2174_v60, -inf  ;;  %v2173_v22 = vadd.f32 %v2555_v0, %v2168_v2 }
 0x4a7   : > { %2185 = vmax.xlane.f32.xlu2 %v2184_v43 }
 0x4a8   : > { %v2181_v19 = vsel %vm2020_vm5, %v2173_v22, -inf }
 0x4a9   : > { %2182 = vmax.xlane.f32.xlu1 %v2181_v19 }
 0x4eb   : > { %v2177_v34 = vpop.xlane.xlu2 %2176 }
 0x4ec   : > { %v2187_v53 = vsub.f32 %v2171_v38, %v2177_v34 }
 0x4ee   : > { %v2191_v24 = vmul.f32 1.442695, %v2187_v53 }
 0x4f0   : > { %2574 = vpow2.f32 %v2191_v24 }
 0x4f6   : > { %v2575_v16 = vpop.eup %2574 }
 0x4f7   : > { %v2199_v21 = vsel %vm2020_vm5, %v2575_v16, 0.0 }
 0x4f8   : > { %2200 = vadd.xlane.f32.xlu0 %v2199_v21 }
 0x50c   : > { %v2180_v35 = vpop.xlane.xlu0 %2179 }
 0x50d   : > { %v2188_v10 = vsub.f32 %v2172_v1, %v2180_v35 }
 0x50f   : > { %v2193_v14 = vmul.f32 1.442695, %v2188_v10 }
 0x511   : > { %2576 = vpow2.f32 %v2193_v14 }
 0x517   : > { %v2577_v63 = vpop.eup %2576 }
 0x518   : > { %v2202_v32 = vsel %vm2020_vm5, %v2577_v63, 0.0 }
 0x519   : > { %2203 = vadd.xlane.f32.xlu1 %v2202_v32 }
 0x51a   : > { %v2186_v49 = vpop.xlane.xlu2 %2185 }
 0x51b   : > { %v2190_v30 = vsub.f32 %v2174_v60, %v2186_v49 }
 0x51c   : > { %v2183_v56 = vpop.xlane.xlu1 %2182 }
 0x51d   : > { %v2197_v23 = vmul.f32 1.442695, %v2190_v30  ;;  %v2189_v28 = vsub.f32 %v2173_v22, %v2183_v56 }
 0x51f   : > { %2578 = vpow2.f32 %v2197_v23  ;;  %v2195_v20 = vmul.f32 1.442695, %v2189_v28 }
 0x521   : > { %2580 = vpow2.f32 %v2195_v20 }
 0x525   : > { %v4999_v13 = vpop.eup %2578 }
 0x526   : > { %v2208_v12 = vsel %vm2020_vm5, %v4999_v13, 0.0 }
 0x527   : > { %2209 = vadd.xlane.f32.xlu0 %v2208_v12  ;;  %v5003_v0 = vpop.eup %2580 }
 0x528   : > { %v2205_v25 = vsel %vm2020_vm5, %v5003_v0, 0.0 }
 0x529   : > { %2206 = vadd.xlane.f32.xlu2 %v2205_v25 }
 0x56b   : > { %v2201_v38 = vpop.xlane.xlu0 %2200 }
 0x56c   : > { %2582 = vrcp.f32 %v2201_v38  ;;  %v2222_v39 = vand.u32 2147483648, %v2201_v38  ;;  %v2220_v4 = vand.u32 2147483647, %v2201_v38  ;;  %vm2216_vm14 = vweird.f32 %v2201_v38 }
 0x56e   : > { %v2223_v36 = vor.u32 1.1754944e-38, %v2222_v39  ;;  %vm2221_vm0 = vcmp.eq.f32.partialorder %v2220_v4, 8.507059e+37 }
 0x572   : > { %v2583_v61 = vpop.eup %2582 }
 0x573   : > { %v2212_v3 = vmul.f32 %v2583_v61, %v2201_v38  ;;  %vm2217_vm13 = vweird.f32 %v2583_v61 }
 0x574   : > { %vm2218_vm15 = vmor %vm2216_vm14, %vm2217_vm13 }
 0x575   : > { %v2213_v51 = vsub.f32 1.0, %v2212_v3 }
 0x577   : > { %v2214_v26 = vmul.f32 %v2583_v61, %v2213_v51 }
 0x579   : > { %v2215_v47 = vadd.f32 %v2583_v61, %v2214_v26 }
 0x57b   : > { %v2219_v8 = vsel %vm2218_vm15, %v2583_v61, %v2215_v47 }
 0x57c   : > { %v2224_v9 = vsel %vm2221_vm0, %v2223_v36, %v2219_v8 }
 0x57d   : > { %v2225_v40 = vmul.f32 %v2575_v16, %v2224_v9 }
 0x57f   : > { %2271 = vst.msk [vmem:[%s5012_s15] sm:$0xff] %vm2020_vm5, %v2225_v40 }
 0x58c   : > { %v2204_v17 = vpop.xlane.xlu1 %2203 }
 0x58d   : > { %2584 = vrcp.f32 %v2204_v17  ;;  %v2237_v31 = vand.u32 2147483648, %v2204_v17  ;;  %v2235_v48 = vand.u32 2147483647, %v2204_v17  ;;  %vm2231_vm2 = vweird.f32 %v2204_v17 }
 0x58f   : > { %v2238_v50 = vor.u32 1.1754944e-38, %v2237_v31  ;;  %vm2236_vm4 = vcmp.eq.f32.partialorder %v2235_v48, 8.507059e+37 }
 0x593   : > { %v2585_v55 = vpop.eup %2584 }
 0x594   : > { %v2227_v45 = vmul.f32 %v2585_v55, %v2204_v17  ;;  %vm2232_vm1 = vweird.f32 %v2585_v55 }
 0x595   : > { %vm2233_vm3 = vmor %vm2231_vm2, %vm2232_vm1 }
 0x596   : > { %v2228_v5 = vsub.f32 1.0, %v2227_v45 }
 0x598   : > { %v2229_v6 = vmul.f32 %v2585_v55, %v2228_v5 }
 0x59a   : > { %v2230_v44 = vadd.f32 %v2585_v55, %v2229_v6  ;;  %v2210_v54 = vpop.xlane.xlu0 %2209 }
 0x59b   : > { %2586 = vrcp.f32 %v2210_v54  ;;  %v2267_v29 = vand.u32 2147483648, %v2210_v54  ;;  %vm2261_vm7 = vweird.f32 %v2210_v54  ;;  %v2265_v18 = vand.u32 2147483647, %v2210_v54 }
 0x59c   : > { %v2234_v1 = vsel %vm2233_vm3, %v2585_v55, %v2230_v44  ;;  %v2207_v33 = vpop.xlane.xlu2 %2206 }
 0x59d   : > { %v2239_v7 = vsel %vm2236_vm4, %v2238_v50, %v2234_v1  ;;  %2588 = vrcp.f32 %v2207_v33  ;;  %v2252_v62 = vand.u32 2147483648, %v2207_v33  ;;  %v2250_v11 = vand.u32 2147483647, %v2207_v33 }
 0x59e   : > { %v2240_v41 = vmul.f32 %v2577_v63, %v2239_v7  ;;  %v2268_v2 = vor.u32 1.1754944e-38, %v2267_v29  ;;  %vm2246_vm10 = vweird.f32 %v2207_v33  ;;  %vm2266_vm11 = vcmp.eq.f32.partialorder %v2265_v18, 8.507059e+37 }
 0x59f   : > { %v2253_v22 = vor.u32 1.1754944e-38, %v2252_v62  ;;  %vm2251_vm13 = vcmp.eq.f32.partialorder %v2250_v11, 8.507059e+37 }
 0x5a0   : > { %2272 = vst.msk [vmem:[%s5012_s15 + $0x8] sm:$0xff] %vm2020_vm5, %v2240_v41 }
 0x5a1   : > { %v2587_v57 = vpop.eup %2586 }
 0x5a2   : > { %v2257_v58 = vmul.f32 %v2587_v57, %v2210_v54  ;;  %vm2262_vm6 = vweird.f32 %v2587_v57 }
 0x5a3   : > { %v2589_v52 = vpop.eup %2588  ;;  %vm2263_vm8 = vmor %vm2261_vm7, %vm2262_vm6 }
 0x5a4   : > { %v2258_v59 = vsub.f32 1.0, %v2257_v58  ;;  %v2242_v37 = vmul.f32 %v2589_v52, %v2207_v33  ;;  %vm2247_vm9 = vweird.f32 %v2589_v52 }
 0x5a5   : > { %vm2248_vm12 = vmor %vm2246_vm10, %vm2247_vm9 }
 0x5a6   : > { %v2259_v15 = vmul.f32 %v2587_v57, %v2258_v59  ;;  %v2243_v46 = vsub.f32 1.0, %v2242_v37 }
 0x5a8   : > { %v2260_v42 = vadd.f32 %v2587_v57, %v2259_v15  ;;  %v2244_v27 = vmul.f32 %v2589_v52, %v2243_v46 }
 0x5aa   : > { %v2264_v60 = vsel %vm2263_vm8, %v2587_v57, %v2260_v42  ;;  %v2245_v43 = vadd.f32 %v2589_v52, %v2244_v27 }
 0x5ab   : > { %v2269_v19 = vsel %vm2266_vm11, %v2268_v2, %v2264_v60 }
 0x5ac   : > { %v2249_v34 = vsel %vm2248_vm12, %v2589_v52, %v2245_v43  ;;  %v2270_v16 = vmul.f32 %v4999_v13, %v2269_v19 }
 0x5ad   : > { %v2254_v53 = vsel %vm2251_vm13, %v2253_v22, %v2249_v34 }
 0x5ae   : > { %v2255_v24 = vmul.f32 %v5003_v0, %v2254_v53  ;;  %2274 = vst.msk [vmem:[%s5012_s15 + $0x18] sm:$0xff] %vm2020_vm5, %v2270_v16 }
 0x5b0   : > { %2273 = vst.msk [vmem:[%s5012_s15 + $0x10] sm:$0xff] %vm2020_vm5, %v2255_v24 }
 0x5b1 PF: > { %p14_p0 = scmp.ge.s32.totalorder %s2710_s17, 4   ;;  %s5483_s12 = smov %s2650_s13 }
 0x5b2   : > { %s5484_s13 = smov %s2654_s14  ;;  %s5485_s14 = smov %s2720_s20 }
 0x5b3   : > { %s5486_s15 = smov %s2710_s17  ;;  %16 = sbr.rel (!%p14_p0) target bundleno = 4 (0x4), region = 86 }
 0x5b8   :  { %2297 = vsyncpa [#allocation3], 1 }
 0x5b9   :  { %2299 = vsyncpa [#allocation3 + $0x1], 1 }
 0x5ba   :  { %2300 = vsyncpa [#allocation5], 1 }

</bundles_post_ra>
